<compile_context>
chip_gen: v7x
topology: tpu7x:2x2x1
jax: 0.10.0
libtpu: 0.0.40
codegen_flags: <defaults>
</compile_context>

<pallas_src>
import functools

import jax
import jax.numpy as jnp
import numpy as np
from jax.experimental import pallas as pl
from jax.experimental.pallas import tpu as pltpu


# ----------------------------------------------------------------------------- kernel
def _lstmae_clf_kernel(
    x_ref,       # (TB, S, I)  bf16, batch-first block
    wih_e_ref,   # (I, 4H) f32  encoder W_ih^T   (i/f/o columns pre-scaled by 0.5)
    whh_e_ref,   # (H, 4H) f32  encoder W_hh^T   (idem)
    b_e_ref,     # (1, 4H) f32  encoder b_ih+b_hh (idem)
    wih_d_ref,   # (H, 4H) f32  decoder W_ih^T   (idem)
    whh_d_ref,   # (H, 4H) f32  decoder W_hh^T   (idem)
    b_d_ref,     # (1, 4H) f32
    wdec_ref,    # (H, I)  f32  reconstruction Linear weight^T
    bdec_ref,    # (1, I)  f32
    wclf_ref,    # (H, C)  f32  classifier Linear weight^T
    bclf_ref,    # (1, C)  f32
    rec_ref,     # out (TB, S, I) f32
    clf_ref,     # out (TB, C)    f32
    xg_scr,      # (TB, S, 4H) f32 scratch: hoisted encoder input projection
    hdec_scr,    # (TB, S, H)  f32 scratch: decoder hidden states
    *,
    seq_len: int,
    use_act: bool,
):
    S = seq_len
    TB, _, I = x_ref.shape
    H = whh_e_ref.shape[0]
    G = 4 * H
    f32, bf16 = jnp.float32, jnp.bfloat16

    # Weights cast once to bf16 (MXU operands only); elementwise math stays f32 (v5e-safe).
    wih_e = wih_e_ref[...].astype(bf16)
    whh_e = whh_e_ref[...].astype(bf16)
    wih_d = wih_d_ref[...].astype(bf16)
    whh_d = whh_d_ref[...].astype(bf16)

    # Lane mask of the tanh (g) gate block [2H, 3H) of the 4H-wide gate tile.
    lane = jax.lax.broadcasted_iota(jnp.int32, (TB, G), dimension=1)
    g_mask = (lane >= 2 * H) & (lane < 3 * H)

    def lstm_step(gates, c):
        # i/f/o weight & bias columns carry a 0.5 pre-scale (folded in the wrapper), so a
        # SINGLE full-width tanh yields tanh(z_g) for g and tanh(z/2) for i/f/o; sigmoid
        # is then 0.5*tanh(z/2) + 0.5 (VPU fixup, VALU slots have slack).
        th = jnp.tanh(gates)                               # EUP pass 1 (all 4 gates)
        act = jnp.where(g_mask, th, 0.5 * th + 0.5)
        i_g = act[:, 0 * H:1 * H]
        f_g = act[:, 1 * H:2 * H]
        g_g = act[:, 2 * H:3 * H]
        o_g = act[:, 3 * H:4 * H]
        c_new = f_g * c + i_g * g_g
        h_new = o_g * jnp.tanh(c_new)                      # EUP pass 2 (H wide)
        # h is only ever consumed as an MXU operand -> cast to bf16 once, here.
        return h_new, h_new.astype(bf16), c_new

    # ------------- encoder input projection hoisted out of the recurrence -------------
    # One (TB*S, I) x (I, 4H) matmul; leading-dim reshape only (no transpose anywhere).
    xg = jnp.dot(x_ref[...].reshape(TB * S, I), wih_e,
                 preferred_element_type=f32) + b_e_ref[...]
    xg_scr[...] = xg.reshape(TB, S, G)

    # ------------- encoder recurrence: only h @ W_hh stays on the serial path ---------
    h_bf = jnp.zeros((TB, H), bf16)
    c = jnp.zeros((TB, H), f32)
    # S is small & static -> full unroll with constant time indices.
    for t in range(S):
        gates = xg_scr[:, t, :] + jnp.dot(h_bf, whh_e, preferred_element_type=f32)
        _, h_bf, c = lstm_step(gates, c)

    # ------------- decoder: constant input z = h_enc -> project once ------------------
    zg = jnp.dot(h_bf, wih_d, preferred_element_type=f32) + b_d_ref[...]

    h_bf = jnp.zeros((TB, H), bf16)
    c = jnp.zeros((TB, H), f32)
    for t in range(S):
        gates = zg + jnp.dot(h_bf, whh_d, preferred_element_type=f32)
        h_f32, h_bf, c = lstm_step(gates, c)
        hdec_scr[:, t, :] = h_f32   # off the serial chain (plain f32 masked sublane store)

    # ------------- batched reconstruction head: one (TB*S, H) x (H, I) matmul ---------
    y = jnp.dot(hdec_scr[...].reshape(TB * S, H).astype(bf16),
                wdec_ref[...].astype(bf16),
                preferred_element_type=f32) + bdec_ref[...]
    if use_act:
        y = jax.nn.sigmoid(y)
    rec_ref[...] = y.reshape(TB, S, I).astype(rec_ref.dtype)

    # ------------- classifier head on the decoder's last hidden state -----------------
    clf_ref[...] = (
        jnp.dot(h_bf, wclf_ref[...].astype(bf16), preferred_element_type=f32)
        + bclf_ref[...]
    ).astype(clf_ref.dtype)


# ----------------------------------------------------------------------------- wrapper
def _pick_batch_block(batch: int, target: int) -> int:
    """Largest multiple-of-8 divisor of `batch` that is <= target (or batch itself)."""
    if batch <= target:
        return batch
    tb = (target // 8) * 8
    while tb >= 8 and batch % tb != 0:
        tb -= 8
    return tb if tb >= 8 else batch


def lstmae_clf_forward(x, params, *, use_act=True, batch_block=128, vmem_limit_bytes=None):
    """x: (B, S, I) batch-first (PyTorch convention). Returns (rec_out (B,S,I), clf (B,C))."""
    B, S, I = x.shape
    H = params["whh_e"].shape[0]
    C = params["wclf"].shape[1]
    G = 4 * H

    # x is only ever a bf16 MXU operand inside the kernel -> cross the boundary as bf16
    # (halves input DMA / VMEM bytes). No layout change: batch-first goes straight in.
    x_bf = x.astype(jnp.bfloat16)

    # Fold the 0.5 pre-scale of the sigmoid-gate (i, f, o) columns into the LSTM
    # weights / fused biases: sigmoid(z) = 0.5*tanh(z/2) + 0.5, so the kernel needs only
    # one full-width tanh per step. Power-of-two scale -> exact in bf16 and f32.
    col = jnp.arange(G)
    gscale = jnp.where((col >= 2 * H) & (col < 3 * H), 1.0, 0.5).astype(jnp.float32)
    wih_e = params["wih_e"] * gscale
    whh_e = params["whh_e"] * gscale
    b_e = params["b_e"] * gscale
    wih_d = params["wih_d"] * gscale
    whh_d = params["whh_d"] * gscale
    b_d = params["b_d"] * gscale

    TB = _pick_batch_block(B, batch_block)
    grid = (B // TB,)

    kernel = functools.partial(_lstmae_clf_kernel, seq_len=S, use_act=use_act)

    def _resident(a):  # whole-array block, stays VMEM-resident across the batch grid
        nd = a.ndim
        return pl.BlockSpec(a.shape, lambda i, _nd=nd: (0,) * _nd)

    rec, clf = pl.pallas_call(
        kernel,
        grid=grid,
        out_shape=(
            jax.ShapeDtypeStruct((B, S, I), jnp.float32),
            jax.ShapeDtypeStruct((B, C), jnp.float32),
        ),
        in_specs=[
            pl.BlockSpec((TB, S, I), lambda i: (i, 0, 0)),
            _resident(wih_e), _resident(whh_e), _resident(b_e),
            _resident(wih_d), _resident(whh_d), _resident(b_d),
            _resident(params["wdec"]), _resident(params["bdec"]),
            _resident(params["wclf"]), _resident(params["bclf"]),
        ],
        out_specs=(
            pl.BlockSpec((TB, S, I), lambda i: (i, 0, 0)),
            pl.BlockSpec((TB, C), lambda i: (i, 0)),
        ),
        scratch_shapes=[
            pltpu.VMEM((TB, S, G), jnp.float32),   # hoisted encoder input projection
            pltpu.VMEM((TB, S, H), jnp.float32),   # decoder hidden states
        ],
        compiler_params=pltpu.CompilerParams(
            dimension_semantics=("parallel",),     # batch blocks are independent
            vmem_limit_bytes=vmem_limit_bytes,     # raise (and/or shrink batch_block) for
                                                   # large S*B on v7x (64 MiB physical VMEM)
        ),
    )(
        x_bf,
        wih_e, whh_e, b_e,
        wih_d, whh_d, b_d,
        params["wdec"], params["bdec"],
        params["wclf"], params["bclf"],
    )
    return rec, clf


# ----------------------------------------------------------------------------- params
def init_params(key, input_size, hidden_size, n_classes):
    """Deterministic PyTorch-like init (uniform(-1/sqrt(fan), 1/sqrt(fan)))."""
    ks = jax.random.split(key, 12)
    kH = 1.0 / np.sqrt(hidden_size)

    def u(k, shape, bound):
        return jax.random.uniform(k, shape, jnp.float32, -bound, bound)

    # encoder LSTM (PyTorch shapes, then transpose to right-multiply layout)
    w_ih_e = u(ks[0], (4 * hidden_size, input_size), kH)
    w_hh_e = u(ks[1], (4 * hidden_size, hidden_size), kH)
    b_ih_e = u(ks[2], (4 * hidden_size,), kH)
    b_hh_e = u(ks[3], (4 * hidden_size,), kH)
    # decoder LSTM (input is hidden_size)
    w_ih_d = u(ks[4], (4 * hidden_size, hidden_size), kH)
    w_hh_d = u(ks[5], (4 * hidden_size, hidden_size), kH)
    b_ih_d = u(ks[6], (4 * hidden_size,), kH)
    b_hh_d = u(ks[7], (4 * hidden_size,), kH)
    # reconstruction Linear(H -> I)
    w_dec = u(ks[8], (input_size, hidden_size), kH)
    b_dec = u(ks[9], (input_size,), kH)
    # classifier Linear(H -> C)
    w_clf = u(ks[10], (n_classes, hidden_size), kH)
    b_clf = u(ks[11], (n_classes,), kH)

    return {
        "wih_e": w_ih_e.T, "whh_e": w_hh_e.T, "b_e": (b_ih_e + b_hh_e)[None, :],
        "wih_d": w_ih_d.T, "whh_d": w_hh_d.T, "b_d": (b_ih_d + b_hh_d)[None, :],
        "wdec": w_dec.T, "bdec": b_dec[None, :],
        "wclf": w_clf.T, "bclf": b_clf[None, :],
    }


# ----------------------------------------------------------------------------- pure-JAX reference
def ref_forward(x, params, *, use_act=True, matmul_dtype=jnp.float32, precision=None):
    """Pure-JAX reference. matmul_dtype=bf16 matches the kernel's matmul precision;
    matmul_dtype=f32 + precision=HIGHEST is the full-precision (PyTorch-like) baseline."""
    B, S, I = x.shape
    H = params["whh_e"].shape[0]

    def mm(a, b):
        return jnp.dot(a.astype(matmul_dtype), b.astype(matmul_dtype),
                       preferred_element_type=jnp.float32, precision=precision)

    def lstm_scan(xs, wih, whh, b):
        def step(carry, x_t):
            h, c = carry
            gates = mm(x_t, wih) + mm(h, whh) + b
            i, f, g, o = jnp.split(gates, 4, axis=-1)
            c_new = jax.nn.sigmoid(f) * c + jax.nn.sigmoid(i) * jnp.tanh(g)
            h_new = jax.nn.sigmoid(o) * jnp.tanh(c_new)
            return (h_new, c_new), h_new

        h0 = jnp.zeros((B, H), jnp.float32)
        (hT, _), hs = jax.lax.scan(step, (h0, h0), xs)
        return hT, hs

    x_tm = jnp.transpose(x, (1, 0, 2)).astype(jnp.float32)
    h_enc, _ = lstm_scan(x_tm, params["wih_e"], params["whh_e"], params["b_e"])
    z = jnp.broadcast_to(h_enc[None], (S, B, H))
    h_dec_last, h_dec_seq = lstm_scan(z, params["wih_d"], params["whh_d"], params["b_d"])
    rec = mm(h_dec_seq.reshape(S * B, H), params["wdec"]).reshape(S, B, I) + params["bdec"]
    if use_act:
        rec = jax.nn.sigmoid(rec)
    clf = mm(h_dec_last, params["wclf"]) + params["bclf"]
    return jnp.transpose(rec, (1, 0, 2)), clf


# ----------------------------------------------------------------------------- main
if __name__ == "__main__":
    # module hyper-params (small, consistent with forward: x is (batch, seq_len, input_size))
    batch = 8
    seq_len = 8
    input_size = 16
    hidden_size = 32
    n_classes = 4
    dropout_ratio = 0.1  # TODO(synk): no-op for a single-layer nn.LSTM (PyTorch ignores it)
    use_act = True

    key = jax.random.PRNGKey(0)
    k_x, k_p = jax.random.split(key)
    x = jax.random.normal(k_x, (batch, seq_len, input_size), jnp.float32)
    params = init_params(k_p, input_size, hidden_size, n_classes)

    fwd = jax.jit(functools.partial(lstmae_clf_forward, use_act=use_act))
    rec_out, clf_out = fwd(x, params)
    jax.block_until_ready((rec_out, clf_out))

    assert rec_out.shape == (batch, seq_len, input_size)
    assert clf_out.shape == (batch, n_classes)

    rec_np = np.asarray(rec_out)
    clf_np = np.asarray(clf_out)

    # 1) matched-precision reference (bf16 matmul operands, f32 accumulation).
    #    Slightly looser than bit-exact because the kernel evaluates sigmoid via the
    #    tanh identity (0.5*tanh(z/2)+0.5); ulp-level differences can requantize a bf16
    #    h element across the 2*S recurrent steps.
    rec_ref_b, clf_ref_b = ref_forward(x, params, use_act=use_act, matmul_dtype=jnp.bfloat16)
    np.testing.assert_allclose(rec_np, np.asarray(rec_ref_b), rtol=5e-3, atol=5e-3)
    np.testing.assert_allclose(clf_np, np.asarray(clf_ref_b), rtol=5e-3, atol=5e-3)

    # 2) full-f32 (HIGHEST) reference -> looser tolerance covers bf16 MXU rounding
    #    compounded over the S-step recurrence (fine at S=8; for strict PyTorch parity on
    #    long sequences keep the recurrent h@W_hh matmul in f32).
    rec_ref_f, clf_ref_f = ref_forward(x, params, use_act=use_act,
                                       matmul_dtype=jnp.float32,
                                       precision=jax.lax.Precision.HIGHEST)
    np.testing.assert_allclose(rec_np, np.asarray(rec_ref_f), rtol=2e-2, atol=2e-2)
    np.testing.assert_allclose(clf_np, np.asarray(clf_ref_f), rtol=2e-2, atol=2e-2)

    print("KERNEL_OK")
</pallas_src>

<mosaic_0001>
module attributes {stable_mosaic.version = 11 : i64} {
  func.func @_lstmae_clf_kernel(%arg0: i32, %arg1: memref<8x8x16xbf16, #tpu.memory_space<vmem>>, %arg2: memref<16x128xf32, #tpu.memory_space<vmem>>, %arg3: memref<32x128xf32, #tpu.memory_space<vmem>>, %arg4: memref<1x128xf32, #tpu.memory_space<vmem>>, %arg5: memref<32x128xf32, #tpu.memory_space<vmem>>, %arg6: memref<32x128xf32, #tpu.memory_space<vmem>>, %arg7: memref<1x128xf32, #tpu.memory_space<vmem>>, %arg8: memref<32x16xf32, #tpu.memory_space<vmem>>, %arg9: memref<1x16xf32, #tpu.memory_space<vmem>>, %arg10: memref<32x4xf32, #tpu.memory_space<vmem>>, %arg11: memref<1x4xf32, #tpu.memory_space<vmem>>, %arg12: memref<8x8x16xf32, #tpu.memory_space<vmem>>, %arg13: memref<8x4xf32, #tpu.memory_space<vmem>>, %arg14: memref<8x8x128xf32, #tpu.memory_space<vmem>>, %arg15: memref<8x8x32xf32, #tpu.memory_space<vmem>>) attributes {dimension_semantics = [#tpu.dimension_semantics<parallel>], iteration_bounds = array<i64: 1>, scalar_prefetch = 0 : i64, scratch_operands = 2 : i64, tpu.core_type = #tpu.core_type<tc>, window_params = [{transform_indices = @transform_0, window_bounds = array<i64: 8, 8, 16>}, {pipeline_mode = #tpu.pipeline_mode<synchronous>, transform_indices = @transform_1, window_bounds = array<i64: 16, 128>}, {pipeline_mode = #tpu.pipeline_mode<synchronous>, transform_indices = @transform_2, window_bounds = array<i64: 32, 128>}, {pipeline_mode = #tpu.pipeline_mode<synchronous>, transform_indices = @transform_3, window_bounds = array<i64: 1, 128>}, {pipeline_mode = #tpu.pipeline_mode<synchronous>, transform_indices = @transform_4, window_bounds = array<i64: 32, 128>}, {pipeline_mode = #tpu.pipeline_mode<synchronous>, transform_indices = @transform_5, window_bounds = array<i64: 32, 128>}, {pipeline_mode = #tpu.pipeline_mode<synchronous>, transform_indices = @transform_6, window_bounds = array<i64: 1, 128>}, {pipeline_mode = #tpu.pipeline_mode<synchronous>, transform_indices = @transform_7, window_bounds = array<i64: 32, 16>}, {pipeline_mode = #tpu.pipeline_mode<synchronous>, transform_indices = @transform_8, window_bounds = array<i64: 1, 16>}, {pipeline_mode = #tpu.pipeline_mode<synchronous>, transform_indices = @transform_9, window_bounds = array<i64: 32, 4>}, {pipeline_mode = #tpu.pipeline_mode<synchronous>, transform_indices = @transform_10, window_bounds = array<i64: 1, 4>}, {transform_indices = @transform_11, window_bounds = array<i64: 8, 8, 16>}, {transform_indices = @transform_12, window_bounds = array<i64: 8, 4>}]} {
    %c0 = arith.constant 0 : index
    %c0_0 = arith.constant 0 : index
    %0 = vector.load %arg2[%c0, %c0_0] : memref<16x128xf32, #tpu.memory_space<vmem>>, vector<16x128xf32>
    %1 = arith.truncf %0 : vector<16x128xf32> to vector<16x128xbf16>
    %c0_1 = arith.constant 0 : index
    %c0_2 = arith.constant 0 : index
    %2 = vector.load %arg3[%c0_1, %c0_2] : memref<32x128xf32, #tpu.memory_space<vmem>>, vector<32x128xf32>
    %3 = arith.truncf %2 : vector<32x128xf32> to vector<32x128xbf16>
    %c0_3 = arith.constant 0 : index
    %c0_4 = arith.constant 0 : index
    %4 = vector.load %arg5[%c0_3, %c0_4] : memref<32x128xf32, #tpu.memory_space<vmem>>, vector<32x128xf32>
    %5 = arith.truncf %4 : vector<32x128xf32> to vector<32x128xbf16>
    %c0_5 = arith.constant 0 : index
    %c0_6 = arith.constant 0 : index
    %6 = vector.load %arg6[%c0_5, %c0_6] : memref<32x128xf32, #tpu.memory_space<vmem>>, vector<32x128xf32>
    %7 = arith.truncf %6 : vector<32x128xf32> to vector<32x128xbf16>
    %8 = tpu.iota {dimensions = array<i32: 1>} : vector<8x128xi32>
    %c64_i32 = arith.constant 64 : i32
    %9 = vector.broadcast %c64_i32 : i32 to vector<8x128xi32>
    %10 = arith.cmpi sge, %8, %9 : vector<8x128xi32>
    %c96_i32 = arith.constant 96 : i32
    %11 = vector.broadcast %c96_i32 : i32 to vector<8x128xi32>
    %12 = arith.cmpi slt, %8, %11 : vector<8x128xi32>
    %13 = arith.andi %10, %12 : vector<8x128xi1>
    %c0_7 = arith.constant 0 : index
    %c0_8 = arith.constant 0 : index
    %c0_9 = arith.constant 0 : index
    %14 = vector.load %arg1[%c0_7, %c0_8, %c0_9] : memref<8x8x16xbf16, #tpu.memory_space<vmem>>, vector<8x8x16xbf16>
    %15 = vector.shape_cast %14 : vector<8x8x16xbf16> to vector<64x16xbf16>
    %cst = arith.constant dense<0.000000e+00> : vector<64x128xf32>
    %16 = tpu.matmul %15, %1, %cst {dimension_numbers = #tpu.dot_dimension_numbers<[1], [0], [0], [1], [0, 0, 1, 1], [], []>} : vector<64x16xbf16>, vector<16x128xbf16>, vector<64x128xf32> -> vector<64x128xf32>
    %c0_10 = arith.constant 0 : index
    %c0_11 = arith.constant 0 : index
    %17 = vector.load %arg4[%c0_10, %c0_11] : memref<1x128xf32, #tpu.memory_space<vmem>>, vector<1x128xf32>
    %18 = vector.broadcast %17 : vector<1x128xf32> to vector<64x128xf32>
    %19 = arith.addf %16, %18 : vector<64x128xf32>
    %20 = vector.shape_cast %19 : vector<64x128xf32> to vector<8x8x128xf32>
    %c0_12 = arith.constant 0 : index
    %c0_13 = arith.constant 0 : index
    %c0_14 = arith.constant 0 : index
    %21 = vector.load %arg14[%c0_12, %c0_13, %c0_14] : memref<8x8x128xf32, #tpu.memory_space<vmem>>, vector<8x8x128xf32>
    tpu.vector_store %arg14[%c0_12, %c0_13, %c0_14], %20 {strides = array<i32>} : memref<8x8x128xf32, #tpu.memory_space<vmem>>, vector<8x8x128xf32>,
    %cst_15 = arith.constant 0.000000e+00 : bf16
    %22 = vector.broadcast %cst_15 : bf16 to vector<8x32xbf16>
    %cst_16 = arith.constant 0.000000e+00 : f32
    %23 = vector.broadcast %cst_16 : f32 to vector<8x32xf32>
    %c0_17 = arith.constant 0 : index
    %c0_18 = arith.constant 0 : index
    %c0_19 = arith.constant 0 : index
    %24 = vector.load %arg14[%c0_17, %c0_18, %c0_19] : memref<8x8x128xf32, #tpu.memory_space<vmem>>, vector<8x1x128xf32>
    %25 = vector.shape_cast %24 : vector<8x1x128xf32> to vector<8x128xf32>
    %cst_20 = arith.constant dense<0.000000e+00> : vector<8x128xf32>
    %26 = tpu.matmul %22, %3, %cst_20 {dimension_numbers = #tpu.dot_dimension_numbers<[1], [0], [0], [1], [0, 0, 1, 1], [], []>} : vector<8x32xbf16>, vector<32x128xbf16>, vector<8x128xf32> -> vector<8x128xf32>
    %27 = arith.addf %25, %26 : vector<8x128xf32>
    %28 = math.tanh %27 : vector<8x128xf32>
    %cst_21 = arith.constant 5.000000e-01 : f32
    %29 = vector.broadcast %cst_21 : f32 to vector<8x128xf32>
    %30 = arith.mulf %29, %28 : vector<8x128xf32>
    %cst_22 = arith.constant 5.000000e-01 : f32
    %31 = vector.broadcast %cst_22 : f32 to vector<8x128xf32>
    %32 = arith.addf %30, %31 : vector<8x128xf32>
    %33 = arith.select %13, %28, %32 : vector<8x128xi1>, vector<8x128xf32>
    %34 = vector.extract_strided_slice %33 {offsets = [0, 0], sizes = [8, 32], strides = [1, 1]} : vector<8x128xf32> to vector<8x32xf32>
    %35 = vector.extract_strided_slice %33 {offsets = [0, 32], sizes = [8, 32], strides = [1, 1]} : vector<8x128xf32> to vector<8x32xf32>
    %36 = vector.extract_strided_slice %33 {offsets = [0, 64], sizes = [8, 32], strides = [1, 1]} : vector<8x128xf32> to vector<8x32xf32>
    %37 = vector.extract_strided_slice %33 {offsets = [0, 96], sizes = [8, 32], strides = [1, 1]} : vector<8x128xf32> to vector<8x32xf32>
    %38 = arith.mulf %35, %23 : vector<8x32xf32>
    %39 = arith.mulf %34, %36 : vector<8x32xf32>
    %40 = arith.addf %38, %39 : vector<8x32xf32>
    %41 = math.tanh %40 : vector<8x32xf32>
    %42 = arith.mulf %37, %41 : vector<8x32xf32>
    %43 = arith.truncf %42 : vector<8x32xf32> to vector<8x32xbf16>
    %c0_23 = arith.constant 0 : index
    %c1 = arith.constant 1 : index
    %c0_24 = arith.constant 0 : index
    %44 = vector.load %arg14[%c0_23, %c1, %c0_24] : memref<8x8x128xf32, #tpu.memory_space<vmem>>, vector<8x1x128xf32>
    %45 = vector.shape_cast %44 : vector<8x1x128xf32> to vector<8x128xf32>
    %cst_25 = arith.constant dense<0.000000e+00> : vector<8x128xf32>
    %46 = tpu.matmul %43, %3, %cst_25 {dimension_numbers = #tpu.dot_dimension_numbers<[1], [0], [0], [1], [0, 0, 1, 1], [], []>} : vector<8x32xbf16>, vector<32x128xbf16>, vector<8x128xf32> -> vector<8x128xf32>
    %47 = arith.addf %45, %46 : vector<8x128xf32>
    %48 = math.tanh %47 : vector<8x128xf32>
    %cst_26 = arith.constant 5.000000e-01 : f32
    %49 = vector.broadcast %cst_26 : f32 to vector<8x128xf32>
    %50 = arith.mulf %49, %48 : vector<8x128xf32>
    %cst_27 = arith.constant 5.000000e-01 : f32
    %51 = vector.broadcast %cst_27 : f32 to vector<8x128xf32>
    %52 = arith.addf %50, %51 : vector<8x128xf32>
    %53 = arith.select %13, %48, %52 : vector<8x128xi1>, vector<8x128xf32>
    %54 = vector.extract_strided_slice %53 {offsets = [0, 0], sizes = [8, 32], strides = [1, 1]} : vector<8x128xf32> to vector<8x32xf32>
    %55 = vector.extract_strided_slice %53 {offsets = [0, 32], sizes = [8, 32], strides = [1, 1]} : vector<8x128xf32> to vector<8x32xf32>
    %56 = vector.extract_strided_slice %53 {offsets = [0, 64], sizes = [8, 32], strides = [1, 1]} : vector<8x128xf32> to vector<8x32xf32>
    %57 = vector.extract_strided_slice %53 {offsets = [0, 96], sizes = [8, 32], strides = [1, 1]} : vector<8x128xf32> to vector<8x32xf32>
    %58 = arith.mulf %55, %40 : vector<8x32xf32>
    %59 = arith.mulf %54, %56 : vector<8x32xf32>
    %60 = arith.addf %58, %59 : vector<8x32xf32>
    %61 = math.tanh %60 : vector<8x32xf32>
    %62 = arith.mulf %57, %61 : vector<8x32xf32>
    %63 = arith.truncf %62 : vector<8x32xf32> to vector<8x32xbf16>
    %c0_28 = arith.constant 0 : index
    %c2 = arith.constant 2 : index
    %c0_29 = arith.constant 0 : index
    %64 = vector.load %arg14[%c0_28, %c2, %c0_29] : memref<8x8x128xf32, #tpu.memory_space<vmem>>, vector<8x1x128xf32>
    %65 = vector.shape_cast %64 : vector<8x1x128xf32> to vector<8x128xf32>
    %cst_30 = arith.constant dense<0.000000e+00> : vector<8x128xf32>
    %66 = tpu.matmul %63, %3, %cst_30 {dimension_numbers = #tpu.dot_dimension_numbers<[1], [0], [0], [1], [0, 0, 1, 1], [], []>} : vector<8x32xbf16>, vector<32x128xbf16>, vector<8x128xf32> -> vector<8x128xf32>
    %67 = arith.addf %65, %66 : vector<8x128xf32>
    %68 = math.tanh %67 : vector<8x128xf32>
    %cst_31 = arith.constant 5.000000e-01 : f32
    %69 = vector.broadcast %cst_31 : f32 to vector<8x128xf32>
    %70 = arith.mulf %69, %68 : vector<8x128xf32>
    %cst_32 = arith.constant 5.000000e-01 : f32
    %71 = vector.broadcast %cst_32 : f32 to vector<8x128xf32>
    %72 = arith.addf %70, %71 : vector<8x128xf32>
    %73 = arith.select %13, %68, %72 : vector<8x128xi1>, vector<8x128xf32>
    %74 = vector.extract_strided_slice %73 {offsets = [0, 0], sizes = [8, 32], strides = [1, 1]} : vector<8x128xf32> to vector<8x32xf32>
    %75 = vector.extract_strided_slice %73 {offsets = [0, 32], sizes = [8, 32], strides = [1, 1]} : vector<8x128xf32> to vector<8x32xf32>
    %76 = vector.extract_strided_slice %73 {offsets = [0, 64], sizes = [8, 32], strides = [1, 1]} : vector<8x128xf32> to vector<8x32xf32>
    %77 = vector.extract_strided_slice %73 {offsets = [0, 96], sizes = [8, 32], strides = [1, 1]} : vector<8x128xf32> to vector<8x32xf32>
    %78 = arith.mulf %75, %60 : vector<8x32xf32>
    %79 = arith.mulf %74, %76 : vector<8x32xf32>
    %80 = arith.addf %78, %79 : vector<8x32xf32>
    %81 = math.tanh %80 : vector<8x32xf32>
    %82 = arith.mulf %77, %81 : vector<8x32xf32>
    %83 = arith.truncf %82 : vector<8x32xf32> to vector<8x32xbf16>
    %c0_33 = arith.constant 0 : index
    %c3 = arith.constant 3 : index
    %c0_34 = arith.constant 0 : index
    %84 = vector.load %arg14[%c0_33, %c3, %c0_34] : memref<8x8x128xf32, #tpu.memory_space<vmem>>, vector<8x1x128xf32>
    %85 = vector.shape_cast %84 : vector<8x1x128xf32> to vector<8x128xf32>
    %cst_35 = arith.constant dense<0.000000e+00> : vector<8x128xf32>
    %86 = tpu.matmul %83, %3, %cst_35 {dimension_numbers = #tpu.dot_dimension_numbers<[1], [0], [0], [1], [0, 0, 1, 1], [], []>} : vector<8x32xbf16>, vector<32x128xbf16>, vector<8x128xf32> -> vector<8x128xf32>
    %87 = arith.addf %85, %86 : vector<8x128xf32>
    %88 = math.tanh %87 : vector<8x128xf32>
    %cst_36 = arith.constant 5.000000e-01 : f32
    %89 = vector.broadcast %cst_36 : f32 to vector<8x128xf32>
    %90 = arith.mulf %89, %88 : vector<8x128xf32>
    %cst_37 = arith.constant 5.000000e-01 : f32
    %91 = vector.broadcast %cst_37 : f32 to vector<8x128xf32>
    %92 = arith.addf %90, %91 : vector<8x128xf32>
    %93 = arith.select %13, %88, %92 : vector<8x128xi1>, vector<8x128xf32>
    %94 = vector.extract_strided_slice %93 {offsets = [0, 0], sizes = [8, 32], strides = [1, 1]} : vector<8x128xf32> to vector<8x32xf32>
    %95 = vector.extract_strided_slice %93 {offsets = [0, 32], sizes = [8, 32], strides = [1, 1]} : vector<8x128xf32> to vector<8x32xf32>
    %96 = vector.extract_strided_slice %93 {offsets = [0, 64], sizes = [8, 32], strides = [1, 1]} : vector<8x128xf32> to vector<8x32xf32>
    %97 = vector.extract_strided_slice %93 {offsets = [0, 96], sizes = [8, 32], strides = [1, 1]} : vector<8x128xf32> to vector<8x32xf32>
    %98 = arith.mulf %95, %80 : vector<8x32xf32>
    %99 = arith.mulf %94, %96 : vector<8x32xf32>
    %100 = arith.addf %98, %99 : vector<8x32xf32>
    %101 = math.tanh %100 : vector<8x32xf32>
    %102 = arith.mulf %97, %101 : vector<8x32xf32>
    %103 = arith.truncf %102 : vector<8x32xf32> to vector<8x32xbf16>
    %c0_38 = arith.constant 0 : index
    %c4 = arith.constant 4 : index
    %c0_39 = arith.constant 0 : index
    %104 = vector.load %arg14[%c0_38, %c4, %c0_39] : memref<8x8x128xf32, #tpu.memory_space<vmem>>, vector<8x1x128xf32>
    %105 = vector.shape_cast %104 : vector<8x1x128xf32> to vector<8x128xf32>
    %cst_40 = arith.constant dense<0.000000e+00> : vector<8x128xf32>
    %106 = tpu.matmul %103, %3, %cst_40 {dimension_numbers = #tpu.dot_dimension_numbers<[1], [0], [0], [1], [0, 0, 1, 1], [], []>} : vector<8x32xbf16>, vector<32x128xbf16>, vector<8x128xf32> -> vector<8x128xf32>
    %107 = arith.addf %105, %106 : vector<8x128xf32>
    %108 = math.tanh %107 : vector<8x128xf32>
    %cst_41 = arith.constant 5.000000e-01 : f32
    %109 = vector.broadcast %cst_41 : f32 to vector<8x128xf32>
    %110 = arith.mulf %109, %108 : vector<8x128xf32>
    %cst_42 = arith.constant 5.000000e-01 : f32
    %111 = vector.broadcast %cst_42 : f32 to vector<8x128xf32>
    %112 = arith.addf %110, %111 : vector<8x128xf32>
    %113 = arith.select %13, %108, %112 : vector<8x128xi1>, vector<8x128xf32>
    %114 = vector.extract_strided_slice %113 {offsets = [0, 0], sizes = [8, 32], strides = [1, 1]} : vector<8x128xf32> to vector<8x32xf32>
    %115 = vector.extract_strided_slice %113 {offsets = [0, 32], sizes = [8, 32], strides = [1, 1]} : vector<8x128xf32> to vector<8x32xf32>
    %116 = vector.extract_strided_slice %113 {offsets = [0, 64], sizes = [8, 32], strides = [1, 1]} : vector<8x128xf32> to vector<8x32xf32>
    %117 = vector.extract_strided_slice %113 {offsets = [0, 96], sizes = [8, 32], strides = [1, 1]} : vector<8x128xf32> to vector<8x32xf32>
    %118 = arith.mulf %115, %100 : vector<8x32xf32>
    %119 = arith.mulf %114, %116 : vector<8x32xf32>
    %120 = arith.addf %118, %119 : vector<8x32xf32>
    %121 = math.tanh %120 : vector<8x32xf32>
    %122 = arith.mulf %117, %121 : vector<8x32xf32>
    %123 = arith.truncf %122 : vector<8x32xf32> to vector<8x32xbf16>
    %c0_43 = arith.constant 0 : index
    %c5 = arith.constant 5 : index
    %c0_44 = arith.constant 0 : index
    %124 = vector.load %arg14[%c0_43, %c5, %c0_44] : memref<8x8x128xf32, #tpu.memory_space<vmem>>, vector<8x1x128xf32>
    %125 = vector.shape_cast %124 : vector<8x1x128xf32> to vector<8x128xf32>
    %cst_45 = arith.constant dense<0.000000e+00> : vector<8x128xf32>
    %126 = tpu.matmul %123, %3, %cst_45 {dimension_numbers = #tpu.dot_dimension_numbers<[1], [0], [0], [1], [0, 0, 1, 1], [], []>} : vector<8x32xbf16>, vector<32x128xbf16>, vector<8x128xf32> -> vector<8x128xf32>
    %127 = arith.addf %125, %126 : vector<8x128xf32>
    %128 = math.tanh %127 : vector<8x128xf32>
    %cst_46 = arith.constant 5.000000e-01 : f32
    %129 = vector.broadcast %cst_46 : f32 to vector<8x128xf32>
    %130 = arith.mulf %129, %128 : vector<8x128xf32>
    %cst_47 = arith.constant 5.000000e-01 : f32
    %131 = vector.broadcast %cst_47 : f32 to vector<8x128xf32>
    %132 = arith.addf %130, %131 : vector<8x128xf32>
    %133 = arith.select %13, %128, %132 : vector<8x128xi1>, vector<8x128xf32>
    %134 = vector.extract_strided_slice %133 {offsets = [0, 0], sizes = [8, 32], strides = [1, 1]} : vector<8x128xf32> to vector<8x32xf32>
    %135 = vector.extract_strided_slice %133 {offsets = [0, 32], sizes = [8, 32], strides = [1, 1]} : vector<8x128xf32> to vector<8x32xf32>
    %136 = vector.extract_strided_slice %133 {offsets = [0, 64], sizes = [8, 32], strides = [1, 1]} : vector<8x128xf32> to vector<8x32xf32>
    %137 = vector.extract_strided_slice %133 {offsets = [0, 96], sizes = [8, 32], strides = [1, 1]} : vector<8x128xf32> to vector<8x32xf32>
    %138 = arith.mulf %135, %120 : vector<8x32xf32>
    %139 = arith.mulf %134, %136 : vector<8x32xf32>
    %140 = arith.addf %138, %139 : vector<8x32xf32>
    %141 = math.tanh %140 : vector<8x32xf32>
    %142 = arith.mulf %137, %141 : vector<8x32xf32>
    %143 = arith.truncf %142 : vector<8x32xf32> to vector<8x32xbf16>
    %c0_48 = arith.constant 0 : index
    %c6 = arith.constant 6 : index
    %c0_49 = arith.constant 0 : index
    %144 = vector.load %arg14[%c0_48, %c6, %c0_49] : memref<8x8x128xf32, #tpu.memory_space<vmem>>, vector<8x1x128xf32>
    %145 = vector.shape_cast %144 : vector<8x1x128xf32> to vector<8x128xf32>
    %cst_50 = arith.constant dense<0.000000e+00> : vector<8x128xf32>
    %146 = tpu.matmul %143, %3, %cst_50 {dimension_numbers = #tpu.dot_dimension_numbers<[1], [0], [0], [1], [0, 0, 1, 1], [], []>} : vector<8x32xbf16>, vector<32x128xbf16>, vector<8x128xf32> -> vector<8x128xf32>
    %147 = arith.addf %145, %146 : vector<8x128xf32>
    %148 = math.tanh %147 : vector<8x128xf32>
    %cst_51 = arith.constant 5.000000e-01 : f32
    %149 = vector.broadcast %cst_51 : f32 to vector<8x128xf32>
    %150 = arith.mulf %149, %148 : vector<8x128xf32>
    %cst_52 = arith.constant 5.000000e-01 : f32
    %151 = vector.broadcast %cst_52 : f32 to vector<8x128xf32>
    %152 = arith.addf %150, %151 : vector<8x128xf32>
    %153 = arith.select %13, %148, %152 : vector<8x128xi1>, vector<8x128xf32>
    %154 = vector.extract_strided_slice %153 {offsets = [0, 0], sizes = [8, 32], strides = [1, 1]} : vector<8x128xf32> to vector<8x32xf32>
    %155 = vector.extract_strided_slice %153 {offsets = [0, 32], sizes = [8, 32], strides = [1, 1]} : vector<8x128xf32> to vector<8x32xf32>
    %156 = vector.extract_strided_slice %153 {offsets = [0, 64], sizes = [8, 32], strides = [1, 1]} : vector<8x128xf32> to vector<8x32xf32>
    %157 = vector.extract_strided_slice %153 {offsets = [0, 96], sizes = [8, 32], strides = [1, 1]} : vector<8x128xf32> to vector<8x32xf32>
    %158 = arith.mulf %155, %140 : vector<8x32xf32>
    %159 = arith.mulf %154, %156 : vector<8x32xf32>
    %160 = arith.addf %158, %159 : vector<8x32xf32>
    %161 = math.tanh %160 : vector<8x32xf32>
    %162 = arith.mulf %157, %161 : vector<8x32xf32>
    %163 = arith.truncf %162 : vector<8x32xf32> to vector<8x32xbf16>
    %c0_53 = arith.constant 0 : index
    %c7 = arith.constant 7 : index
    %c0_54 = arith.constant 0 : index
    %164 = vector.load %arg14[%c0_53, %c7, %c0_54] : memref<8x8x128xf32, #tpu.memory_space<vmem>>, vector<8x1x128xf32>
    %165 = vector.shape_cast %164 : vector<8x1x128xf32> to vector<8x128xf32>
    %cst_55 = arith.constant dense<0.000000e+00> : vector<8x128xf32>
    %166 = tpu.matmul %163, %3, %cst_55 {dimension_numbers = #tpu.dot_dimension_numbers<[1], [0], [0], [1], [0, 0, 1, 1], [], []>} : vector<8x32xbf16>, vector<32x128xbf16>, vector<8x128xf32> -> vector<8x128xf32>
    %167 = arith.addf %165, %166 : vector<8x128xf32>
    %168 = math.tanh %167 : vector<8x128xf32>
    %cst_56 = arith.constant 5.000000e-01 : f32
    %169 = vector.broadcast %cst_56 : f32 to vector<8x128xf32>
    %170 = arith.mulf %169, %168 : vector<8x128xf32>
    %cst_57 = arith.constant 5.000000e-01 : f32
    %171 = vector.broadcast %cst_57 : f32 to vector<8x128xf32>
    %172 = arith.addf %170, %171 : vector<8x128xf32>
    %173 = arith.select %13, %168, %172 : vector<8x128xi1>, vector<8x128xf32>
    %174 = vector.extract_strided_slice %173 {offsets = [0, 0], sizes = [8, 32], strides = [1, 1]} : vector<8x128xf32> to vector<8x32xf32>
    %175 = vector.extract_strided_slice %173 {offsets = [0, 32], sizes = [8, 32], strides = [1, 1]} : vector<8x128xf32> to vector<8x32xf32>
    %176 = vector.extract_strided_slice %173 {offsets = [0, 64], sizes = [8, 32], strides = [1, 1]} : vector<8x128xf32> to vector<8x32xf32>
    %177 = vector.extract_strided_slice %173 {offsets = [0, 96], sizes = [8, 32], strides = [1, 1]} : vector<8x128xf32> to vector<8x32xf32>
    %178 = arith.mulf %175, %160 : vector<8x32xf32>
    %179 = arith.mulf %174, %176 : vector<8x32xf32>
    %180 = arith.addf %178, %179 : vector<8x32xf32>
    %181 = math.tanh %180 : vector<8x32xf32>
    %182 = arith.mulf %177, %181 : vector<8x32xf32>
    %183 = arith.truncf %182 : vector<8x32xf32> to vector<8x32xbf16>
    %cst_58 = arith.constant dense<0.000000e+00> : vector<8x128xf32>
    %184 = tpu.matmul %183, %5, %cst_58 {dimension_numbers = #tpu.dot_dimension_numbers<[1], [0], [0], [1], [0, 0, 1, 1], [], []>} : vector<8x32xbf16>, vector<32x128xbf16>, vector<8x128xf32> -> vector<8x128xf32>
    %c0_59 = arith.constant 0 : index
    %c0_60 = arith.constant 0 : index
    %185 = vector.load %arg7[%c0_59, %c0_60] : memref<1x128xf32, #tpu.memory_space<vmem>>, vector<1x128xf32>
    %186 = vector.broadcast %185 : vector<1x128xf32> to vector<8x128xf32>
    %187 = arith.addf %184, %186 : vector<8x128xf32>
    %cst_61 = arith.constant 0.000000e+00 : bf16
    %188 = vector.broadcast %cst_61 : bf16 to vector<8x32xbf16>
    %cst_62 = arith.constant 0.000000e+00 : f32
    %189 = vector.broadcast %cst_62 : f32 to vector<8x32xf32>
    %cst_63 = arith.constant dense<0.000000e+00> : vector<8x128xf32>
    %190 = tpu.matmul %188, %7, %cst_63 {dimension_numbers = #tpu.dot_dimension_numbers<[1], [0], [0], [1], [0, 0, 1, 1], [], []>} : vector<8x32xbf16>, vector<32x128xbf16>, vector<8x128xf32> -> vector<8x128xf32>
    %191 = arith.addf %187, %190 : vector<8x128xf32>
    %192 = math.tanh %191 : vector<8x128xf32>
    %cst_64 = arith.constant 5.000000e-01 : f32
    %193 = vector.broadcast %cst_64 : f32 to vector<8x128xf32>
    %194 = arith.mulf %193, %192 : vector<8x128xf32>
    %cst_65 = arith.constant 5.000000e-01 : f32
    %195 = vector.broadcast %cst_65 : f32 to vector<8x128xf32>
    %196 = arith.addf %194, %195 : vector<8x128xf32>
    %197 = arith.select %13, %192, %196 : vector<8x128xi1>, vector<8x128xf32>
    %198 = vector.extract_strided_slice %197 {offsets = [0, 0], sizes = [8, 32], strides = [1, 1]} : vector<8x128xf32> to vector<8x32xf32>
    %199 = vector.extract_strided_slice %197 {offsets = [0, 32], sizes = [8, 32], strides = [1, 1]} : vector<8x128xf32> to vector<8x32xf32>
    %200 = vector.extract_strided_slice %197 {offsets = [0, 64], sizes = [8, 32], strides = [1, 1]} : vector<8x128xf32> to vector<8x32xf32>
    %201 = vector.extract_strided_slice %197 {offsets = [0, 96], sizes = [8, 32], strides = [1, 1]} : vector<8x128xf32> to vector<8x32xf32>
    %202 = arith.mulf %199, %189 : vector<8x32xf32>
    %203 = arith.mulf %198, %200 : vector<8x32xf32>
    %204 = arith.addf %202, %203 : vector<8x32xf32>
    %205 = math.tanh %204 : vector<8x32xf32>
    %206 = arith.mulf %201, %205 : vector<8x32xf32>
    %207 = arith.truncf %206 : vector<8x32xf32> to vector<8x32xbf16>
    %c0_66 = arith.constant 0 : index
    %c0_67 = arith.constant 0 : index
    %c0_68 = arith.constant 0 : index
    %208 = vector.load %arg15[%c0_66, %c0_67, %c0_68] : memref<8x8x32xf32, #tpu.memory_space<vmem>>, vector<8x1x32xf32>
    %209 = vector.shape_cast %208 : vector<8x1x32xf32> to vector<8x32xf32>
    %210 = vector.shape_cast %206 : vector<8x32xf32> to vector<8x1x32xf32>
    tpu.vector_store %arg15[%c0_66, %c0_67, %c0_68], %210 {strides = array<i32>} : memref<8x8x32xf32, #tpu.memory_space<vmem>>, vector<8x1x32xf32>,
    %cst_69 = arith.constant dense<0.000000e+00> : vector<8x128xf32>
    %211 = tpu.matmul %207, %7, %cst_69 {dimension_numbers = #tpu.dot_dimension_numbers<[1], [0], [0], [1], [0, 0, 1, 1], [], []>} : vector<8x32xbf16>, vector<32x128xbf16>, vector<8x128xf32> -> vector<8x128xf32>
    %212 = arith.addf %187, %211 : vector<8x128xf32>
    %213 = math.tanh %212 : vector<8x128xf32>
    %cst_70 = arith.constant 5.000000e-01 : f32
    %214 = vector.broadcast %cst_70 : f32 to vector<8x128xf32>
    %215 = arith.mulf %214, %213 : vector<8x128xf32>
    %cst_71 = arith.constant 5.000000e-01 : f32
    %216 = vector.broadcast %cst_71 : f32 to vector<8x128xf32>
    %217 = arith.addf %215, %216 : vector<8x128xf32>
    %218 = arith.select %13, %213, %217 : vector<8x128xi1>, vector<8x128xf32>
    %219 = vector.extract_strided_slice %218 {offsets = [0, 0], sizes = [8, 32], strides = [1, 1]} : vector<8x128xf32> to vector<8x32xf32>
    %220 = vector.extract_strided_slice %218 {offsets = [0, 32], sizes = [8, 32], strides = [1, 1]} : vector<8x128xf32> to vector<8x32xf32>
    %221 = vector.extract_strided_slice %218 {offsets = [0, 64], sizes = [8, 32], strides = [1, 1]} : vector<8x128xf32> to vector<8x32xf32>
    %222 = vector.extract_strided_slice %218 {offsets = [0, 96], sizes = [8, 32], strides = [1, 1]} : vector<8x128xf32> to vector<8x32xf32>
    %223 = arith.mulf %220, %204 : vector<8x32xf32>
    %224 = arith.mulf %219, %221 : vector<8x32xf32>
    %225 = arith.addf %223, %224 : vector<8x32xf32>
    %226 = math.tanh %225 : vector<8x32xf32>
    %227 = arith.mulf %222, %226 : vector<8x32xf32>
    %228 = arith.truncf %227 : vector<8x32xf32> to vector<8x32xbf16>
    %c0_72 = arith.constant 0 : index
    %c1_73 = arith.constant 1 : index
    %c0_74 = arith.constant 0 : index
    %229 = vector.load %arg15[%c0_72, %c1_73, %c0_74] : memref<8x8x32xf32, #tpu.memory_space<vmem>>, vector<8x1x32xf32>
    %230 = vector.shape_cast %229 : vector<8x1x32xf32> to vector<8x32xf32>
    %231 = vector.shape_cast %227 : vector<8x32xf32> to vector<8x1x32xf32>
    tpu.vector_store %arg15[%c0_72, %c1_73, %c0_74], %231 {strides = array<i32>} : memref<8x8x32xf32, #tpu.memory_space<vmem>>, vector<8x1x32xf32>,
    %cst_75 = arith.constant dense<0.000000e+00> : vector<8x128xf32>
    %232 = tpu.matmul %228, %7, %cst_75 {dimension_numbers = #tpu.dot_dimension_numbers<[1], [0], [0], [1], [0, 0, 1, 1], [], []>} : vector<8x32xbf16>, vector<32x128xbf16>, vector<8x128xf32> -> vector<8x128xf32>
    %233 = arith.addf %187, %232 : vector<8x128xf32>
    %234 = math.tanh %233 : vector<8x128xf32>
    %cst_76 = arith.constant 5.000000e-01 : f32
    %235 = vector.broadcast %cst_76 : f32 to vector<8x128xf32>
    %236 = arith.mulf %235, %234 : vector<8x128xf32>
    %cst_77 = arith.constant 5.000000e-01 : f32
    %237 = vector.broadcast %cst_77 : f32 to vector<8x128xf32>
    %238 = arith.addf %236, %237 : vector<8x128xf32>
    %239 = arith.select %13, %234, %238 : vector<8x128xi1>, vector<8x128xf32>
    %240 = vector.extract_strided_slice %239 {offsets = [0, 0], sizes = [8, 32], strides = [1, 1]} : vector<8x128xf32> to vector<8x32xf32>
    %241 = vector.extract_strided_slice %239 {offsets = [0, 32], sizes = [8, 32], strides = [1, 1]} : vector<8x128xf32> to vector<8x32xf32>
    %242 = vector.extract_strided_slice %239 {offsets = [0, 64], sizes = [8, 32], strides = [1, 1]} : vector<8x128xf32> to vector<8x32xf32>
    %243 = vector.extract_strided_slice %239 {offsets = [0, 96], sizes = [8, 32], strides = [1, 1]} : vector<8x128xf32> to vector<8x32xf32>
    %244 = arith.mulf %241, %225 : vector<8x32xf32>
    %245 = arith.mulf %240, %242 : vector<8x32xf32>
    %246 = arith.addf %244, %245 : vector<8x32xf32>
    %247 = math.tanh %246 : vector<8x32xf32>
    %248 = arith.mulf %243, %247 : vector<8x32xf32>
    %249 = arith.truncf %248 : vector<8x32xf32> to vector<8x32xbf16>
    %c0_78 = arith.constant 0 : index
    %c2_79 = arith.constant 2 : index
    %c0_80 = arith.constant 0 : index
    %250 = vector.load %arg15[%c0_78, %c2_79, %c0_80] : memref<8x8x32xf32, #tpu.memory_space<vmem>>, vector<8x1x32xf32>
    %251 = vector.shape_cast %250 : vector<8x1x32xf32> to vector<8x32xf32>
    %252 = vector.shape_cast %248 : vector<8x32xf32> to vector<8x1x32xf32>
    tpu.vector_store %arg15[%c0_78, %c2_79, %c0_80], %252 {strides = array<i32>} : memref<8x8x32xf32, #tpu.memory_space<vmem>>, vector<8x1x32xf32>,
    %cst_81 = arith.constant dense<0.000000e+00> : vector<8x128xf32>
    %253 = tpu.matmul %249, %7, %cst_81 {dimension_numbers = #tpu.dot_dimension_numbers<[1], [0], [0], [1], [0, 0, 1, 1], [], []>} : vector<8x32xbf16>, vector<32x128xbf16>, vector<8x128xf32> -> vector<8x128xf32>
    %254 = arith.addf %187, %253 : vector<8x128xf32>
    %255 = math.tanh %254 : vector<8x128xf32>
    %cst_82 = arith.constant 5.000000e-01 : f32
    %256 = vector.broadcast %cst_82 : f32 to vector<8x128xf32>
    %257 = arith.mulf %256, %255 : vector<8x128xf32>
    %cst_83 = arith.constant 5.000000e-01 : f32
    %258 = vector.broadcast %cst_83 : f32 to vector<8x128xf32>
    %259 = arith.addf %257, %258 : vector<8x128xf32>
    %260 = arith.select %13, %255, %259 : vector<8x128xi1>, vector<8x128xf32>
    %261 = vector.extract_strided_slice %260 {offsets = [0, 0], sizes = [8, 32], strides = [1, 1]} : vector<8x128xf32> to vector<8x32xf32>
    %262 = vector.extract_strided_slice %260 {offsets = [0, 32], sizes = [8, 32], strides = [1, 1]} : vector<8x128xf32> to vector<8x32xf32>
    %263 = vector.extract_strided_slice %260 {offsets = [0, 64], sizes = [8, 32], strides = [1, 1]} : vector<8x128xf32> to vector<8x32xf32>
    %264 = vector.extract_strided_slice %260 {offsets = [0, 96], sizes = [8, 32], strides = [1, 1]} : vector<8x128xf32> to vector<8x32xf32>
    %265 = arith.mulf %262, %246 : vector<8x32xf32>
    %266 = arith.mulf %261, %263 : vector<8x32xf32>
    %267 = arith.addf %265, %266 : vector<8x32xf32>
    %268 = math.tanh %267 : vector<8x32xf32>
    %269 = arith.mulf %264, %268 : vector<8x32xf32>
    %270 = arith.truncf %269 : vector<8x32xf32> to vector<8x32xbf16>
    %c0_84 = arith.constant 0 : index
    %c3_85 = arith.constant 3 : index
    %c0_86 = arith.constant 0 : index
    %271 = vector.load %arg15[%c0_84, %c3_85, %c0_86] : memref<8x8x32xf32, #tpu.memory_space<vmem>>, vector<8x1x32xf32>
    %272 = vector.shape_cast %271 : vector<8x1x32xf32> to vector<8x32xf32>
    %273 = vector.shape_cast %269 : vector<8x32xf32> to vector<8x1x32xf32>
    tpu.vector_store %arg15[%c0_84, %c3_85, %c0_86], %273 {strides = array<i32>} : memref<8x8x32xf32, #tpu.memory_space<vmem>>, vector<8x1x32xf32>,
    %cst_87 = arith.constant dense<0.000000e+00> : vector<8x128xf32>
    %274 = tpu.matmul %270, %7, %cst_87 {dimension_numbers = #tpu.dot_dimension_numbers<[1], [0], [0], [1], [0, 0, 1, 1], [], []>} : vector<8x32xbf16>, vector<32x128xbf16>, vector<8x128xf32> -> vector<8x128xf32>
    %275 = arith.addf %187, %274 : vector<8x128xf32>
    %276 = math.tanh %275 : vector<8x128xf32>
    %cst_88 = arith.constant 5.000000e-01 : f32
    %277 = vector.broadcast %cst_88 : f32 to vector<8x128xf32>
    %278 = arith.mulf %277, %276 : vector<8x128xf32>
    %cst_89 = arith.constant 5.000000e-01 : f32
    %279 = vector.broadcast %cst_89 : f32 to vector<8x128xf32>
    %280 = arith.addf %278, %279 : vector<8x128xf32>
    %281 = arith.select %13, %276, %280 : vector<8x128xi1>, vector<8x128xf32>
    %282 = vector.extract_strided_slice %281 {offsets = [0, 0], sizes = [8, 32], strides = [1, 1]} : vector<8x128xf32> to vector<8x32xf32>
    %283 = vector.extract_strided_slice %281 {offsets = [0, 32], sizes = [8, 32], strides = [1, 1]} : vector<8x128xf32> to vector<8x32xf32>
    %284 = vector.extract_strided_slice %281 {offsets = [0, 64], sizes = [8, 32], strides = [1, 1]} : vector<8x128xf32> to vector<8x32xf32>
    %285 = vector.extract_strided_slice %281 {offsets = [0, 96], sizes = [8, 32], strides = [1, 1]} : vector<8x128xf32> to vector<8x32xf32>
    %286 = arith.mulf %283, %267 : vector<8x32xf32>
    %287 = arith.mulf %282, %284 : vector<8x32xf32>
    %288 = arith.addf %286, %287 : vector<8x32xf32>
    %289 = math.tanh %288 : vector<8x32xf32>
    %290 = arith.mulf %285, %289 : vector<8x32xf32>
    %291 = arith.truncf %290 : vector<8x32xf32> to vector<8x32xbf16>
    %c0_90 = arith.constant 0 : index
    %c4_91 = arith.constant 4 : index
    %c0_92 = arith.constant 0 : index
    %292 = vector.load %arg15[%c0_90, %c4_91, %c0_92] : memref<8x8x32xf32, #tpu.memory_space<vmem>>, vector<8x1x32xf32>
    %293 = vector.shape_cast %292 : vector<8x1x32xf32> to vector<8x32xf32>
    %294 = vector.shape_cast %290 : vector<8x32xf32> to vector<8x1x32xf32>
    tpu.vector_store %arg15[%c0_90, %c4_91, %c0_92], %294 {strides = array<i32>} : memref<8x8x32xf32, #tpu.memory_space<vmem>>, vector<8x1x32xf32>,
    %cst_93 = arith.constant dense<0.000000e+00> : vector<8x128xf32>
    %295 = tpu.matmul %291, %7, %cst_93 {dimension_numbers = #tpu.dot_dimension_numbers<[1], [0], [0], [1], [0, 0, 1, 1], [], []>} : vector<8x32xbf16>, vector<32x128xbf16>, vector<8x128xf32> -> vector<8x128xf32>
    %296 = arith.addf %187, %295 : vector<8x128xf32>
    %297 = math.tanh %296 : vector<8x128xf32>
    %cst_94 = arith.constant 5.000000e-01 : f32
    %298 = vector.broadcast %cst_94 : f32 to vector<8x128xf32>
    %299 = arith.mulf %298, %297 : vector<8x128xf32>
    %cst_95 = arith.constant 5.000000e-01 : f32
    %300 = vector.broadcast %cst_95 : f32 to vector<8x128xf32>
    %301 = arith.addf %299, %300 : vector<8x128xf32>
    %302 = arith.select %13, %297, %301 : vector<8x128xi1>, vector<8x128xf32>
    %303 = vector.extract_strided_slice %302 {offsets = [0, 0], sizes = [8, 32], strides = [1, 1]} : vector<8x128xf32> to vector<8x32xf32>
    %304 = vector.extract_strided_slice %302 {offsets = [0, 32], sizes = [8, 32], strides = [1, 1]} : vector<8x128xf32> to vector<8x32xf32>
    %305 = vector.extract_strided_slice %302 {offsets = [0, 64], sizes = [8, 32], strides = [1, 1]} : vector<8x128xf32> to vector<8x32xf32>
    %306 = vector.extract_strided_slice %302 {offsets = [0, 96], sizes = [8, 32], strides = [1, 1]} : vector<8x128xf32> to vector<8x32xf32>
    %307 = arith.mulf %304, %288 : vector<8x32xf32>
    %308 = arith.mulf %303, %305 : vector<8x32xf32>
    %309 = arith.addf %307, %308 : vector<8x32xf32>
    %310 = math.tanh %309 : vector<8x32xf32>
    %311 = arith.mulf %306, %310 : vector<8x32xf32>
    %312 = arith.truncf %311 : vector<8x32xf32> to vector<8x32xbf16>
    %c0_96 = arith.constant 0 : index
    %c5_97 = arith.constant 5 : index
    %c0_98 = arith.constant 0 : index
    %313 = vector.load %arg15[%c0_96, %c5_97, %c0_98] : memref<8x8x32xf32, #tpu.memory_space<vmem>>, vector<8x1x32xf32>
    %314 = vector.shape_cast %313 : vector<8x1x32xf32> to vector<8x32xf32>
    %315 = vector.shape_cast %311 : vector<8x32xf32> to vector<8x1x32xf32>
    tpu.vector_store %arg15[%c0_96, %c5_97, %c0_98], %315 {strides = array<i32>} : memref<8x8x32xf32, #tpu.memory_space<vmem>>, vector<8x1x32xf32>,
    %cst_99 = arith.constant dense<0.000000e+00> : vector<8x128xf32>
    %316 = tpu.matmul %312, %7, %cst_99 {dimension_numbers = #tpu.dot_dimension_numbers<[1], [0], [0], [1], [0, 0, 1, 1], [], []>} : vector<8x32xbf16>, vector<32x128xbf16>, vector<8x128xf32> -> vector<8x128xf32>
    %317 = arith.addf %187, %316 : vector<8x128xf32>
    %318 = math.tanh %317 : vector<8x128xf32>
    %cst_100 = arith.constant 5.000000e-01 : f32
    %319 = vector.broadcast %cst_100 : f32 to vector<8x128xf32>
    %320 = arith.mulf %319, %318 : vector<8x128xf32>
    %cst_101 = arith.constant 5.000000e-01 : f32
    %321 = vector.broadcast %cst_101 : f32 to vector<8x128xf32>
    %322 = arith.addf %320, %321 : vector<8x128xf32>
    %323 = arith.select %13, %318, %322 : vector<8x128xi1>, vector<8x128xf32>
    %324 = vector.extract_strided_slice %323 {offsets = [0, 0], sizes = [8, 32], strides = [1, 1]} : vector<8x128xf32> to vector<8x32xf32>
    %325 = vector.extract_strided_slice %323 {offsets = [0, 32], sizes = [8, 32], strides = [1, 1]} : vector<8x128xf32> to vector<8x32xf32>
    %326 = vector.extract_strided_slice %323 {offsets = [0, 64], sizes = [8, 32], strides = [1, 1]} : vector<8x128xf32> to vector<8x32xf32>
    %327 = vector.extract_strided_slice %323 {offsets = [0, 96], sizes = [8, 32], strides = [1, 1]} : vector<8x128xf32> to vector<8x32xf32>
    %328 = arith.mulf %325, %309 : vector<8x32xf32>
    %329 = arith.mulf %324, %326 : vector<8x32xf32>
    %330 = arith.addf %328, %329 : vector<8x32xf32>
    %331 = math.tanh %330 : vector<8x32xf32>
    %332 = arith.mulf %327, %331 : vector<8x32xf32>
    %333 = arith.truncf %332 : vector<8x32xf32> to vector<8x32xbf16>
    %c0_102 = arith.constant 0 : index
    %c6_103 = arith.constant 6 : index
    %c0_104 = arith.constant 0 : index
    %334 = vector.load %arg15[%c0_102, %c6_103, %c0_104] : memref<8x8x32xf32, #tpu.memory_space<vmem>>, vector<8x1x32xf32>
    %335 = vector.shape_cast %334 : vector<8x1x32xf32> to vector<8x32xf32>
    %336 = vector.shape_cast %332 : vector<8x32xf32> to vector<8x1x32xf32>
    tpu.vector_store %arg15[%c0_102, %c6_103, %c0_104], %336 {strides = array<i32>} : memref<8x8x32xf32, #tpu.memory_space<vmem>>, vector<8x1x32xf32>,
    %cst_105 = arith.constant dense<0.000000e+00> : vector<8x128xf32>
    %337 = tpu.matmul %333, %7, %cst_105 {dimension_numbers = #tpu.dot_dimension_numbers<[1], [0], [0], [1], [0, 0, 1, 1], [], []>} : vector<8x32xbf16>, vector<32x128xbf16>, vector<8x128xf32> -> vector<8x128xf32>
    %338 = arith.addf %187, %337 : vector<8x128xf32>
    %339 = math.tanh %338 : vector<8x128xf32>
    %cst_106 = arith.constant 5.000000e-01 : f32
    %340 = vector.broadcast %cst_106 : f32 to vector<8x128xf32>
    %341 = arith.mulf %340, %339 : vector<8x128xf32>
    %cst_107 = arith.constant 5.000000e-01 : f32
    %342 = vector.broadcast %cst_107 : f32 to vector<8x128xf32>
    %343 = arith.addf %341, %342 : vector<8x128xf32>
    %344 = arith.select %13, %339, %343 : vector<8x128xi1>, vector<8x128xf32>
    %345 = vector.extract_strided_slice %344 {offsets = [0, 0], sizes = [8, 32], strides = [1, 1]} : vector<8x128xf32> to vector<8x32xf32>
    %346 = vector.extract_strided_slice %344 {offsets = [0, 32], sizes = [8, 32], strides = [1, 1]} : vector<8x128xf32> to vector<8x32xf32>
    %347 = vector.extract_strided_slice %344 {offsets = [0, 64], sizes = [8, 32], strides = [1, 1]} : vector<8x128xf32> to vector<8x32xf32>
    %348 = vector.extract_strided_slice %344 {offsets = [0, 96], sizes = [8, 32], strides = [1, 1]} : vector<8x128xf32> to vector<8x32xf32>
    %349 = arith.mulf %346, %330 : vector<8x32xf32>
    %350 = arith.mulf %345, %347 : vector<8x32xf32>
    %351 = arith.addf %349, %350 : vector<8x32xf32>
    %352 = math.tanh %351 : vector<8x32xf32>
    %353 = arith.mulf %348, %352 : vector<8x32xf32>
    %354 = arith.truncf %353 : vector<8x32xf32> to vector<8x32xbf16>
    %c0_108 = arith.constant 0 : index
    %c7_109 = arith.constant 7 : index
    %c0_110 = arith.constant 0 : index
    %355 = vector.load %arg15[%c0_108, %c7_109, %c0_110] : memref<8x8x32xf32, #tpu.memory_space<vmem>>, vector<8x1x32xf32>
    %356 = vector.shape_cast %355 : vector<8x1x32xf32> to vector<8x32xf32>
    %357 = vector.shape_cast %353 : vector<8x32xf32> to vector<8x1x32xf32>
    tpu.vector_store %arg15[%c0_108, %c7_109, %c0_110], %357 {strides = array<i32>} : memref<8x8x32xf32, #tpu.memory_space<vmem>>, vector<8x1x32xf32>,
    %c0_111 = arith.constant 0 : index
    %c0_112 = arith.constant 0 : index
    %c0_113 = arith.constant 0 : index
    %358 = vector.load %arg15[%c0_111, %c0_112, %c0_113] : memref<8x8x32xf32, #tpu.memory_space<vmem>>, vector<8x8x32xf32>
    %359 = vector.shape_cast %358 : vector<8x8x32xf32> to vector<64x32xf32>
    %360 = arith.truncf %359 : vector<64x32xf32> to vector<64x32xbf16>
    %c0_114 = arith.constant 0 : index
    %c0_115 = arith.constant 0 : index
    %361 = vector.load %arg8[%c0_114, %c0_115] : memref<32x16xf32, #tpu.memory_space<vmem>>, vector<32x16xf32>
    %362 = arith.truncf %361 : vector<32x16xf32> to vector<32x16xbf16>
    %cst_116 = arith.constant dense<0.000000e+00> : vector<64x16xf32>
    %363 = tpu.matmul %360, %362, %cst_116 {dimension_numbers = #tpu.dot_dimension_numbers<[1], [0], [0], [1], [0, 0, 1, 1], [], []>} : vector<64x32xbf16>, vector<32x16xbf16>, vector<64x16xf32> -> vector<64x16xf32>
    %c0_117 = arith.constant 0 : index
    %c0_118 = arith.constant 0 : index
    %364 = vector.load %arg9[%c0_117, %c0_118] : memref<1x16xf32, #tpu.memory_space<vmem>>, vector<1x16xf32>
    %365 = vector.broadcast %364 : vector<1x16xf32> to vector<64x16xf32>
    %366 = arith.addf %363, %365 : vector<64x16xf32>
    %367 = arith.negf %366 : vector<64x16xf32>
    %368 = math.exp %367 : vector<64x16xf32>
    %cst_119 = arith.constant 1.000000e+00 : f32
    %369 = vector.broadcast %cst_119 : f32 to vector<64x16xf32>
    %370 = arith.addf %369, %368 : vector<64x16xf32>
    %371 = arith.divf %369, %370 : vector<64x16xf32>
    %372 = vector.shape_cast %371 : vector<64x16xf32> to vector<8x8x16xf32>
    %c0_120 = arith.constant 0 : index
    %c0_121 = arith.constant 0 : index
    %c0_122 = arith.constant 0 : index
    %373 = vector.load %arg12[%c0_120, %c0_121, %c0_122] : memref<8x8x16xf32, #tpu.memory_space<vmem>>, vector<8x8x16xf32>
    tpu.vector_store %arg12[%c0_120, %c0_121, %c0_122], %372 {strides = array<i32>} : memref<8x8x16xf32, #tpu.memory_space<vmem>>, vector<8x8x16xf32>,
    %c0_123 = arith.constant 0 : index
    %c0_124 = arith.constant 0 : index
    %374 = vector.load %arg10[%c0_123, %c0_124] : memref<32x4xf32, #tpu.memory_space<vmem>>, vector<32x4xf32>
    %375 = arith.truncf %374 : vector<32x4xf32> to vector<32x4xbf16>
    %cst_125 = arith.constant dense<0.000000e+00> : vector<8x4xf32>
    %376 = tpu.matmul %354, %375, %cst_125 {dimension_numbers = #tpu.dot_dimension_numbers<[1], [0], [0], [1], [0, 0, 1, 1], [], []>} : vector<8x32xbf16>, vector<32x4xbf16>, vector<8x4xf32> -> vector<8x4xf32>
    %c0_126 = arith.constant 0 : index
    %c0_127 = arith.constant 0 : index
    %377 = vector.load %arg11[%c0_126, %c0_127] : memref<1x4xf32, #tpu.memory_space<vmem>>, vector<1x4xf32>
    %378 = vector.broadcast %377 : vector<1x4xf32> to vector<8x4xf32>
    %379 = arith.addf %376, %378 : vector<8x4xf32>
    %c0_128 = arith.constant 0 : index
    %c0_129 = arith.constant 0 : index
    %380 = vector.load %arg13[%c0_128, %c0_129] : memref<8x4xf32, #tpu.memory_space<vmem>>, vector<8x4xf32>
    tpu.vector_store %arg13[%c0_128, %c0_129], %379 {strides = array<i32>} : memref<8x4xf32, #tpu.memory_space<vmem>>, vector<8x4xf32>,
    return
  }
  func.func @transform_0(%arg0: i32) -> (i32, i32, i32) {
    %c0_i32 = arith.constant 0 : i32
    %c0_i32_0 = arith.constant 0 : i32
    %c0_i32_1 = arith.constant 0 : i32
    return %arg0, %c0_i32, %c0_i32_0 : i32, i32, i32
  }
  func.func @transform_1(%arg0: i32) -> (i32, i32) {
    %c0_i32 = arith.constant 0 : i32
    %c0_i32_0 = arith.constant 0 : i32
    %c0_i32_1 = arith.constant 0 : i32
    return %c0_i32, %c0_i32_0 : i32, i32
  }
  func.func @transform_2(%arg0: i32) -> (i32, i32) {
    %c0_i32 = arith.constant 0 : i32
    %c0_i32_0 = arith.constant 0 : i32
    %c0_i32_1 = arith.constant 0 : i32
    return %c0_i32, %c0_i32_0 : i32, i32
  }
  func.func @transform_3(%arg0: i32) -> (i32, i32) {
    %c0_i32 = arith.constant 0 : i32
    %c0_i32_0 = arith.constant 0 : i32
    %c0_i32_1 = arith.constant 0 : i32
    return %c0_i32, %c0_i32_0 : i32, i32
  }
  func.func @transform_4(%arg0: i32) -> (i32, i32) {
    %c0_i32 = arith.constant 0 : i32
    %c0_i32_0 = arith.constant 0 : i32
    %c0_i32_1 = arith.constant 0 : i32
    return %c0_i32, %c0_i32_0 : i32, i32
  }
  func.func @transform_5(%arg0: i32) -> (i32, i32) {
    %c0_i32 = arith.constant 0 : i32
    %c0_i32_0 = arith.constant 0 : i32
    %c0_i32_1 = arith.constant 0 : i32
    return %c0_i32, %c0_i32_0 : i32, i32
  }
  func.func @transform_6(%arg0: i32) -> (i32, i32) {
    %c0_i32 = arith.constant 0 : i32
    %c0_i32_0 = arith.constant 0 : i32
    %c0_i32_1 = arith.constant 0 : i32
    return %c0_i32, %c0_i32_0 : i32, i32
  }
  func.func @transform_7(%arg0: i32) -> (i32, i32) {
    %c0_i32 = arith.constant 0 : i32
    %c0_i32_0 = arith.constant 0 : i32
    %c0_i32_1 = arith.constant 0 : i32
    return %c0_i32, %c0_i32_0 : i32, i32
  }
  func.func @transform_8(%arg0: i32) -> (i32, i32) {
    %c0_i32 = arith.constant 0 : i32
    %c0_i32_0 = arith.constant 0 : i32
    %c0_i32_1 = arith.constant 0 : i32
    return %c0_i32, %c0_i32_0 : i32, i32
  }
  func.func @transform_9(%arg0: i32) -> (i32, i32) {
    %c0_i32 = arith.constant 0 : i32
    %c0_i32_0 = arith.constant 0 : i32
    %c0_i32_1 = arith.constant 0 : i32
    return %c0_i32, %c0_i32_0 : i32, i32
  }
  func.func @transform_10(%arg0: i32) -> (i32, i32) {
    %c0_i32 = arith.constant 0 : i32
    %c0_i32_0 = arith.constant 0 : i32
    %c0_i32_1 = arith.constant 0 : i32
    return %c0_i32, %c0_i32_0 : i32, i32
  }
  func.func @transform_11(%arg0: i32) -> (i32, i32, i32) {
    %c0_i32 = arith.constant 0 : i32
    %c0_i32_0 = arith.constant 0 : i32
    %c0_i32_1 = arith.constant 0 : i32
    return %arg0, %c0_i32, %c0_i32_0 : i32, i32, i32
  }
  func.func @transform_12(%arg0: i32) -> (i32, i32) {
    %c0_i32 = arith.constant 0 : i32
    %c0_i32_0 = arith.constant 0 : i32
    return %arg0, %c0_i32 : i32, i32
  }
}

</mosaic_0001>

<bundles_post_ra>
// kernel: lstmae_clf_forward.1
= control target key start
LH: loop header
LB: loop body
LE: loop exit
PB: predicated region body
PF: predicated region fallthrough
CT: control target
= control target key end

     0   :  { %vm103_vm0 = vcmask 130048   ;;  %v3797_v4 = vmov 0.0   ;;  %vm3798_vm1 = vmmov 0   ;;  %s4722_s0 = inlined_call_operand.vmem [shape: bf16[8,8,16], index: 0, kind: input, shape index: {}]   ;;  %s4723_s1 = inlined_call_operand.vmem [shape: f32[16,128], index: 1, kind: input, shape index: {}]   ;;  %s4724_s2 = inlined_call_operand.vmem [shape: f32[32,128], index: 2, kind: input, shape index: {}]   ;;  %s4725_s3 = inlined_call_operand.vmem [shape: f32[1,128], index: 3, kind: input, shape index: {}]   ;;  %s4726_s4 = inlined_call_operand.vmem [shape: f32[32,128], index: 4, kind: input, shape index: {}]   ;;  %s4727_s5 = inlined_call_operand.vmem [shape: f32[32,128], index: 5, kind: input, shape index: {}]   ;;  %s4728_s6 = inlined_call_operand.vmem [shape: f32[1,128], index: 6, kind: input, shape index: {}]   ;;  %s4729_s7 = inlined_call_operand.vmem [shape: f32[32,16], index: 7, kind: input, shape index: {}]   ;;  %s4730_s8 = inlined_call_operand.vmem [shape: f32[1,16], index: 8, kind: input, shape index: {}]   ;;  %s4731_s9 = inlined_call_operand.vmem [shape: f32[32,4], index: 9, kind: input, shape index: {}]   ;;  %s4732_s10 = inlined_call_operand.vmem [shape: f32[1,4], index: 10, kind: input, shape index: {}]   ;;  %s4733_s11 = inlined_call_operand.hbm [shape: f32[8,8,16], index: 11, kind: output, shape index: {0}]   ;;  %s4734_s12 = inlined_call_operand.vmem [shape: f32[8,4], index: 12, kind: output, shape index: {1}]  }
   0x1   :  { %v42_v0 = vld [vmem:[%s4723_s1] sm:$0xff]  ;;  %v43_v1 = vld [vmem:[%s4723_s1 + $0x8] sm:$0xff]  ;;  %3396 = vmatprep.subr.bf16.mxu1 %v3797_v4  ;;  %3400 = vmatprep.mubr.msk.bf16.mxu1 %vm3798_vm1, %v3797_v4  ;;  %v47_v8 = vld [vmem:[%s4724_s2 + $0x10] sm:$0xff] }
   0x2   :  { %v44_v2 = vpack.c.bf16 %v43_v1, %v42_v0  ;;  %v3561_v3 = vld [vmem:[%s4722_s0] sm:$0xff]   ;;  %v3562_v5 = vld [vmem:[%s4722_s0 + $0x8] sm:$0xff]   ;;  %v48_v9 = vld [vmem:[%s4724_s2 + $0x18] sm:$0xff] }
   0x3   :  { %v45_v6 = vld [vmem:[%s4724_s2] sm:$0xff]  ;;  %3388 = vmatprep.mubr.msk.bf16.mxu0 %vm103_vm0, %v3561_v3  ;;  %v46_v7 = vld [vmem:[%s4724_s2 + $0x8] sm:$0xff]  ;;  %v3563_v11 = vld [vmem:[%s4722_s0 + $0x10] sm:$0xff]   ;;  %v3906_v12 = vpack.c.bf16 %v48_v9, %v47_v8 }
   0x4   :  { %3386 = vmatprep.subr.bf16.mxu0 %v44_v2  ;;  %v3899_v10 = vpack.c.bf16 %v46_v7, %v45_v6 }
   0x5   :  { %3387 = vmatpush3.bf16.msra.mxu0 %v44_v2 }
   0x6   :  { %3412 = vmatprep.subr.bf16.mxu0 %v3797_v4  ;;  %3397 = vmatpush3.bf16.msra.mxu1 %v3899_v10 }
   0x7   :  { %18 = vsyncpa [#allocation5], 0  ;;  %3398 = vmatprep.subr.bf16.mxu1 %v3797_v4  ;;  %v3564_v13 = vld [vmem:[%s4722_s0 + $0x18] sm:$0xff]   ;;  %v3799_v14 = vmov 0   ;;  %v3281_v15 = vld [vmem:[%s4725_s3] ss:$0 sm:$0xff]  ;;  %v63_v6 = vlaneseq }
   0x8   :  { %3389 = vmatmul.mubr.msk.bf16.vlgmr.msra.gmra.mrb[0].mxu0 %vm103_vm0, %v3562_v5  ;;  %vm298_vm2 = vcmask 1041409   ;;  %vm301_vm3 = vcmask 1042434   ;;  %vm304_vm4 = vcmask 1043459   ;;  %vm307_vm5 = vcmask 1044484   ;;  %s3800_s3 = smov 64   ;;  %s3801_s22 = smov 32  }
   0x9   :  { %3392 = vmatprep.mubr.msk.bf16.mxu0 %vm103_vm0, %v3563_v11  ;;  %3413 = vmatpush3.bf16.msra.mxu0 %v3899_v10  ;;  %vm310_vm6 = vcmask 1045509   ;;  %vm313_vm7 = vcmask 1046534   ;;  %vm316_vm10 = vcmask 1047559   ;;  %vm197_vm12 = vcmask 261120  }
   0xa   :  { %3414 = vmatprep.subr.bf16.mxu0 %v3797_v4  ;;  %3399 = vmatpush3.bf16.msra.mxu1 %v3906_v12  ;;  %vm1752_vm13 = vcmask 253952   ;;  %vm3259_vm14 = vcmask 31744  }
   0xb   :  { %3404 = vmatprep.subr.bf16.mxu1 %v3797_v4 }
   0xd   :  { %3415 = vmatpush3.bf16.msra.mxu0 %v3906_v12  ;;  %3401 = vmatmul.mubr.bf16.vlgmr.msra.gmra.mrb[0].mxu1 %v3799_v14 }
   0xe   :  { %3428 = vmatprep.subr.bf16.mxu0 %v3797_v4  ;;  %3405 = vmatpush3.bf16.msra.mxu1 %v3899_v10 }
   0xf   :  { %3408 = vmatprep.mubr.msk.bf16.mxu1 %vm3798_vm1, %v3797_v4  ;;  %3406 = vmatprep.subr.bf16.mxu1 %v3797_v4 }
  0x10   :  { %3393 = vmatmul.mubr.msk.bf16.gmra.mrb[4].mxu0 %vm103_vm0, %v3564_v13 }
  0x11   :  { %3416 = vmatprep.mubr.msk.bf16.mxu0 %vm3798_vm1, %v3797_v4 }
  0x12   :  { %3407 = vmatpush3.bf16.msra.mxu1 %v3906_v12 }
  0x13   :  { %3420 = vmatprep.subr.bf16.mxu1 %v3797_v4 }
  0xdb   :  { %v3390_v16 = vpop.f32.mrb[0].mxu0 }
  0xdc   :  { %v159_v17 = vadd.f32 %v3390_v16, %v3281_v15  ;;  %v150_v18 = vpop.f32.mrb[1].mxu0 }
  0xdd   :  { %v151_v19 = vadd.f32 %v3281_v15, %v150_v18  ;;  %v3391_v20 = vpop.f32.mrb[2].mxu0 }
  0xde   :  { %183 = vst [vmem:[#allocation2 + $0x10] sm:$0xff] %v159_v17  ;;  %v162_v21 = vadd.f32 %v3391_v20, %v3281_v15  ;;  %v153_v22 = vpop.f32.mrb[3].mxu0 }
  0xdf   :  { %181 = vst [vmem:[#allocation2] sm:$0xff] %v151_v19  ;;  %v154_v23 = vadd.f32 %v3281_v15, %v153_v22 }
  0xe0   :  { %184 = vst [vmem:[#allocation2 + $0x18] sm:$0xff] %v162_v21  ;;  %v235_v24 = vpop.f32.mrb[0].mxu1 }
  0xe1   :  { %182 = vst [vmem:[#allocation2 + $0x8] sm:$0xff] %v154_v23  ;;  %v243_v25 = vrot.slane %v235_v24, 2  ;;  %v3402_v26 = vpop.f32.mrb[1].mxu1  ;;  %v244_v30 = vrot.slane %v235_v24, 3  ;;  %v242_v34 = vrot.slane %v235_v24, 1  ;;  %v247_v47 = vrot.slane %v235_v24, 6 }
  0xe2   :  { %v238_v28 = vpop.f32.mrb[2].mxu1  ;;  %v245_v49 = vrot.slane %v235_v24, 4  ;;  %v248_v50 = vrot.slane %v235_v24, 7  ;;  %v246_v53 = vrot.slane %v235_v24, 5  ;;  %v64_v23 = vand.u32 127, %v63_v6 }
  0xe3   :  { %v3394_v27 = vpop.f32.mrb[4].mxu0  ;;  %v3403_v32 = vpop.f32.mrb[3].mxu1 }
  0xe4   :  { %v175_v29 = vadd.f32 %v3394_v27, %v3281_v15  ;;  %v166_v31 = vpop.f32.mrb[5].mxu0  ;;  %vm65_vm8 = vcmp.ge.s32.totalorder %v64_v23, 64  ;;  %vm66_vm9 = vcmp.lt.s32.totalorder %v64_v23, 96 }
  0xe5   :  { %v191_v33 = vld [vmem:[#allocation2 + $0x10] sm:$0x1]  ;;  %v167_v35 = vadd.f32 %v3281_v15, %v166_v31  ;;  %v3395_v36 = vpop.f32.mrb[6].mxu0  ;;  %vm3944_vm11 = vmand %vm65_vm8, %vm66_vm9 }
  0xe6   :  { %187 = vst [vmem:[#allocation2 + $0x30] sm:$0xff] %v175_v29  ;;  %v189_v37 = vld [vmem:[#allocation2] sm:$0x1]  ;;  %v259_v38 = vadd.f32 %v243_v25, %v191_v33  ;;  %v178_v39 = vadd.f32 %v3395_v36, %v3281_v15  ;;  %v169_v40 = vpop.f32.mrb[7].mxu0 }
  0xe7   :  { %v192_v41 = vld [vmem:[#allocation2 + $0x18] sm:$0x1]  ;;  %v257_v42 = vadd.f32 %v235_v24, %v189_v37  ;;  %185 = vst [vmem:[#allocation2 + $0x20] sm:$0xff] %v167_v35  ;;  %v170_v43 = vadd.f32 %v3281_v15, %v169_v40 }
  0xe8   :  { %v190_v44 = vld [vmem:[#allocation2 + $0x8] sm:$0x1]  ;;  %v260_v45 = vadd.f32 %v244_v30, %v192_v41  ;;  %3565 = vtanh.f32 %v259_v38  ;;  %188 = vst [vmem:[#allocation2 + $0x38] sm:$0xff] %v178_v39 }
  0xe9   :  { %v258_v46 = vadd.f32 %v242_v34, %v190_v44  ;;  %3567 = vtanh.f32 %v257_v42  ;;  %186 = vst [vmem:[#allocation2 + $0x28] sm:$0xff] %v170_v43 }
  0xea   :  { %3569 = vtanh.f32 %v260_v45 }
  0xeb   :  { %3571 = vtanh.f32 %v258_v46 }
  0xed   :  { %v195_v48 = vld [vmem:[#allocation2 + $0x30] sm:$0x1] }
  0xee   :  { %v263_v51 = vadd.f32 %v247_v47, %v195_v48  ;;  %v193_v52 = vld [vmem:[#allocation2 + $0x20] sm:$0x1] }
  0xef   :  { %v196_v54 = vld [vmem:[#allocation2 + $0x38] sm:$0x1]  ;;  %v261_v55 = vadd.f32 %v245_v49, %v193_v52 }
  0xf0   :  { %3573 = vtanh.f32 %v263_v51  ;;  %v194_v56 = vld [vmem:[#allocation2 + $0x28] sm:$0x1]  ;;  %v264_v57 = vadd.f32 %v248_v50, %v196_v54 }
  0xf1   :  { %v262_v58 = vadd.f32 %v246_v53, %v194_v56  ;;  %3575 = vtanh.f32 %v261_v55 }
  0xf2   :  { %v3566_v59 = vpop.eup %3565  ;;  %3577 = vtanh.f32 %v264_v57 }
  0xf3   :  { %v3568_v60 = vpop.eup %3567  ;;  %3579 = vtanh.f32 %v262_v58  ;;  %v275_v61 = vmul.f32 0.5, %v3566_v59  ;;  %v300_v9 = vrot.slane %v3566_v59, 6 }
  0xf4   :  { %v3570_v62 = vpop.eup %3569  ;;  %v273_v0 = vmul.f32 0.5, %v3568_v60 }
  0xf5   :  { %v3572_v63 = vpop.eup %3571  ;;  %v276_v3 = vmul.f32 0.5, %v3570_v62  ;;  %v283_v5 = vadd.f32 0.5, %v275_v61  ;;  %v303_v20 = vrot.slane %v3570_v62, 5 }
  0xf6   :  { %v274_v1 = vmul.f32 0.5, %v3572_v63  ;;  %v297_v2 = vrot.slane %v3572_v63, 7  ;;  %v281_v13 = vadd.f32 0.5, %v273_v0 }
  0xf7   :  { %v284_v19 = vadd.f32 0.5, %v276_v3  ;;  %v329_v21 = vrot.slane %v283_v5, 6  ;;  %v364_v3 = vld [vmem:[#allocation2 + $0x19] sm:$0x1] }
  0xf8   :  { %v282_v7 = vadd.f32 0.5, %v274_v1  ;;  %v299_v8 = vsel %vm298_vm2, %v297_v2, %v3568_v60  ;;  %v361_v1 = vld [vmem:[#allocation2 + $0x1] sm:$0x1]  ;;  %v363_v2 = vld [vmem:[#allocation2 + $0x11] sm:$0x1] }
  0xf9   :  { %v302_v15 = vsel %vm301_vm3, %v300_v9, %v299_v8  ;;  %v331_v36 = vrot.slane %v284_v19, 5 }
  0xfa   :  { %v3574_v11 = vpop.eup %3573  ;;  %v327_v16 = vrot.slane %v282_v7, 7  ;;  %v305_v29 = vsel %vm304_vm4, %v303_v20, %v302_v15  ;;  %v362_v15 = vld [vmem:[#allocation2 + $0x9] sm:$0x1]  ;;  %v365_v20 = vld [vmem:[#allocation2 + $0x21] sm:$0x1] }
  0xfb   :  { %v3576_v17 = vpop.eup %3575  ;;  %v279_v18 = vmul.f32 0.5, %v3574_v11  ;;  %v312_v41 = vrot.slane %v3574_v11, 2 }
  0xfc   :  { %v3578_v22 = vpop.eup %3577  ;;  %v277_v24 = vmul.f32 0.5, %v3576_v17  ;;  %v306_v25 = vrot.slane %v3576_v17, 4  ;;  %v328_v26 = vsel %vm298_vm2, %v327_v16, %v281_v13 }
  0xfd   :  { %v3580_v27 = vpop.eup %3579  ;;  %v280_v28 = vmul.f32 0.5, %v3578_v22  ;;  %v330_v30 = vsel %vm301_vm3, %v329_v21, %v328_v26  ;;  %v287_v35 = vadd.f32 0.5, %v279_v18  ;;  %v315_v48 = vrot.slane %v3578_v22, 1  ;;  %v366_v26 = vld [vmem:[#allocation2 + $0x29] sm:$0x1] }
  0xfe   :  { %v278_v31 = vmul.f32 0.5, %v3580_v27  ;;  %v285_v32 = vadd.f32 0.5, %v277_v24  ;;  %v308_v33 = vsel %vm307_vm5, %v306_v25, %v305_v29  ;;  %v309_v34 = vrot.slane %v3580_v27, 3 }
  0xff   :  { %v288_v38 = vadd.f32 0.5, %v280_v28  ;;  %v332_v42 = vsel %vm304_vm4, %v331_v36, %v330_v30  ;;  %v337_v46 = vrot.slane %v287_v35, 2  ;;  %v367_v28 = vld [vmem:[#allocation2 + $0x31] sm:$0x1] }
 0x100   :  { %v286_v37 = vadd.f32 0.5, %v278_v31  ;;  %v311_v39 = vsel %vm310_vm6, %v309_v34, %v308_v33  ;;  %v333_v40 = vrot.slane %v285_v32, 4  ;;  %v368_v31 = vld [vmem:[#allocation2 + $0x39] sm:$0x1] }
 0x101   :  { %v314_v45 = vsel %vm313_vm7, %v312_v41, %v311_v39  ;;  %v339_v50 = vrot.slane %v288_v38, 1 }
 0x102   :  { %v334_v43 = vsel %vm307_vm5, %v333_v40, %v332_v42  ;;  %v335_v44 = vrot.slane %v286_v37, 3  ;;  %v317_v52 = vsel %vm316_vm10, %v315_v48, %v314_v45 }
 0x104   :  { %v336_v49 = vsel %vm310_vm6, %v335_v44, %v334_v43 }
 0x105   :  { %v338_v51 = vsel %vm313_vm7, %v337_v46, %v336_v49 }
 0x106   :  { %v340_v53 = vsel %vm316_vm10, %v339_v50, %v338_v51 }
 0x107   :  { %v342_v54 = vsel %vm3944_vm11, %v317_v52, %v340_v53 }
 0x108   :  { %345 = vrot.lane.b32.xlu0 %v342_v54, %s3800_s3  ;;  %v343_v57 = vmul.f32 0.0, %v342_v54 }
 0x17a   :  { %v346_v55 = vpop.permute.xlu0 %345 }
 0x17b   :  { %v348_v56 = vmul.f32 %v346_v55, %v342_v54 }
 0x17d   :  { %350 = vrot.lane.b32.xlu0 %v348_v56, %s3801_s22 }
 0x1ef   :  { %v351_v58 = vpop.permute.xlu0 %350 }
 0x1f0   :  { %v3956_v59 = vadd.f32 %v351_v58, %v343_v57 }
 0x1f2   :  { %3581 = vtanh.f32 %v3956_v59 }
 0x1fc   :  { %v3582_v60 = vpop.eup %3581 }
 0x1fd   :  { %356 = vrot.lane.b32.xlu1 %v3582_v60, %s3800_s3 }
 0x26f   :  { %v357_v61 = vpop.permute.xlu1 %356 }
 0x270   :  { %v359_v62 = vmul.f32 %v357_v61, %v342_v54 }
 0x272   :  { %v360_v63 = vpack.c.bf16 %v359_v62, %v359_v62 }
 0x274   :  { %370 = vrot.lane.b32.xlu1 %v360_v63, %s3801_s22 }
 0x2e6   :  { %v371_v0 = vpop.permute.xlu1 %370 }
 0x2e7   :  { %3409 = vmatmul.mubr.msk.bf16.vlgmr.msra.gmra.mrb[4].mxu1 %vm197_vm12, %v371_v0 }
 0x2e8   :  { %3421 = vmatpush3.bf16.msra.mxu1 %v3899_v10  ;;  %3424 = vmatprep.mubr.msk.bf16.mxu1 %vm3798_vm1, %v3797_v4 }
 0x2e9   :  { %3422 = vmatprep.subr.bf16.mxu1 %v3797_v4 }
 0x2ec   :  { %3423 = vmatpush3.bf16.msra.mxu1 %v3906_v12 }
 0x2ed   :  { %3436 = vmatprep.subr.bf16.mxu1 %v3797_v4 }
 0x3ba   :  { %v409_v5 = vpop.f32.mrb[4].mxu1 }
 0x3bb   :  { %v416_v7 = vrot.slane %v409_v5, 1  ;;  %v417_v8 = vrot.slane %v409_v5, 2  ;;  %v418_v9 = vrot.slane %v409_v5, 3  ;;  %v419_v11 = vrot.slane %v409_v5, 4  ;;  %v3410_v13 = vpop.f32.mrb[5].mxu1 }
 0x3bc   :  { %v420_v16 = vrot.slane %v409_v5, 5  ;;  %v421_v17 = vrot.slane %v409_v5, 6  ;;  %v431_v18 = vadd.f32 %v409_v5, %v361_v1  ;;  %v412_v19 = vpop.f32.mrb[6].mxu1  ;;  %v422_v21 = vrot.slane %v409_v5, 7 }
 0x3bd   :  { %v432_v22 = vadd.f32 %v416_v7, %v362_v15  ;;  %v433_v23 = vadd.f32 %v417_v8, %v363_v2  ;;  %v434_v24 = vadd.f32 %v418_v9, %v364_v3  ;;  %v3411_v25 = vpop.f32.mrb[7].mxu1  ;;  %v435_v27 = vadd.f32 %v419_v11, %v365_v20 }
 0x3be   :  { %3583 = vtanh.f32 %v431_v18  ;;  %v436_v29 = vadd.f32 %v420_v16, %v366_v26  ;;  %v437_v30 = vadd.f32 %v421_v17, %v367_v28  ;;  %v438_v32 = vadd.f32 %v422_v21, %v368_v31 }
 0x3bf   :  { %3585 = vtanh.f32 %v432_v22 }
 0x3c0   :  { %3587 = vtanh.f32 %v433_v23 }
 0x3c1   :  { %3589 = vtanh.f32 %v434_v24 }
 0x3c2   :  { %3591 = vtanh.f32 %v435_v27 }
 0x3c3   :  { %3593 = vtanh.f32 %v436_v29 }
 0x3c4   :  { %3595 = vtanh.f32 %v437_v30 }
 0x3c5   :  { %3597 = vtanh.f32 %v438_v32 }
 0x3c8   :  { %v3584_v33 = vpop.eup %3583 }
 0x3c9   :  { %v3586_v34 = vpop.eup %3585  ;;  %v447_v42 = vmul.f32 0.5, %v3584_v33 }
 0x3ca   :  { %v3588_v35 = vpop.eup %3587  ;;  %v448_v36 = vmul.f32 0.5, %v3586_v34  ;;  %v471_v37 = vrot.slane %v3586_v34, 7 }
 0x3cb   :  { %v3590_v38 = vpop.eup %3589  ;;  %v449_v39 = vmul.f32 0.5, %v3588_v35  ;;  %v473_v40 = vrot.slane %v3588_v35, 6  ;;  %v455_v61 = vadd.f32 0.5, %v447_v42 }
 0x3cc   :  { %v3592_v41 = vpop.eup %3591  ;;  %v450_v43 = vmul.f32 0.5, %v3590_v38  ;;  %v472_v44 = vsel %vm298_vm2, %v471_v37, %v3584_v33  ;;  %v475_v45 = vrot.slane %v3590_v38, 5  ;;  %v456_v49 = vadd.f32 0.5, %v448_v36 }
 0x3cd   :  { %v3594_v46 = vpop.eup %3593  ;;  %v451_v48 = vmul.f32 0.5, %v3592_v41  ;;  %v457_v50 = vadd.f32 0.5, %v449_v39  ;;  %v474_v51 = vsel %vm301_vm3, %v473_v40, %v472_v44  ;;  %v477_v55 = vrot.slane %v3592_v41, 4  ;;  %v529_v39 = vld [vmem:[#allocation2 + $0xa] sm:$0x1] }
 0x3ce   :  { %v3596_v52 = vpop.eup %3595  ;;  %v452_v53 = vmul.f32 0.5, %v3594_v46  ;;  %v476_v54 = vsel %vm304_vm4, %v475_v45, %v474_v51  ;;  %v458_v58 = vadd.f32 0.5, %v450_v43  ;;  %v479_v1 = vrot.slane %v3594_v46, 3  ;;  %v530_v40 = vld [vmem:[#allocation2 + $0x12] sm:$0x1] }
 0x3cf   :  { %v3598_v56 = vpop.eup %3597  ;;  %v453_v57 = vmul.f32 0.5, %v3596_v52  ;;  %v459_v62 = vadd.f32 0.5, %v451_v48  ;;  %v478_v63 = vsel %vm307_vm5, %v477_v55, %v476_v54  ;;  %v494_v2 = vrot.slane %v456_v49, 7  ;;  %v531_v48 = vld [vmem:[#allocation2 + $0x1a] sm:$0x1] }
 0x3d0   :  { %v454_v60 = vmul.f32 0.5, %v3598_v56  ;;  %v460_v0 = vadd.f32 0.5, %v452_v53  ;;  %v496_v3 = vrot.slane %v457_v50, 6  ;;  %v480_v8 = vsel %vm310_vm6, %v479_v1, %v478_v63  ;;  %v532_v53 = vld [vmem:[#allocation2 + $0x22] sm:$0x1] }
 0x3d1   :  { %v461_v5 = vadd.f32 0.5, %v453_v57  ;;  %v495_v9 = vsel %vm298_vm2, %v494_v2, %v455_v61  ;;  %v498_v11 = vrot.slane %v458_v58, 5  ;;  %v481_v13 = vrot.slane %v3596_v52, 2  ;;  %v535_v1 = vld [vmem:[#allocation2 + $0x3a] sm:$0x1] }
 0x3d2   :  { %v462_v7 = vadd.f32 0.5, %v454_v60  ;;  %v497_v15 = vsel %vm301_vm3, %v496_v3, %v495_v9  ;;  %v500_v16 = vrot.slane %v459_v62, 4  ;;  %v502_v18 = vrot.slane %v460_v0, 3  ;;  %v533_v60 = vld [vmem:[#allocation2 + $0x2a] sm:$0x1] }
 0x3d3   :  { %v499_v17 = vsel %vm304_vm4, %v498_v11, %v497_v15  ;;  %v482_v19 = vsel %vm313_vm7, %v481_v13, %v480_v8  ;;  %v504_v21 = vrot.slane %v461_v5, 2  ;;  %v483_v22 = vrot.slane %v3598_v56, 1  ;;  %v534_v62 = vld [vmem:[#allocation2 + $0x32] sm:$0x1] }
 0x3d4   :  { %v501_v20 = vsel %vm307_vm5, %v500_v16, %v499_v17  ;;  %v506_v24 = vrot.slane %v462_v7, 1 }
 0x3d5   :  { %v503_v23 = vsel %vm310_vm6, %v502_v18, %v501_v20  ;;  %v484_v26 = vsel %vm316_vm10, %v483_v22, %v482_v19 }
 0x3d6   :  { %v505_v25 = vsel %vm313_vm7, %v504_v21, %v503_v23 }
 0x3d7   :  { %v507_v27 = vsel %vm316_vm10, %v506_v24, %v505_v25 }
 0x3d8   :  { %v509_v28 = vsel %vm3944_vm11, %v484_v26, %v507_v27 }
 0x3d9   :  { %512 = vrot.lane.b32.xlu0 %v509_v28, %s3800_s3  ;;  %v510_v31 = vmul.f32 %v509_v28, %v3956_v59  ;;  %v528_v59 = vld [vmem:[#allocation2 + $0x2] sm:$0x1] }
 0x44b   :  { %v513_v29 = vpop.permute.xlu0 %512 }
 0x44c   :  { %v515_v30 = vmul.f32 %v513_v29, %v509_v28 }
 0x44e   :  { %517 = vrot.lane.b32.xlu1 %v515_v30, %s3801_s22 }
 0x4c0   :  { %v518_v32 = vpop.permute.xlu1 %517 }
 0x4c1   :  { %v3987_v33 = vadd.f32 %v518_v32, %v510_v31 }
 0x4c3   :  { %3599 = vtanh.f32 %v3987_v33 }
 0x4cd   :  { %v3600_v34 = vpop.eup %3599 }
 0x4ce   :  { %523 = vrot.lane.b32.xlu0 %v3600_v34, %s3800_s3 }
 0x540   :  { %v524_v35 = vpop.permute.xlu0 %523 }
 0x541   :  { %v526_v36 = vmul.f32 %v524_v35, %v509_v28 }
 0x543   :  { %v527_v37 = vpack.c.bf16 %v526_v36, %v526_v36 }
 0x545   :  { %537 = vrot.lane.b32.xlu1 %v527_v37, %s3801_s22 }
 0x5b7   :  { %v538_v38 = vpop.permute.xlu1 %537 }
 0x5b8   :  { %3417 = vmatmul.mubr.msk.bf16.vlgmr.msra.gmra.mrb[8].mxu0 %vm197_vm12, %v538_v38 }
 0x5b9   :  { %3429 = vmatpush3.bf16.msra.mxu0 %v3899_v10  ;;  %3432 = vmatprep.mubr.msk.bf16.mxu0 %vm3798_vm1, %v3797_v4 }
 0x5ba   :  { %3430 = vmatprep.subr.bf16.mxu0 %v3797_v4 }
 0x5bd   :  { %3431 = vmatpush3.bf16.msra.mxu0 %v3906_v12 }
 0x5be   :  { %3444 = vmatprep.subr.bf16.mxu0 %v3797_v4 }
 0x68b   :  { %v576_v41 = vpop.f32.mrb[8].mxu0 }
 0x68c   :  { %v583_v42 = vrot.slane %v576_v41, 1  ;;  %v584_v43 = vrot.slane %v576_v41, 2  ;;  %v585_v44 = vrot.slane %v576_v41, 3  ;;  %v586_v45 = vrot.slane %v576_v41, 4  ;;  %v3418_v46 = vpop.f32.mrb[9].mxu0 }
 0x68d   :  { %v587_v49 = vrot.slane %v576_v41, 5  ;;  %v588_v50 = vrot.slane %v576_v41, 6  ;;  %v598_v51 = vadd.f32 %v576_v41, %v528_v59  ;;  %v579_v52 = vpop.f32.mrb[10].mxu0  ;;  %v589_v54 = vrot.slane %v576_v41, 7 }
 0x68e   :  { %v599_v55 = vadd.f32 %v583_v42, %v529_v39  ;;  %v600_v56 = vadd.f32 %v584_v43, %v530_v40  ;;  %v601_v57 = vadd.f32 %v585_v44, %v531_v48  ;;  %v3419_v58 = vpop.f32.mrb[11].mxu0  ;;  %v602_v61 = vadd.f32 %v586_v45, %v532_v53 }
 0x68f   :  { %3601 = vtanh.f32 %v598_v51  ;;  %v603_v63 = vadd.f32 %v587_v49, %v533_v60  ;;  %v604_v0 = vadd.f32 %v588_v50, %v534_v62  ;;  %v605_v2 = vadd.f32 %v589_v54, %v535_v1 }
 0x690   :  { %3603 = vtanh.f32 %v599_v55 }
 0x691   :  { %3605 = vtanh.f32 %v600_v56 }
 0x692   :  { %3607 = vtanh.f32 %v601_v57 }
 0x693   :  { %3609 = vtanh.f32 %v602_v61 }
 0x694   :  { %3611 = vtanh.f32 %v603_v63 }
 0x695   :  { %3613 = vtanh.f32 %v604_v0 }
 0x696   :  { %3615 = vtanh.f32 %v605_v2 }
 0x699   :  { %v3602_v3 = vpop.eup %3601 }
 0x69a   :  { %v3604_v5 = vpop.eup %3603  ;;  %v614_v17 = vmul.f32 0.5, %v3602_v3 }
 0x69b   :  { %v3606_v7 = vpop.eup %3605  ;;  %v615_v8 = vmul.f32 0.5, %v3604_v5  ;;  %v638_v9 = vrot.slane %v3604_v5, 7 }
 0x69c   :  { %v3608_v11 = vpop.eup %3607  ;;  %v616_v13 = vmul.f32 0.5, %v3606_v7  ;;  %v640_v15 = vrot.slane %v3606_v7, 6  ;;  %v622_v35 = vadd.f32 0.5, %v614_v17 }
 0x69d   :  { %v3610_v16 = vpop.eup %3609  ;;  %v617_v18 = vmul.f32 0.5, %v3608_v11  ;;  %v639_v19 = vsel %vm298_vm2, %v638_v9, %v3602_v3  ;;  %v642_v20 = vrot.slane %v3608_v11, 5  ;;  %v623_v23 = vadd.f32 0.5, %v615_v8 }
 0x69e   :  { %v3612_v21 = vpop.eup %3611  ;;  %v618_v22 = vmul.f32 0.5, %v3610_v16  ;;  %v624_v24 = vadd.f32 0.5, %v616_v13  ;;  %v641_v25 = vsel %vm301_vm3, %v640_v15, %v639_v19  ;;  %v644_v29 = vrot.slane %v3610_v16, 4  ;;  %v696_v13 = vld [vmem:[#allocation2 + $0xb] sm:$0x1] }
 0x69f   :  { %v3614_v26 = vpop.eup %3613  ;;  %v619_v27 = vmul.f32 0.5, %v3612_v21  ;;  %v643_v28 = vsel %vm304_vm4, %v642_v20, %v641_v25  ;;  %v625_v32 = vadd.f32 0.5, %v617_v18  ;;  %v646_v59 = vrot.slane %v3612_v21, 3  ;;  %v697_v15 = vld [vmem:[#allocation2 + $0x13] sm:$0x1] }
 0x6a0   :  { %v3616_v30 = vpop.eup %3615  ;;  %v620_v31 = vmul.f32 0.5, %v3614_v26  ;;  %v626_v36 = vadd.f32 0.5, %v618_v22  ;;  %v645_v37 = vsel %vm307_vm5, %v644_v29, %v643_v28  ;;  %v661_v39 = vrot.slane %v623_v23, 7  ;;  %v698_v22 = vld [vmem:[#allocation2 + $0x1b] sm:$0x1] }
 0x6a1   :  { %v621_v34 = vmul.f32 0.5, %v3616_v30  ;;  %v627_v38 = vadd.f32 0.5, %v619_v27  ;;  %v663_v40 = vrot.slane %v624_v24, 6  ;;  %v647_v43 = vsel %vm310_vm6, %v646_v59, %v645_v37  ;;  %v699_v27 = vld [vmem:[#allocation2 + $0x23] sm:$0x1] }
 0x6a2   :  { %v628_v41 = vadd.f32 0.5, %v620_v31  ;;  %v662_v44 = vsel %vm298_vm2, %v661_v39, %v622_v35  ;;  %v665_v45 = vrot.slane %v625_v32, 5  ;;  %v648_v46 = vrot.slane %v3614_v26, 2  ;;  %v702_v59 = vld [vmem:[#allocation2 + $0x3b] sm:$0x1] }
 0x6a3   :  { %v629_v42 = vadd.f32 0.5, %v621_v34  ;;  %v664_v48 = vsel %vm301_vm3, %v663_v40, %v662_v44  ;;  %v667_v49 = vrot.slane %v626_v36, 4  ;;  %v669_v51 = vrot.slane %v627_v38, 3  ;;  %v700_v34 = vld [vmem:[#allocation2 + $0x2b] sm:$0x1] }
 0x6a4   :  { %v666_v50 = vsel %vm304_vm4, %v665_v45, %v664_v48  ;;  %v649_v52 = vsel %vm313_vm7, %v648_v46, %v647_v43  ;;  %v671_v54 = vrot.slane %v628_v41, 2  ;;  %v650_v55 = vrot.slane %v3616_v30, 1  ;;  %v701_v36 = vld [vmem:[#allocation2 + $0x33] sm:$0x1] }
 0x6a5   :  { %v668_v53 = vsel %vm307_vm5, %v667_v49, %v666_v50  ;;  %v673_v57 = vrot.slane %v629_v42, 1 }
 0x6a6   :  { %v670_v56 = vsel %vm310_vm6, %v669_v51, %v668_v53  ;;  %v651_v60 = vsel %vm316_vm10, %v650_v55, %v649_v52 }
 0x6a7   :  { %v672_v58 = vsel %vm313_vm7, %v671_v54, %v670_v56 }
 0x6a8   :  { %v674_v61 = vsel %vm316_vm10, %v673_v57, %v672_v58 }
 0x6a9   :  { %v676_v62 = vsel %vm3944_vm11, %v651_v60, %v674_v61 }
 0x6aa   :  { %679 = vrot.lane.b32.xlu0 %v676_v62, %s3800_s3  ;;  %v677_v1 = vmul.f32 %v676_v62, %v3987_v33  ;;  %v695_v33 = vld [vmem:[#allocation2 + $0x3] sm:$0x1] }
 0x71c   :  { %v680_v63 = vpop.permute.xlu0 %679 }
 0x71d   :  { %v682_v0 = vmul.f32 %v680_v63, %v676_v62 }
 0x71f   :  { %684 = vrot.lane.b32.xlu1 %v682_v0, %s3801_s22 }
 0x791   :  { %v685_v2 = vpop.permute.xlu1 %684 }
 0x792   :  { %v4018_v3 = vadd.f32 %v685_v2, %v677_v1 }
 0x794   :  { %3617 = vtanh.f32 %v4018_v3 }
 0x79e   :  { %v3618_v5 = vpop.eup %3617 }
 0x79f   :  { %690 = vrot.lane.b32.xlu0 %v3618_v5, %s3800_s3 }
 0x811   :  { %v691_v7 = vpop.permute.xlu0 %690 }
 0x812   :  { %v693_v8 = vmul.f32 %v691_v7, %v676_v62 }
 0x814   :  { %v694_v9 = vpack.c.bf16 %v693_v8, %v693_v8 }
 0x816   :  { %704 = vrot.lane.b32.xlu1 %v694_v9, %s3801_s22 }
 0x888   :  { %v705_v11 = vpop.permute.xlu1 %704 }
 0x889   :  { %3425 = vmatmul.mubr.msk.bf16.vlgmr.msra.gmra.mrb[8].mxu1 %vm197_vm12, %v705_v11 }
 0x88a   :  { %3437 = vmatpush3.bf16.msra.mxu1 %v3899_v10  ;;  %3440 = vmatprep.mubr.msk.bf16.mxu1 %vm3798_vm1, %v3797_v4 }
 0x88b   :  { %3438 = vmatprep.subr.bf16.mxu1 %v3797_v4 }
 0x88e   :  { %3439 = vmatpush3.bf16.msra.mxu1 %v3906_v12 }
 0x88f   :  { %3452 = vmatprep.subr.bf16.mxu1 %v3797_v4 }
 0x95c   :  { %v743_v16 = vpop.f32.mrb[8].mxu1 }
 0x95d   :  { %v750_v17 = vrot.slane %v743_v16, 1  ;;  %v751_v18 = vrot.slane %v743_v16, 2  ;;  %v752_v19 = vrot.slane %v743_v16, 3  ;;  %v753_v20 = vrot.slane %v743_v16, 4  ;;  %v3426_v21 = vpop.f32.mrb[9].mxu1 }
 0x95e   :  { %v754_v23 = vrot.slane %v743_v16, 5  ;;  %v755_v24 = vrot.slane %v743_v16, 6  ;;  %v765_v25 = vadd.f32 %v743_v16, %v695_v33  ;;  %v746_v26 = vpop.f32.mrb[10].mxu1  ;;  %v756_v28 = vrot.slane %v743_v16, 7 }
 0x95f   :  { %v766_v29 = vadd.f32 %v750_v17, %v696_v13  ;;  %v767_v30 = vadd.f32 %v751_v18, %v697_v15  ;;  %v768_v31 = vadd.f32 %v752_v19, %v698_v22  ;;  %v3427_v32 = vpop.f32.mrb[11].mxu1  ;;  %v769_v35 = vadd.f32 %v753_v20, %v699_v27 }
 0x960   :  { %3619 = vtanh.f32 %v765_v25  ;;  %v770_v37 = vadd.f32 %v754_v23, %v700_v34  ;;  %v771_v38 = vadd.f32 %v755_v24, %v701_v36  ;;  %v772_v39 = vadd.f32 %v756_v28, %v702_v59 }
 0x961   :  { %3621 = vtanh.f32 %v766_v29 }
 0x962   :  { %3623 = vtanh.f32 %v767_v30 }
 0x963   :  { %3625 = vtanh.f32 %v768_v31 }
 0x964   :  { %3627 = vtanh.f32 %v769_v35 }
 0x965   :  { %3629 = vtanh.f32 %v770_v37 }
 0x966   :  { %3631 = vtanh.f32 %v771_v38 }
 0x967   :  { %3633 = vtanh.f32 %v772_v39 }
 0x96a   :  { %v3620_v40 = vpop.eup %3619 }
 0x96b   :  { %v3622_v41 = vpop.eup %3621  ;;  %v781_v50 = vmul.f32 0.5, %v3620_v40 }
 0x96c   :  { %v3624_v42 = vpop.eup %3623  ;;  %v782_v43 = vmul.f32 0.5, %v3622_v41  ;;  %v805_v44 = vrot.slane %v3622_v41, 7 }
 0x96d   :  { %v3626_v45 = vpop.eup %3625  ;;  %v783_v46 = vmul.f32 0.5, %v3624_v42  ;;  %v807_v48 = vrot.slane %v3624_v42, 6  ;;  %v789_v7 = vadd.f32 0.5, %v781_v50 }
 0x96e   :  { %v3628_v49 = vpop.eup %3627  ;;  %v784_v51 = vmul.f32 0.5, %v3626_v45  ;;  %v806_v52 = vsel %vm298_vm2, %v805_v44, %v3620_v40  ;;  %v809_v53 = vrot.slane %v3626_v45, 5  ;;  %v790_v56 = vadd.f32 0.5, %v782_v43 }
 0x96f   :  { %v3630_v54 = vpop.eup %3629  ;;  %v785_v55 = vmul.f32 0.5, %v3628_v49  ;;  %v791_v57 = vadd.f32 0.5, %v783_v46  ;;  %v808_v58 = vsel %vm301_vm3, %v807_v48, %v806_v52  ;;  %v811_v63 = vrot.slane %v3628_v49, 4  ;;  %v863_v46 = vld [vmem:[#allocation2 + $0xc] sm:$0x1] }
 0x970   :  { %v3632_v60 = vpop.eup %3631  ;;  %v786_v61 = vmul.f32 0.5, %v3630_v54  ;;  %v810_v62 = vsel %vm304_vm4, %v809_v53, %v808_v58  ;;  %v792_v2 = vadd.f32 0.5, %v784_v51  ;;  %v813_v33 = vrot.slane %v3630_v54, 3  ;;  %v864_v48 = vld [vmem:[#allocation2 + $0x14] sm:$0x1] }
 0x971   :  { %v3634_v0 = vpop.eup %3633  ;;  %v787_v1 = vmul.f32 0.5, %v3632_v60  ;;  %v793_v8 = vadd.f32 0.5, %v785_v55  ;;  %v812_v9 = vsel %vm307_vm5, %v811_v63, %v810_v62  ;;  %v828_v13 = vrot.slane %v790_v56, 7  ;;  %v865_v55 = vld [vmem:[#allocation2 + $0x1c] sm:$0x1] }
 0x972   :  { %v788_v5 = vmul.f32 0.5, %v3634_v0  ;;  %v794_v11 = vadd.f32 0.5, %v786_v61  ;;  %v830_v15 = vrot.slane %v791_v57, 6  ;;  %v814_v18 = vsel %vm310_vm6, %v813_v33, %v812_v9  ;;  %v866_v61 = vld [vmem:[#allocation2 + $0x24] sm:$0x1] }
 0x973   :  { %v795_v16 = vadd.f32 0.5, %v787_v1  ;;  %v829_v19 = vsel %vm298_vm2, %v828_v13, %v789_v7  ;;  %v832_v20 = vrot.slane %v792_v2, 5  ;;  %v815_v21 = vrot.slane %v3632_v60, 2  ;;  %v869_v33 = vld [vmem:[#allocation2 + $0x3c] sm:$0x1] }
 0x974   :  { %v796_v17 = vadd.f32 0.5, %v788_v5  ;;  %v831_v22 = vsel %vm301_vm3, %v830_v15, %v829_v19  ;;  %v834_v23 = vrot.slane %v793_v8, 4  ;;  %v836_v25 = vrot.slane %v794_v11, 3  ;;  %v867_v5 = vld [vmem:[#allocation2 + $0x2c] sm:$0x1] }
 0x975   :  { %v833_v24 = vsel %vm304_vm4, %v832_v20, %v831_v22  ;;  %v816_v26 = vsel %vm313_vm7, %v815_v21, %v814_v18  ;;  %v838_v28 = vrot.slane %v795_v16, 2  ;;  %v817_v29 = vrot.slane %v3634_v0, 1  ;;  %v868_v8 = vld [vmem:[#allocation2 + $0x34] sm:$0x1] }
 0x976   :  { %v835_v27 = vsel %vm307_vm5, %v834_v23, %v833_v24  ;;  %v840_v31 = vrot.slane %v796_v17, 1 }
 0x977   :  { %v837_v30 = vsel %vm310_vm6, %v836_v25, %v835_v27  ;;  %v818_v34 = vsel %vm316_vm10, %v817_v29, %v816_v26 }
 0x978   :  { %v839_v32 = vsel %vm313_vm7, %v838_v28, %v837_v30 }
 0x979   :  { %v841_v35 = vsel %vm316_vm10, %v840_v31, %v839_v32 }
 0x97a   :  { %v843_v36 = vsel %vm3944_vm11, %v818_v34, %v841_v35 }
 0x97b   :  { %846 = vrot.lane.b32.xlu0 %v843_v36, %s3800_s3  ;;  %v844_v59 = vmul.f32 %v843_v36, %v4018_v3  ;;  %v862_v3 = vld [vmem:[#allocation2 + $0x4] sm:$0x1] }
 0x9ed   :  { %v847_v37 = vpop.permute.xlu0 %846 }
 0x9ee   :  { %v849_v38 = vmul.f32 %v847_v37, %v843_v36 }
 0x9f0   :  { %851 = vrot.lane.b32.xlu1 %v849_v38, %s3801_s22 }
 0xa62   :  { %v852_v39 = vpop.permute.xlu1 %851 }
 0xa63   :  { %v4049_v40 = vadd.f32 %v852_v39, %v844_v59 }
 0xa65   :  { %3635 = vtanh.f32 %v4049_v40 }
 0xa6f   :  { %v3636_v41 = vpop.eup %3635 }
 0xa70   :  { %857 = vrot.lane.b32.xlu0 %v3636_v41, %s3800_s3 }
 0xae2   :  { %v858_v42 = vpop.permute.xlu0 %857 }
 0xae3   :  { %v860_v43 = vmul.f32 %v858_v42, %v843_v36 }
 0xae5   :  { %v861_v44 = vpack.c.bf16 %v860_v43, %v860_v43 }
 0xae7   :  { %871 = vrot.lane.b32.xlu1 %v861_v44, %s3801_s22 }
 0xb59   :  { %v872_v45 = vpop.permute.xlu1 %871 }
 0xb5a   :  { %3433 = vmatmul.mubr.msk.bf16.vlgmr.msra.gmra.mrb[12].mxu0 %vm197_vm12, %v872_v45 }
 0xb5b   :  { %3445 = vmatpush3.bf16.msra.mxu0 %v3899_v10  ;;  %3448 = vmatprep.mubr.msk.bf16.mxu0 %vm3798_vm1, %v3797_v4 }
 0xb5c   :  { %3446 = vmatprep.subr.bf16.mxu0 %v3797_v4 }
 0xb5f   :  { %3447 = vmatpush3.bf16.msra.mxu0 %v3906_v12 }
 0xb60   :  { %3460 = vmatprep.subr.bf16.mxu0 %v3797_v4 }
 0xc2d   :  { %v910_v49 = vpop.f32.mrb[12].mxu0 }
 0xc2e   :  { %v917_v50 = vrot.slane %v910_v49, 1  ;;  %v918_v51 = vrot.slane %v910_v49, 2  ;;  %v919_v52 = vrot.slane %v910_v49, 3  ;;  %v920_v53 = vrot.slane %v910_v49, 4  ;;  %v3434_v54 = vpop.f32.mrb[13].mxu0 }
 0xc2f   :  { %v921_v56 = vrot.slane %v910_v49, 5  ;;  %v922_v57 = vrot.slane %v910_v49, 6  ;;  %v932_v58 = vadd.f32 %v910_v49, %v862_v3  ;;  %v913_v60 = vpop.f32.mrb[14].mxu0  ;;  %v923_v62 = vrot.slane %v910_v49, 7 }
 0xc30   :  { %v933_v63 = vadd.f32 %v917_v50, %v863_v46  ;;  %v934_v0 = vadd.f32 %v918_v51, %v864_v48  ;;  %v935_v1 = vadd.f32 %v919_v52, %v865_v55  ;;  %v3435_v2 = vpop.f32.mrb[15].mxu0  ;;  %v936_v7 = vadd.f32 %v920_v53, %v866_v61 }
 0xc31   :  { %3637 = vtanh.f32 %v932_v58  ;;  %v937_v9 = vadd.f32 %v921_v56, %v867_v5  ;;  %v938_v11 = vadd.f32 %v922_v57, %v868_v8  ;;  %v939_v13 = vadd.f32 %v923_v62, %v869_v33 }
 0xc32   :  { %3639 = vtanh.f32 %v933_v63 }
 0xc33   :  { %3641 = vtanh.f32 %v934_v0 }
 0xc34   :  { %3643 = vtanh.f32 %v935_v1 }
 0xc35   :  { %3645 = vtanh.f32 %v936_v7 }
 0xc36   :  { %3647 = vtanh.f32 %v937_v9 }
 0xc37   :  { %3649 = vtanh.f32 %v938_v11 }
 0xc38   :  { %3651 = vtanh.f32 %v939_v13 }
 0xc3b   :  { %v3638_v15 = vpop.eup %3637 }
 0xc3c   :  { %v3640_v16 = vpop.eup %3639  ;;  %v948_v24 = vmul.f32 0.5, %v3638_v15 }
 0xc3d   :  { %v3642_v17 = vpop.eup %3641  ;;  %v949_v18 = vmul.f32 0.5, %v3640_v16  ;;  %v972_v19 = vrot.slane %v3640_v16, 7 }
 0xc3e   :  { %v3644_v20 = vpop.eup %3643  ;;  %v950_v21 = vmul.f32 0.5, %v3642_v17  ;;  %v974_v22 = vrot.slane %v3642_v17, 6  ;;  %v956_v42 = vadd.f32 0.5, %v948_v24 }
 0xc3f   :  { %v3646_v23 = vpop.eup %3645  ;;  %v951_v25 = vmul.f32 0.5, %v3644_v20  ;;  %v973_v26 = vsel %vm298_vm2, %v972_v19, %v3638_v15  ;;  %v976_v27 = vrot.slane %v3644_v20, 5  ;;  %v957_v30 = vadd.f32 0.5, %v949_v18 }
 0xc40   :  { %v3648_v28 = vpop.eup %3647  ;;  %v952_v29 = vmul.f32 0.5, %v3646_v23  ;;  %v958_v31 = vadd.f32 0.5, %v950_v21  ;;  %v975_v32 = vsel %vm301_vm3, %v974_v22, %v973_v26  ;;  %v978_v37 = vrot.slane %v3646_v23, 4  ;;  %v1030_v21 = vld [vmem:[#allocation2 + $0xd] sm:$0x1] }
 0xc41   :  { %v3650_v34 = vpop.eup %3649  ;;  %v953_v35 = vmul.f32 0.5, %v3648_v28  ;;  %v977_v36 = vsel %vm304_vm4, %v976_v27, %v975_v32  ;;  %v959_v39 = vadd.f32 0.5, %v951_v25  ;;  %v980_v3 = vrot.slane %v3648_v28, 3  ;;  %v1031_v22 = vld [vmem:[#allocation2 + $0x15] sm:$0x1] }
 0xc42   :  { %v3652_v38 = vpop.eup %3651  ;;  %v954_v59 = vmul.f32 0.5, %v3650_v34  ;;  %v960_v43 = vadd.f32 0.5, %v952_v29  ;;  %v979_v44 = vsel %vm307_vm5, %v978_v37, %v977_v36  ;;  %v995_v46 = vrot.slane %v957_v30, 7  ;;  %v1032_v29 = vld [vmem:[#allocation2 + $0x1d] sm:$0x1] }
 0xc43   :  { %v955_v41 = vmul.f32 0.5, %v3652_v38  ;;  %v961_v45 = vadd.f32 0.5, %v953_v35  ;;  %v997_v48 = vrot.slane %v958_v31, 6  ;;  %v981_v51 = vsel %vm310_vm6, %v980_v3, %v979_v44  ;;  %v1036_v44 = vld [vmem:[#allocation2 + $0x3d] sm:$0x1] }
 0xc44   :  { %v962_v49 = vadd.f32 0.5, %v954_v59  ;;  %v996_v52 = vsel %vm298_vm2, %v995_v46, %v956_v42  ;;  %v999_v53 = vrot.slane %v959_v39, 5  ;;  %v982_v54 = vrot.slane %v3650_v34, 2  ;;  %v1033_v34 = vld [vmem:[#allocation2 + $0x25] sm:$0x1] }
 0xc45   :  { %v963_v50 = vadd.f32 0.5, %v955_v41  ;;  %v998_v55 = vsel %vm301_vm3, %v997_v48, %v996_v52  ;;  %v1001_v56 = vrot.slane %v960_v43, 4  ;;  %v1003_v58 = vrot.slane %v961_v45, 3  ;;  %v1034_v59 = vld [vmem:[#allocation2 + $0x2d] sm:$0x1] }
 0xc46   :  { %v1000_v57 = vsel %vm304_vm4, %v999_v53, %v998_v55  ;;  %v983_v60 = vsel %vm313_vm7, %v982_v54, %v981_v51  ;;  %v1005_v62 = vrot.slane %v962_v49, 2  ;;  %v984_v63 = vrot.slane %v3652_v38, 1  ;;  %v1035_v41 = vld [vmem:[#allocation2 + $0x35] sm:$0x1] }
 0xc47   :  { %v1002_v61 = vsel %vm307_vm5, %v1001_v56, %v1000_v57  ;;  %v1007_v1 = vrot.slane %v963_v50, 1 }
 0xc48   :  { %v1004_v0 = vsel %vm310_vm6, %v1003_v58, %v1002_v61  ;;  %v985_v5 = vsel %vm316_vm10, %v984_v63, %v983_v60 }
 0xc49   :  { %v1006_v2 = vsel %vm313_vm7, %v1005_v62, %v1004_v0 }
 0xc4a   :  { %v1008_v7 = vsel %vm316_vm10, %v1007_v1, %v1006_v2 }
 0xc4b   :  { %v1010_v8 = vsel %vm3944_vm11, %v985_v5, %v1008_v7 }
 0xc4c   :  { %1013 = vrot.lane.b32.xlu0 %v1010_v8, %s3800_s3  ;;  %v1011_v33 = vmul.f32 %v1010_v8, %v4049_v40  ;;  %v1029_v40 = vld [vmem:[#allocation2 + $0x5] sm:$0x1] }
 0xcbe   :  { %v1014_v9 = vpop.permute.xlu0 %1013 }
 0xcbf   :  { %v1016_v11 = vmul.f32 %v1014_v9, %v1010_v8 }
 0xcc1   :  { %1018 = vrot.lane.b32.xlu1 %v1016_v11, %s3801_s22 }
 0xd33   :  { %v1019_v13 = vpop.permute.xlu1 %1018 }
 0xd34   :  { %v4080_v15 = vadd.f32 %v1019_v13, %v1011_v33 }
 0xd36   :  { %3653 = vtanh.f32 %v4080_v15 }
 0xd40   :  { %v3654_v16 = vpop.eup %3653 }
 0xd41   :  { %1024 = vrot.lane.b32.xlu0 %v3654_v16, %s3800_s3 }
 0xdb3   :  { %v1025_v17 = vpop.permute.xlu0 %1024 }
 0xdb4   :  { %v1027_v18 = vmul.f32 %v1025_v17, %v1010_v8 }
 0xdb6   :  { %v1028_v19 = vpack.c.bf16 %v1027_v18, %v1027_v18 }
 0xdb8   :  { %1038 = vrot.lane.b32.xlu1 %v1028_v19, %s3801_s22 }
 0xe2a   :  { %v1039_v20 = vpop.permute.xlu1 %1038 }
 0xe2b   :  { %3441 = vmatmul.mubr.msk.bf16.vlgmr.msra.gmra.mrb[12].mxu1 %vm197_vm12, %v1039_v20 }
 0xe2c   :  { %3453 = vmatpush3.bf16.msra.mxu1 %v3899_v10  ;;  %3456 = vmatprep.mubr.msk.bf16.mxu1 %vm3798_vm1, %v3797_v4 }
 0xe2d   :  { %3454 = vmatprep.subr.bf16.mxu1 %v3797_v4 }
 0xe30   :  { %3455 = vmatpush3.bf16.msra.mxu1 %v3906_v12 }
 0xe31   :  { %3468 = vmatprep.subr.bf16.mxu1 %v3797_v4 }
 0xefe   :  { %v1077_v23 = vpop.f32.mrb[12].mxu1 }
 0xeff   :  { %v1084_v24 = vrot.slane %v1077_v23, 1  ;;  %v1085_v25 = vrot.slane %v1077_v23, 2  ;;  %v1086_v26 = vrot.slane %v1077_v23, 3  ;;  %v1087_v27 = vrot.slane %v1077_v23, 4  ;;  %v3442_v28 = vpop.f32.mrb[13].mxu1 }
 0xf00   :  { %v1088_v10 = vrot.slane %v1077_v23, 5  ;;  %v1089_v30 = vrot.slane %v1077_v23, 6  ;;  %v1099_v31 = vadd.f32 %v1077_v23, %v1029_v40  ;;  %v1080_v32 = vpop.f32.mrb[14].mxu1  ;;  %v1090_v35 = vrot.slane %v1077_v23, 7 }
 0xf01   :  { %v1100_v36 = vadd.f32 %v1084_v24, %v1030_v21  ;;  %v1101_v12 = vadd.f32 %v1085_v25, %v1031_v22  ;;  %v1102_v37 = vadd.f32 %v1086_v26, %v1032_v29  ;;  %v3443_v38 = vpop.f32.mrb[15].mxu1  ;;  %v1103_v39 = vadd.f32 %v1087_v27, %v1033_v34 }
 0xf02   :  { %3655 = vtanh.f32 %v1099_v31  ;;  %v1104_v42 = vadd.f32 %v1088_v10, %v1034_v59  ;;  %v1105_v43 = vadd.f32 %v1089_v30, %v1035_v41  ;;  %v1106_v45 = vadd.f32 %v1090_v35, %v1036_v44 }
 0xf03   :  { %3657 = vtanh.f32 %v1100_v36 }
 0xf04   :  { %3659 = vtanh.f32 %v1101_v12 }
 0xf05   :  { %3661 = vtanh.f32 %v1102_v37 }
 0xf06   :  { %3663 = vtanh.f32 %v1103_v39 }
 0xf07   :  { %3665 = vtanh.f32 %v1104_v42 }
 0xf08   :  { %3667 = vtanh.f32 %v1105_v43 }
 0xf09   :  { %3669 = vtanh.f32 %v1106_v45 }
 0xf0c   :  { %v3656_v3 = vpop.eup %3655 }
 0xf0d   :  { %v3658_v46 = vpop.eup %3657  ;;  %v1115_v55 = vmul.f32 0.5, %v3656_v3 }
 0xf0e   :  { %v3660_v48 = vpop.eup %3659  ;;  %v1116_v49 = vmul.f32 0.5, %v3658_v46  ;;  %v1139_v50 = vrot.slane %v3658_v46, 7 }
 0xf0f   :  { %v3662_v51 = vpop.eup %3661  ;;  %v1117_v52 = vmul.f32 0.5, %v3660_v48  ;;  %v1141_v53 = vrot.slane %v3660_v48, 6  ;;  %v1123_v13 = vadd.f32 0.5, %v1115_v55 }
 0xf10   :  { %v3664_v54 = vpop.eup %3663  ;;  %v1118_v56 = vmul.f32 0.5, %v3662_v51  ;;  %v1140_v57 = vsel %vm298_vm2, %v1139_v50, %v3656_v3  ;;  %v1143_v58 = vrot.slane %v3662_v51, 5  ;;  %v1124_v62 = vadd.f32 0.5, %v1116_v49  ;;  %v1197_v50 = vld [vmem:[#allocation2 + $0xe] sm:$0x1] }
 0xf11   :  { %v3666_v60 = vpop.eup %3665  ;;  %v1119_v61 = vmul.f32 0.5, %v3664_v54  ;;  %v1125_v63 = vadd.f32 0.5, %v1117_v52  ;;  %v1142_v0 = vsel %vm301_vm3, %v1141_v53, %v1140_v57  ;;  %v1145_v7 = vrot.slane %v3664_v54, 4  ;;  %v1198_v51 = vld [vmem:[#allocation2 + $0x16] sm:$0x1] }
 0xf12   :  { %v3668_v1 = vpop.eup %3667  ;;  %v1120_v2 = vmul.f32 0.5, %v3666_v60  ;;  %v1144_v5 = vsel %vm304_vm4, %v1143_v58, %v1142_v0  ;;  %v1126_v11 = vadd.f32 0.5, %v1118_v56  ;;  %v1147_v19 = vrot.slane %v3666_v60, 3  ;;  %v1199_v58 = vld [vmem:[#allocation2 + $0x1e] sm:$0x1] }
 0xf13   :  { %v3670_v8 = vpop.eup %3669  ;;  %v1121_v9 = vmul.f32 0.5, %v3668_v1  ;;  %v1127_v16 = vadd.f32 0.5, %v1119_v61  ;;  %v1146_v17 = vsel %vm307_vm5, %v1145_v7, %v1144_v5  ;;  %v1162_v20 = vrot.slane %v1124_v62, 7  ;;  %v1200_v0 = vld [vmem:[#allocation2 + $0x26] sm:$0x1] }
 0xf14   :  { %v1122_v33 = vmul.f32 0.5, %v3670_v8  ;;  %v1128_v18 = vadd.f32 0.5, %v1120_v2  ;;  %v1164_v40 = vrot.slane %v1125_v63, 6  ;;  %v1148_v23 = vsel %vm310_vm6, %v1147_v19, %v1146_v17  ;;  %v1203_v17 = vld [vmem:[#allocation2 + $0x3e] sm:$0x1] }
 0xf15   :  { %v1129_v21 = vadd.f32 0.5, %v1121_v9  ;;  %v1163_v24 = vsel %vm298_vm2, %v1162_v20, %v1123_v13  ;;  %v1166_v25 = vrot.slane %v1126_v11, 5  ;;  %v1149_v26 = vrot.slane %v3668_v1, 2  ;;  %v1201_v9 = vld [vmem:[#allocation2 + $0x2e] sm:$0x1] }
 0xf16   :  { %v1130_v22 = vadd.f32 0.5, %v1122_v33  ;;  %v1165_v27 = vsel %vm301_vm3, %v1164_v40, %v1163_v24  ;;  %v1168_v28 = vrot.slane %v1127_v16, 4  ;;  %v1170_v10 = vrot.slane %v1128_v18, 3  ;;  %v1202_v33 = vld [vmem:[#allocation2 + $0x36] sm:$0x1] }
 0xf17   :  { %v1167_v29 = vsel %vm304_vm4, %v1166_v25, %v1165_v27  ;;  %v1150_v30 = vsel %vm313_vm7, %v1149_v26, %v1148_v23  ;;  %v1172_v32 = vrot.slane %v1129_v21, 2  ;;  %v1151_v34 = vrot.slane %v3670_v8, 1 }
 0xf18   :  { %v1169_v31 = vsel %vm307_vm5, %v1168_v28, %v1167_v29  ;;  %v1174_v36 = vrot.slane %v1130_v22, 1 }
 0xf19   :  { %v1171_v35 = vsel %vm310_vm6, %v1170_v10, %v1169_v31  ;;  %v1152_v37 = vsel %vm316_vm10, %v1151_v34, %v1150_v30 }
 0xf1a   :  { %v1173_v12 = vsel %vm313_vm7, %v1172_v32, %v1171_v35 }
 0xf1b   :  { %v1175_v38 = vsel %vm316_vm10, %v1174_v36, %v1173_v12 }
 0xf1c   :  { %v1177_v59 = vsel %vm3944_vm11, %v1152_v37, %v1175_v38 }
 0xf1d   :  { %1180 = vrot.lane.b32.xlu0 %v1177_v59, %s3800_s3  ;;  %v1178_v42 = vmul.f32 %v1177_v59, %v4080_v15  ;;  %v1196_v15 = vld [vmem:[#allocation2 + $0x6] sm:$0x1] }
 0xf8f   :  { %v1181_v39 = vpop.permute.xlu0 %1180 }
 0xf90   :  { %v1183_v41 = vmul.f32 %v1181_v39, %v1177_v59 }
 0xf92   :  { %1185 = vrot.lane.b32.xlu1 %v1183_v41, %s3801_s22 }
0x1004   :  { %v1186_v43 = vpop.permute.xlu1 %1185 }
0x1005   :  { %v4111_v44 = vadd.f32 %v1186_v43, %v1178_v42 }
0x1007   :  { %3671 = vtanh.f32 %v4111_v44 }
0x1011   :  { %v3672_v45 = vpop.eup %3671 }
0x1012   :  { %1191 = vrot.lane.b32.xlu0 %v3672_v45, %s3800_s3 }
0x1084   :  { %v1192_v3 = vpop.permute.xlu0 %1191 }
0x1085   :  { %v1194_v46 = vmul.f32 %v1192_v3, %v1177_v59 }
0x1087   :  { %v1195_v48 = vpack.c.bf16 %v1194_v46, %v1194_v46 }
0x1089   :  { %1205 = vrot.lane.b32.xlu1 %v1195_v48, %s3801_s22 }
0x10fb   :  { %v1206_v49 = vpop.permute.xlu1 %1205 }
0x10fc   :  { %3449 = vmatmul.mubr.msk.bf16.vlgmr.msra.gmra.mrb[16].mxu0 %vm197_vm12, %v1206_v49 }
0x10fd   :  { %3464 = vmatprep.mubr.msk.bf16.mxu0 %vm3798_vm1, %v3797_v4 }
0x11cf   :  { %v1244_v52 = vpop.f32.mrb[16].mxu0 }
0x11d0   :  { %v1251_v53 = vrot.slane %v1244_v52, 1  ;;  %v1252_v54 = vrot.slane %v1244_v52, 2  ;;  %v1253_v55 = vrot.slane %v1244_v52, 3  ;;  %v1254_v56 = vrot.slane %v1244_v52, 4  ;;  %v3450_v57 = vpop.f32.mrb[17].mxu0 }
0x11d1   :  { %v1255_v60 = vrot.slane %v1244_v52, 5  ;;  %v1256_v61 = vrot.slane %v1244_v52, 6  ;;  %v1266_v62 = vadd.f32 %v1244_v52, %v1196_v15  ;;  %v1247_v63 = vpop.f32.mrb[18].mxu0  ;;  %v1257_v1 = vrot.slane %v1244_v52, 7 }
0x11d2   :  { %v1267_v2 = vadd.f32 %v1251_v53, %v1197_v50  ;;  %v1268_v5 = vadd.f32 %v1252_v54, %v1198_v51  ;;  %v1269_v7 = vadd.f32 %v1253_v55, %v1199_v58  ;;  %v3451_v8 = vpop.f32.mrb[19].mxu0  ;;  %v1270_v11 = vadd.f32 %v1254_v56, %v1200_v0 }
0x11d3   :  { %3673 = vtanh.f32 %v1266_v62  ;;  %v1271_v13 = vadd.f32 %v1255_v60, %v1201_v9  ;;  %v1272_v16 = vadd.f32 %v1256_v61, %v1202_v33  ;;  %v1273_v18 = vadd.f32 %v1257_v1, %v1203_v17 }
0x11d4   :  { %3675 = vtanh.f32 %v1267_v2 }
0x11d5   :  { %3677 = vtanh.f32 %v1268_v5 }
0x11d6   :  { %3679 = vtanh.f32 %v1269_v7 }
0x11d7   :  { %3681 = vtanh.f32 %v1270_v11 }
0x11d8   :  { %3683 = vtanh.f32 %v1271_v13 }
0x11d9   :  { %3685 = vtanh.f32 %v1272_v16 }
0x11da   :  { %3687 = vtanh.f32 %v1273_v18 }
0x11dd   :  { %v3674_v19 = vpop.eup %3673 }
0x11de   :  { %v3676_v20 = vpop.eup %3675  ;;  %v1282_v27 = vmul.f32 0.5, %v3674_v19 }
0x11df   :  { %v3678_v40 = vpop.eup %3677  ;;  %v1283_v21 = vmul.f32 0.5, %v3676_v20  ;;  %v1306_v22 = vrot.slane %v3676_v20, 7 }
0x11e0   :  { %v3680_v23 = vpop.eup %3679  ;;  %v1284_v24 = vmul.f32 0.5, %v3678_v40  ;;  %v1308_v25 = vrot.slane %v3678_v40, 6  ;;  %v1290_v43 = vadd.f32 0.5, %v1282_v27 }
0x11e1   :  { %v3682_v26 = vpop.eup %3681  ;;  %v1285_v28 = vmul.f32 0.5, %v3680_v23  ;;  %v1307_v29 = vsel %vm298_vm2, %v1306_v22, %v3674_v19  ;;  %v1310_v10 = vrot.slane %v3680_v23, 5  ;;  %v1291_v32 = vadd.f32 0.5, %v1283_v21  ;;  %v1364_v22 = vld [vmem:[#allocation2 + $0xf] sm:$0x1] }
0x11e2   :  { %v3684_v30 = vpop.eup %3683  ;;  %v1286_v31 = vmul.f32 0.5, %v3682_v26  ;;  %v1292_v34 = vadd.f32 0.5, %v1284_v24  ;;  %v1309_v35 = vsel %vm301_vm3, %v1308_v25, %v1307_v29  ;;  %v1312_v38 = vrot.slane %v3682_v26, 4  ;;  %v1365_v23 = vld [vmem:[#allocation2 + $0x17] sm:$0x1] }
0x11e3   :  { %v3686_v36 = vpop.eup %3685  ;;  %v1287_v12 = vmul.f32 0.5, %v3684_v30  ;;  %v1311_v37 = vsel %vm304_vm4, %v1310_v10, %v1309_v35  ;;  %v1293_v41 = vadd.f32 0.5, %v1285_v28  ;;  %v1314_v48 = vrot.slane %v3684_v30, 3  ;;  %v1366_v10 = vld [vmem:[#allocation2 + $0x1f] sm:$0x1] }
0x11e4   :  { %v3688_v59 = vpop.eup %3687  ;;  %v1288_v39 = vmul.f32 0.5, %v3686_v36  ;;  %v1294_v45 = vadd.f32 0.5, %v1286_v31  ;;  %v1313_v3 = vsel %vm307_vm5, %v1312_v38, %v1311_v37  ;;  %v1329_v49 = vrot.slane %v1291_v32, 7  ;;  %v1367_v35 = vld [vmem:[#allocation2 + $0x27] sm:$0x1] }
0x11e5   :  { %v1289_v42 = vmul.f32 0.5, %v3688_v59  ;;  %v1295_v46 = vadd.f32 0.5, %v1287_v12  ;;  %v1331_v15 = vrot.slane %v1292_v34, 6  ;;  %v1315_v52 = vsel %vm310_vm6, %v1314_v48, %v1313_v3  ;;  %v1370_v3 = vld [vmem:[#allocation2 + $0x3f] sm:$0x1] }
0x11e6   :  { %v1296_v50 = vadd.f32 0.5, %v1288_v39  ;;  %v1330_v53 = vsel %vm298_vm2, %v1329_v49, %v1290_v43  ;;  %v1333_v54 = vrot.slane %v1293_v41, 5  ;;  %v1316_v55 = vrot.slane %v3686_v36, 2  ;;  %v1368_v39 = vld [vmem:[#allocation2 + $0x2f] sm:$0x1] }
0x11e7   :  { %v1297_v51 = vadd.f32 0.5, %v1289_v42  ;;  %v1332_v56 = vsel %vm301_vm3, %v1331_v15, %v1330_v53  ;;  %v1335_v57 = vrot.slane %v1294_v45, 4  ;;  %v1337_v60 = vrot.slane %v1295_v46, 3  ;;  %v1369_v42 = vld [vmem:[#allocation2 + $0x37] sm:$0x1] }
0x11e8   :  { %v1334_v58 = vsel %vm304_vm4, %v1333_v54, %v1332_v56  ;;  %v1317_v61 = vsel %vm313_vm7, %v1316_v55, %v1315_v52  ;;  %v1339_v63 = vrot.slane %v1296_v50, 2  ;;  %v1318_v0 = vrot.slane %v3688_v59, 1 }
0x11e9   :  { %v1336_v62 = vsel %vm307_vm5, %v1335_v57, %v1334_v58  ;;  %v1341_v2 = vrot.slane %v1297_v51, 1 }
0x11ea   :  { %v1338_v1 = vsel %vm310_vm6, %v1337_v60, %v1336_v62  ;;  %v1319_v7 = vsel %vm316_vm10, %v1318_v0, %v1317_v61 }
0x11eb   :  { %v1340_v5 = vsel %vm313_vm7, %v1339_v63, %v1338_v1 }
0x11ec   :  { %v1342_v8 = vsel %vm316_vm10, %v1341_v2, %v1340_v5 }
0x11ed   :  { %v1344_v9 = vsel %vm3944_vm11, %v1319_v7, %v1342_v8 }
0x11ee   :  { %1347 = vrot.lane.b32.xlu0 %v1344_v9, %s3800_s3  ;;  %v1345_v13 = vmul.f32 %v1344_v9, %v4111_v44  ;;  %v1363_v44 = vld [vmem:[#allocation2 + $0x7] sm:$0x1] }
0x1260   :  { %v1348_v11 = vpop.permute.xlu0 %1347 }
0x1261   :  { %v1350_v33 = vmul.f32 %v1348_v11, %v1344_v9 }
0x1263   :  { %1352 = vrot.lane.b32.xlu1 %v1350_v33, %s3801_s22 }
0x12d5   :  { %v1353_v16 = vpop.permute.xlu1 %1352 }
0x12d6   :  { %v4138_v17 = vadd.f32 %v1353_v16, %v1345_v13 }
0x12d8   :  { %3689 = vtanh.f32 %v4138_v17 }
0x12e2   :  { %v3690_v18 = vpop.eup %3689 }
0x12e3   :  { %1358 = vrot.lane.b32.xlu0 %v3690_v18, %s3800_s3 }
0x1355   :  { %v1359_v19 = vpop.permute.xlu0 %1358 }
0x1356   :  { %v1361_v20 = vmul.f32 %v1359_v19, %v1344_v9 }
0x1358   :  { %v1362_v40 = vpack.c.bf16 %v1361_v20, %v1361_v20 }
0x135a   :  { %1372 = vrot.lane.b32.xlu1 %v1362_v40, %s3801_s22 }
0x13cc   :  { %v1373_v21 = vpop.permute.xlu1 %1372 }
0x13cd   :  { %3457 = vmatmul.mubr.msk.bf16.vlgmr.msra.gmra.mrb[16].mxu1 %vm197_vm12, %v1373_v21 }
0x13ce   :  { %3472 = vmatprep.mubr.msk.bf16.mxu1 %vm3798_vm1, %v3797_v4 }
0x14a0   :  { %v1411_v24 = vpop.f32.mrb[16].mxu1 }
0x14a1   :  { %v1418_v25 = vrot.slane %v1411_v24, 1  ;;  %v1419_v26 = vrot.slane %v1411_v24, 2  ;;  %v1420_v27 = vrot.slane %v1411_v24, 3  ;;  %v1421_v28 = vrot.slane %v1411_v24, 4  ;;  %v3458_v29 = vpop.f32.mrb[17].mxu1 }
0x14a2   :  { %v1422_v30 = vrot.slane %v1411_v24, 5  ;;  %v1423_v31 = vrot.slane %v1411_v24, 6  ;;  %v1433_v32 = vadd.f32 %v1411_v24, %v1363_v44  ;;  %v1414_v34 = vpop.f32.mrb[18].mxu1  ;;  %v1424_v36 = vrot.slane %v1411_v24, 7 }
0x14a3   :  { %v1434_v12 = vadd.f32 %v1418_v25, %v1364_v22  ;;  %v1435_v37 = vadd.f32 %v1419_v26, %v1365_v23  ;;  %v1436_v38 = vadd.f32 %v1420_v27, %v1366_v10  ;;  %v3459_v59 = vpop.f32.mrb[19].mxu1  ;;  %v1437_v41 = vadd.f32 %v1421_v28, %v1367_v35 }
0x14a4   :  { %3691 = vtanh.f32 %v1433_v32  ;;  %v1438_v43 = vadd.f32 %v1422_v30, %v1368_v39  ;;  %v1439_v45 = vadd.f32 %v1423_v31, %v1369_v42  ;;  %v1440_v46 = vadd.f32 %v1424_v36, %v1370_v3 }
0x14a5   :  { %3693 = vtanh.f32 %v1434_v12 }
0x14a6   :  { %3695 = vtanh.f32 %v1435_v37 }
0x14a7   :  { %3697 = vtanh.f32 %v1436_v38 }
0x14a8   :  { %3699 = vtanh.f32 %v1437_v41 }
0x14a9   :  { %3701 = vtanh.f32 %v1438_v43 }
0x14aa   :  { %3703 = vtanh.f32 %v1439_v45 }
0x14ab   :  { %3705 = vtanh.f32 %v1440_v46  ;;  %v51_v46 = vld [vmem:[%s4726_s4] sm:$0xff] }
0x14ae   :  { %v3692_v48 = vpop.eup %3691 }
0x14af   :  { %v3694_v49 = vpop.eup %3693  ;;  %v1449_v56 = vmul.f32 0.5, %v3692_v48 }
0x14b0   :  { %v3696_v15 = vpop.eup %3695  ;;  %v1450_v50 = vmul.f32 0.5, %v3694_v49  ;;  %v1473_v51 = vrot.slane %v3694_v49, 7  ;;  %v57_v49 = vld [vmem:[%s4727_s5] sm:$0xff] }
0x14b1   :  { %v3698_v52 = vpop.eup %3697  ;;  %v1451_v53 = vmul.f32 0.5, %v3696_v15  ;;  %v1475_v54 = vrot.slane %v3696_v15, 6  ;;  %v1457_v16 = vadd.f32 0.5, %v1449_v56 }
0x14b2   :  { %v3700_v55 = vpop.eup %3699  ;;  %v1452_v57 = vmul.f32 0.5, %v3698_v52  ;;  %v1474_v58 = vsel %vm298_vm2, %v1473_v51, %v3692_v48  ;;  %v1477_v60 = vrot.slane %v3698_v52, 5  ;;  %v1458_v63 = vadd.f32 0.5, %v1450_v50  ;;  %v52_v48 = vld [vmem:[%s4726_s4 + $0x8] sm:$0xff]  ;;  %v53_v50 = vld [vmem:[%s4726_s4 + $0x10] sm:$0xff]  ;;  %v54_v51 = vld [vmem:[%s4726_s4 + $0x18] sm:$0xff] }
0x14b3   :  { %v3702_v61 = vpop.eup %3701  ;;  %v1453_v62 = vmul.f32 0.5, %v3700_v55  ;;  %v1459_v0 = vadd.f32 0.5, %v1451_v53  ;;  %v1476_v1 = vsel %vm301_vm3, %v1475_v54, %v1474_v58  ;;  %v1479_v8 = vrot.slane %v3700_v55, 4  ;;  %v59_v53 = vld [vmem:[%s4727_s5 + $0x10] sm:$0xff]  ;;  %v60_v54 = vld [vmem:[%s4727_s5 + $0x18] sm:$0xff] }
0x14b4   :  { %v3704_v2 = vpop.eup %3703  ;;  %v1454_v5 = vmul.f32 0.5, %v3702_v61  ;;  %v1478_v7 = vsel %vm304_vm4, %v1477_v60, %v1476_v1  ;;  %v1460_v33 = vadd.f32 0.5, %v1452_v57  ;;  %v1481_v40 = vrot.slane %v3702_v61, 3 }
0x14b5   :  { %v3706_v9 = vpop.eup %3705  ;;  %v1455_v11 = vmul.f32 0.5, %v3704_v2  ;;  %v1461_v18 = vadd.f32 0.5, %v1453_v62  ;;  %v1480_v19 = vsel %vm307_vm5, %v1479_v8, %v1478_v7  ;;  %v1496_v21 = vrot.slane %v1458_v63, 7 }
0x14b6   :  { %v1456_v13 = vmul.f32 0.5, %v3706_v9  ;;  %v1462_v20 = vadd.f32 0.5, %v1454_v5  ;;  %v1498_v44 = vrot.slane %v1459_v0, 6  ;;  %v1482_v24 = vsel %vm310_vm6, %v1481_v40, %v1480_v19 }
0x14b7   :  { %v1463_v22 = vadd.f32 0.5, %v1455_v11  ;;  %v1497_v25 = vsel %vm298_vm2, %v1496_v21, %v1457_v16  ;;  %v1500_v26 = vrot.slane %v1460_v33, 5  ;;  %v1483_v27 = vrot.slane %v3704_v2, 2  ;;  %v3297_v2 = vld [vmem:[%s4728_s6] ss:$0 sm:$0xff] }
0x14b8   :  { %v1464_v23 = vadd.f32 0.5, %v1456_v13  ;;  %v1499_v28 = vsel %vm301_vm3, %v1498_v44, %v1497_v25  ;;  %v1502_v29 = vrot.slane %v1461_v18, 4  ;;  %v1504_v30 = vrot.slane %v1462_v20, 3 }
0x14b9   :  { %v1501_v10 = vsel %vm304_vm4, %v1500_v26, %v1499_v28  ;;  %v1484_v31 = vsel %vm313_vm7, %v1483_v27, %v1482_v24  ;;  %v1506_v34 = vrot.slane %v1463_v22, 2  ;;  %v1485_v35 = vrot.slane %v3706_v9, 1 }
0x14ba   :  { %v1503_v32 = vsel %vm307_vm5, %v1502_v29, %v1501_v10  ;;  %v1508_v12 = vrot.slane %v1464_v23, 1  ;;  %v55_v15 = vpack.c.bf16 %v52_v48, %v51_v46  ;;  %v56_v55 = vpack.c.bf16 %v54_v51, %v53_v50 }
0x14bb   :  { %v1505_v36 = vsel %vm310_vm6, %v1504_v30, %v1503_v32  ;;  %v1486_v38 = vsel %vm316_vm10, %v1485_v35, %v1484_v31  ;;  %v4193_v56 = vpack.c.bf16 %v60_v54, %v59_v53 }
0x14bc   :  { %v1507_v37 = vsel %vm313_vm7, %v1506_v34, %v1505_v36  ;;  %3461 = vmatpush3.bf16.msra.mxu0 %v55_v15 }
0x14bd   :  { %v1509_v59 = vsel %vm316_vm10, %v1508_v12, %v1507_v37  ;;  %3462 = vmatprep.subr.bf16.mxu0 %v3797_v4 }
0x14be   :  { %v1511_v39 = vsel %vm3944_vm11, %v1486_v38, %v1509_v59 }
0x14bf   :  { %1514 = vrot.lane.b32.xlu0 %v1511_v39, %s3800_s3  ;;  %v1512_v43 = vmul.f32 %v1511_v39, %v4138_v17  ;;  %v58_v17 = vld [vmem:[%s4727_s5 + $0x8] sm:$0xff] }
0x14c0   :  { %v4183_v52 = vpack.c.bf16 %v58_v17, %v57_v49  ;;  %3463 = vmatpush3.bf16.msra.mxu0 %v56_v55 }
0x14c1   :  { %3476 = vmatprep.subr.bf16.mxu0 %v3797_v4 }
0x14c2   :  { %3469 = vmatpush3.bf16.msra.mxu1 %v4183_v52 }
0x14c3   :  { %3470 = vmatprep.subr.bf16.mxu1 %v3797_v4 }
0x14c6   :  { %3471 = vmatpush3.bf16.msra.mxu1 %v4193_v56 }
0x14c7   :  { %3484 = vmatprep.subr.bf16.mxu1 %v3797_v4 }
0x14c9   :  { %3473 = vmatmul.mubr.bf16.vlgmr.msra.gmra.mrb[20].mxu1 %v3799_v14 }
0x14ca   :  { %3485 = vmatpush3.bf16.msra.mxu1 %v4183_v52  ;;  %3488 = vmatprep.mubr.msk.bf16.mxu1 %vm3798_vm1, %v3797_v4 }
0x14cb   :  { %3486 = vmatprep.subr.bf16.mxu1 %v3797_v4 }
0x14ce   :  { %3487 = vmatpush3.bf16.msra.mxu1 %v4193_v56 }
0x14cf   :  { %3500 = vmatprep.subr.bf16.mxu1 %v3797_v4 }
0x1531   :  { %v1515_v41 = vpop.permute.xlu0 %1514 }
0x1532   :  { %v1517_v42 = vmul.f32 %v1515_v41, %v1511_v39 }
0x1534   :  { %1519 = vrot.lane.b32.xlu1 %v1517_v42, %s3801_s22 }
0x159c   :  { %v1617_v62 = vpop.f32.mrb[20].mxu1 }
0x159d   :  { %v3474_v63 = vpop.f32.mrb[21].mxu1 }
0x159e   :  { %v1620_v0 = vpop.f32.mrb[22].mxu1 }
0x159f   :  { %v3475_v14 = vpop.f32.mrb[23].mxu1 }
0x15a6   :  { %v1520_v45 = vpop.permute.xlu1 %1519 }
0x15a7   :  { %v1522_v3 = vadd.f32 %v1520_v45, %v1512_v43 }
0x15a9   :  { %3707 = vtanh.f32 %v1522_v3 }
0x15b3   :  { %v3708_v57 = vpop.eup %3707 }
0x15b4   :  { %1525 = vrot.lane.b32.xlu0 %v3708_v57, %s3800_s3 }
0x1626   :  { %v1526_v58 = vpop.permute.xlu0 %1525 }
0x1627   :  { %v1528_v60 = vmul.f32 %v1526_v58, %v1511_v39 }
0x1629   :  { %v1529_v61 = vpack.c.bf16 %v1528_v60, %v1528_v60 }
0x162b   :  { %1538 = vrot.lane.b32.xlu1 %v1529_v61, %s3801_s22 }
0x169d   :  { %v1539_v1 = vpop.permute.xlu1 %1538 }
0x169e   :  { %3465 = vmatmul.mubr.msk.bf16.vlgmr.msra.gmra.mrb[20].mxu0 %vm197_vm12, %v1539_v1 }
0x169f   :  { %3477 = vmatpush3.bf16.msra.mxu0 %v4183_v52  ;;  %3480 = vmatprep.mubr.msk.bf16.mxu0 %vm3798_vm1, %v3797_v4 }
0x16a0   :  { %3478 = vmatprep.subr.bf16.mxu0 %v3797_v4 }
0x16a3   :  { %3479 = vmatpush3.bf16.msra.mxu0 %v4193_v56 }
0x16a4   :  { %3492 = vmatprep.subr.bf16.mxu0 %v3797_v4 }
0x1771   :  { %v1577_v5 = vpop.f32.mrb[20].mxu0 }
0x1772   :  { %v4218_v7 = vadd.f32 %v3297_v2, %v1577_v5  ;;  %v3466_v8 = vpop.f32.mrb[21].mxu0 }
0x1773   :  { %v1580_v9 = vpop.f32.mrb[22].mxu0 }
0x1774   :  { %v3467_v11 = vpop.f32.mrb[23].mxu0  ;;  %v1623_v33 = vadd.f32 %v1617_v62, %v4218_v7 }
0x1776   :  { %3709 = vtanh.f32 %v1623_v33 }
0x1780   :  { %v3710_v13 = vpop.eup %3709 }
0x1781   :  { %v1625_v16 = vmul.f32 0.5, %v3710_v13 }
0x1783   :  { %v1626_v18 = vadd.f32 0.5, %v1625_v16 }
0x1785   :  { %v1627_v19 = vsel %vm3944_vm11, %v3710_v13, %v1626_v18 }
0x1786   :  { %1630 = vrot.lane.b32.xlu0 %v1627_v19, %s3800_s3  ;;  %v1628_v21 = vmul.f32 0.0, %v1627_v19 }
0x17f8   :  { %v1631_v20 = vpop.permute.xlu0 %1630 }
0x17f9   :  { %v1633_v40 = vmul.f32 %v1631_v20, %v1627_v19 }
0x17fb   :  { %1635 = vrot.lane.b32.xlu1 %v1633_v40, %s3801_s22 }
0x186d   :  { %v1636_v44 = vpop.permute.xlu1 %1635 }
0x186e   :  { %v1638_v22 = vadd.f32 %v1636_v44, %v1628_v21 }
0x1870   :  { %3711 = vtanh.f32 %v1638_v22 }
0x187a   :  { %v3712_v23 = vpop.eup %3711 }
0x187b   :  { %1641 = vrot.lane.b32.xlu0 %v3712_v23, %s3800_s3 }
0x18ed   :  { %v1642_v24 = vpop.permute.xlu0 %1641 }
0x18ee   :  { %v4226_v25 = vmul.f32 %v1642_v24, %v1627_v19 }
0x18f0   :  { %v1645_v26 = vpack.c.bf16 %v4226_v25, %v4226_v25 }
0x18f2   :  { %1762 = vrot.lane.b32.xlu1 %v1645_v26, %s3801_s22 }
0x1964   :  { %v1763_v27 = vpop.permute.xlu1 %1762 }
0x1965   :  { %3481 = vmatmul.mubr.msk.bf16.vlgmr.msra.gmra.mrb[24].mxu0 %vm197_vm12, %v1763_v27 }
0x1966   :  { %3493 = vmatpush3.bf16.msra.mxu0 %v4183_v52  ;;  %3496 = vmatprep.mubr.msk.bf16.mxu0 %vm3798_vm1, %v3797_v4 }
0x1967   :  { %3494 = vmatprep.subr.bf16.mxu0 %v3797_v4 }
0x196a   :  { %3495 = vmatpush3.bf16.msra.mxu0 %v4193_v56 }
0x196b   :  { %3508 = vmatprep.subr.bf16.mxu0 %v3797_v4 }
0x1a38   :  { %v1801_v28 = vpop.f32.mrb[24].mxu0 }
0x1a39   :  { %v1807_v29 = vadd.f32 %v1801_v28, %v4218_v7  ;;  %v3482_v10 = vpop.f32.mrb[25].mxu0 }
0x1a3a   :  { %v1804_v30 = vpop.f32.mrb[26].mxu0 }
0x1a3b   :  { %3713 = vtanh.f32 %v1807_v29  ;;  %v3483_v31 = vpop.f32.mrb[27].mxu0 }
0x1a45   :  { %v3714_v32 = vpop.eup %3713 }
0x1a46   :  { %v1809_v34 = vmul.f32 0.5, %v3714_v32 }
0x1a48   :  { %v1810_v35 = vadd.f32 0.5, %v1809_v34 }
0x1a4a   :  { %v1811_v36 = vsel %vm3944_vm11, %v3714_v32, %v1810_v35 }
0x1a4b   :  { %1814 = vrot.lane.b32.xlu0 %v1811_v36, %s3800_s3  ;;  %v1812_v38 = vmul.f32 %v1811_v36, %v1638_v22 }
0x1abd   :  { %v1815_v12 = vpop.permute.xlu0 %1814 }
0x1abe   :  { %v1817_v37 = vmul.f32 %v1815_v12, %v1811_v36 }
0x1ac0   :  { %1819 = vrot.lane.b32.xlu1 %v1817_v37, %s3801_s22 }
0x1b32   :  { %v1820_v59 = vpop.permute.xlu1 %1819 }
0x1b33   :  { %v1822_v39 = vadd.f32 %v1820_v59, %v1812_v38 }
0x1b35   :  { %3715 = vtanh.f32 %v1822_v39 }
0x1b3f   :  { %v3716_v41 = vpop.eup %3715 }
0x1b40   :  { %1825 = vrot.lane.b32.xlu0 %v3716_v41, %s3800_s3 }
0x1bb2   :  { %v1826_v42 = vpop.permute.xlu0 %1825 }
0x1bb3   :  { %v4244_v43 = vmul.f32 %v1826_v42, %v1811_v36 }
0x1bb5   :  { %v1829_v45 = vpack.c.bf16 %v4244_v43, %v4244_v43 }
0x1bb7   :  { %1945 = vrot.lane.b32.xlu1 %v1829_v45, %s3801_s22 }
0x1c29   :  { %v1946_v3 = vpop.permute.xlu1 %1945 }
0x1c2a   :  { %3489 = vmatmul.mubr.msk.bf16.vlgmr.msra.gmra.mrb[24].mxu1 %vm197_vm12, %v1946_v3 }
0x1c2b   :  { %3501 = vmatpush3.bf16.msra.mxu1 %v4183_v52  ;;  %3504 = vmatprep.mubr.msk.bf16.mxu1 %vm3798_vm1, %v3797_v4 }
0x1c2c   :  { %3502 = vmatprep.subr.bf16.mxu1 %v3797_v4 }
0x1c2f   :  { %3503 = vmatpush3.bf16.msra.mxu1 %v4193_v56 }
0x1c30   :  { %3516 = vmatprep.subr.bf16.mxu1 %v3797_v4 }
0x1cfd   :  { %v1984_v46 = vpop.f32.mrb[24].mxu1 }
0x1cfe   :  { %v1990_v48 = vadd.f32 %v1984_v46, %v4218_v7  ;;  %v3490_v49 = vpop.f32.mrb[25].mxu1 }
0x1cff   :  { %v1987_v15 = vpop.f32.mrb[26].mxu1 }
0x1d00   :  { %3717 = vtanh.f32 %v1990_v48  ;;  %v3491_v17 = vpop.f32.mrb[27].mxu1 }
0x1d0a   :  { %v3718_v50 = vpop.eup %3717 }
0x1d0b   :  { %v1992_v51 = vmul.f32 0.5, %v3718_v50 }
0x1d0d   :  { %v1993_v53 = vadd.f32 0.5, %v1992_v51 }
0x1d0f   :  { %v1994_v54 = vsel %vm3944_vm11, %v3718_v50, %v1993_v53 }
0x1d10   :  { %1997 = vrot.lane.b32.xlu0 %v1994_v54, %s3800_s3  ;;  %v1995_v58 = vmul.f32 %v1994_v54, %v1822_v39 }
0x1d82   :  { %v1998_v55 = vpop.permute.xlu0 %1997 }
0x1d83   :  { %v2000_v57 = vmul.f32 %v1998_v55, %v1994_v54 }
0x1d85   :  { %2002 = vrot.lane.b32.xlu1 %v2000_v57, %s3801_s22 }
0x1df7   :  { %v2003_v60 = vpop.permute.xlu1 %2002 }
0x1df8   :  { %v2005_v61 = vadd.f32 %v2003_v60, %v1995_v58 }
0x1dfa   :  { %3719 = vtanh.f32 %v2005_v61 }
0x1e04   :  { %v3720_v62 = vpop.eup %3719 }
0x1e05   :  { %2008 = vrot.lane.b32.xlu0 %v3720_v62, %s3800_s3 }
0x1e77   :  { %v2009_v63 = vpop.permute.xlu0 %2008 }
0x1e78   :  { %v4262_v0 = vmul.f32 %v2009_v63, %v1994_v54 }
0x1e7a   :  { %v2012_v14 = vpack.c.bf16 %v4262_v0, %v4262_v0 }
0x1e7c   :  { %2128 = vrot.lane.b32.xlu1 %v2012_v14, %s3801_s22 }
0x1eee   :  { %v2129_v1 = vpop.permute.xlu1 %2128 }
0x1eef   :  { %3497 = vmatmul.mubr.msk.bf16.vlgmr.msra.gmra.mrb[28].mxu0 %vm197_vm12, %v2129_v1 }
0x1ef0   :  { %3509 = vmatpush3.bf16.msra.mxu0 %v4183_v52  ;;  %3512 = vmatprep.mubr.msk.bf16.mxu0 %vm3798_vm1, %v3797_v4 }
0x1ef1   :  { %3510 = vmatprep.subr.bf16.mxu0 %v3797_v4 }
0x1ef4   :  { %3511 = vmatpush3.bf16.msra.mxu0 %v4193_v56 }
0x1ef5   :  { %3524 = vmatprep.subr.bf16.mxu0 %v3797_v4 }
0x1fc2   :  { %v2167_v2 = vpop.f32.mrb[28].mxu0 }
0x1fc3   :  { %v2173_v5 = vadd.f32 %v2167_v2, %v4218_v7  ;;  %v3498_v8 = vpop.f32.mrb[29].mxu0 }
0x1fc4   :  { %v2170_v9 = vpop.f32.mrb[30].mxu0 }
0x1fc5   :  { %3721 = vtanh.f32 %v2173_v5  ;;  %v3499_v11 = vpop.f32.mrb[31].mxu0 }
0x1fcf   :  { %v3722_v33 = vpop.eup %3721 }
0x1fd0   :  { %v2175_v13 = vmul.f32 0.5, %v3722_v33 }
0x1fd2   :  { %v2176_v16 = vadd.f32 0.5, %v2175_v13 }
0x1fd4   :  { %v2177_v18 = vsel %vm3944_vm11, %v3722_v33, %v2176_v16 }
0x1fd5   :  { %2180 = vrot.lane.b32.xlu0 %v2177_v18, %s3800_s3  ;;  %v2178_v40 = vmul.f32 %v2177_v18, %v2005_v61 }
0x2047   :  { %v2181_v19 = vpop.permute.xlu0 %2180 }
0x2048   :  { %v2183_v20 = vmul.f32 %v2181_v19, %v2177_v18 }
0x204a   :  { %2185 = vrot.lane.b32.xlu1 %v2183_v20, %s3801_s22 }
0x20bc   :  { %v2186_v21 = vpop.permute.xlu1 %2185 }
0x20bd   :  { %v2188_v44 = vadd.f32 %v2186_v21, %v2178_v40 }
0x20bf   :  { %3723 = vtanh.f32 %v2188_v44 }
0x20c9   :  { %v3724_v22 = vpop.eup %3723 }
0x20ca   :  { %2191 = vrot.lane.b32.xlu0 %v3724_v22, %s3800_s3 }
0x213c   :  { %v2192_v23 = vpop.permute.xlu0 %2191 }
0x213d   :  { %v4280_v24 = vmul.f32 %v2192_v23, %v2177_v18 }
0x213f   :  { %v2195_v26 = vpack.c.bf16 %v4280_v24, %v4280_v24 }
0x2141   :  { %2311 = vrot.lane.b32.xlu1 %v2195_v26, %s3801_s22 }
0x21b3   :  { %v2312_v27 = vpop.permute.xlu1 %2311 }
0x21b4   :  { %3505 = vmatmul.mubr.msk.bf16.vlgmr.msra.gmra.mrb[28].mxu1 %vm197_vm12, %v2312_v27 }
0x21b5   :  { %3517 = vmatpush3.bf16.msra.mxu1 %v4183_v52  ;;  %3520 = vmatprep.mubr.msk.bf16.mxu1 %vm3798_vm1, %v3797_v4 }
0x21b6   :  { %3518 = vmatprep.subr.bf16.mxu1 %v3797_v4 }
0x21b9   :  { %3519 = vmatpush3.bf16.msra.mxu1 %v4193_v56 }
0x2287   :  { %v2350_v28 = vpop.f32.mrb[28].mxu1 }
0x2288   :  { %v2356_v29 = vadd.f32 %v2350_v28, %v4218_v7  ;;  %v3506_v10 = vpop.f32.mrb[29].mxu1 }
0x2289   :  { %v2353_v30 = vpop.f32.mrb[30].mxu1 }
0x228a   :  { %3725 = vtanh.f32 %v2356_v29  ;;  %v3507_v31 = vpop.f32.mrb[31].mxu1  ;;  %v3802_v29 = vmov 1966171168  }
0x228b   :  { %v1649_v10 = vunpack.c.l.s4 %v3802_v29 }
0x228d   :  { %v1650_v31 = vunpack.c.0.s8 %v1649_v10 }
0x2294   :  { %v3726_v32 = vpop.eup %3725 }
0x2295   :  { %v2358_v34 = vmul.f32 0.5, %v3726_v32 }
0x2297   :  { %v2359_v35 = vadd.f32 0.5, %v2358_v34 }
0x2299   :  { %v2360_v36 = vsel %vm3944_vm11, %v3726_v32, %v2359_v35  ;;  %v1652_v32 = vshrl.u32 %v63_v6, 7 }
0x229a   :  { %2363 = vrot.lane.b32.xlu0 %v2360_v36, %s3800_s3  ;;  %v2361_v38 = vmul.f32 %v2360_v36, %v2188_v44 }
0x230c   :  { %v2364_v12 = vpop.permute.xlu0 %2363 }
0x230d   :  { %v2366_v37 = vmul.f32 %v2364_v12, %v2360_v36 }
0x230f   :  { %2368 = vrot.lane.b32.xlu1 %v2366_v37, %s3801_s22  ;;  %v4340_v37 = vsub.s32 %v1650_v31, %v1652_v32 }
0x2311   :  { %v2021_v6 = vrot.slane %v4262_v0, %v4340_v37 }
0x2381   :  { %v2369_v59 = vpop.permute.xlu1 %2368 }
0x2382   :  { %v2371_v39 = vadd.f32 %v2369_v59, %v2361_v38  ;;  %v1654_v38 = vrot.slane %v4226_v25, %v4340_v37 }
0x2384   :  { %3727 = vtanh.f32 %v2371_v39  ;;  %v1670_v29 = vrot.slane %v1654_v38, %v4340_v37 }
0x238e   :  { %v3728_v41 = vpop.eup %3727 }
0x238f   :  { %2374 = vrot.lane.b32.xlu0 %v3728_v41, %s3800_s3  ;;  %v1838_v41 = vrot.slane %v4244_v43, %v4340_v37 }
0x2391   :  { %v1854_v31 = vrot.slane %v1838_v41, %v4340_v37 }
0x2401   :  { %v2375_v42 = vpop.permute.xlu0 %2374 }
0x2402   :  { %v4297_v45 = vmul.f32 %v2375_v42, %v2360_v36 }
0x2404   :  { %v2378_v3 = vpack.c.bf16 %v4297_v45, %v4297_v45  ;;  %v2387_v47 = vrot.slane %v4297_v45, %v4340_v37 }
0x2406   :  { %2494 = vrot.lane.b32.xlu1 %v2378_v3, %s3801_s22 }
0x2478   :  { %v2495_v46 = vpop.permute.xlu1 %2494 }
0x2479   :  { %3513 = vmatmul.mubr.msk.bf16.vlgmr.msra.gmra.mrb[32].mxu0 %vm197_vm12, %v2495_v46  ;;  %v1846_v46 = vcombine.high %v1838_v41, %v1838_v41  ;;  %v2403_v41 = vrot.slane %v2387_v47, %v4340_v37 }
0x247a   :  { %3525 = vmatpush3.bf16.msra.mxu0 %v4183_v52  ;;  %3528 = vmatprep.mubr.msk.bf16.mxu0 %vm3798_vm1, %v3797_v4 }
0x247b   :  { %3526 = vmatprep.subr.bf16.mxu0 %v3797_v4 }
0x247e   :  { %3527 = vmatpush3.bf16.msra.mxu0 %v4193_v56 }
0x247f   :  { %3544 = vmatprep.subr.bf16.mxu0 %v3797_v4 }
0x254c   :  { %v2533_v48 = vpop.f32.mrb[32].mxu0 }
0x254d   :  { %v2539_v49 = vadd.f32 %v2533_v48, %v4218_v7  ;;  %v3514_v15 = vpop.f32.mrb[33].mxu0 }
0x254e   :  { %v2536_v17 = vpop.f32.mrb[34].mxu0  ;;  %v2029_v15 = vcombine.high %v2021_v6, %v2021_v6 }
0x254f   :  { %3729 = vtanh.f32 %v2539_v49  ;;  %v3515_v50 = vpop.f32.mrb[35].mxu0  ;;  %v4353_v49 = vsub.s32 0, %v1652_v32  ;;  %v2204_v17 = vrot.slane %v4280_v24, %v4340_v37 }
0x2559   :  { %v3730_v51 = vpop.eup %3729 }
0x255a   :  { %v2541_v53 = vmul.f32 0.5, %v3730_v51 }
0x255c   :  { %v2542_v54 = vadd.f32 0.5, %v2541_v53  ;;  %v2212_v53 = vcombine.high %v2204_v17, %v2204_v17 }
0x255e   :  { %v2543_v52 = vsel %vm3944_vm11, %v3730_v51, %v2542_v54  ;;  %v1868_v51 = vrot.slane %v1846_v46, %v4340_v37 }
0x255f   :  { %2546 = vrot.lane.b32.xlu0 %v2543_v52, %s3800_s3  ;;  %v2544_v56 = vmul.f32 %v2543_v52, %v2371_v39  ;;  %v1662_v39 = vcombine.high %v1654_v38, %v1654_v38  ;;  %v2220_v38 = vrot.slane %v2204_v17, %v4340_v37 }
0x2560   :  { %v1887_v54 = vrot.slane %v1868_v51, %v4353_v49 }
0x25d1   :  { %v2547_v55 = vpop.permute.xlu0 %2546 }
0x25d2   :  { %v2549_v57 = vmul.f32 %v2547_v55, %v2543_v52  ;;  %v2395_v55 = vcombine.high %v2387_v47, %v2387_v47 }
0x25d4   :  { %2551 = vrot.lane.b32.xlu1 %v2549_v57, %s3801_s22 }
0x2646   :  { %v2552_v58 = vpop.permute.xlu1 %2551 }
0x2647   :  { %v2554_v60 = vadd.f32 %v2552_v58, %v2544_v56  ;;  %v2234_v58 = vrot.slane %v2212_v53, %v4340_v37 }
0x2649   :  { %3731 = vtanh.f32 %v2554_v60 }
0x2653   :  { %v3732_v61 = vpop.eup %3731 }
0x2654   :  { %2557 = vrot.lane.b32.xlu0 %v3732_v61, %s3800_s3 }
0x26c6   :  { %v2558_v62 = vpop.permute.xlu0 %2557 }
0x26c7   :  { %v4315_v63 = vmul.f32 %v2558_v62, %v2543_v52  ;;  %v2051_v52 = vrot.slane %v2029_v15, %v4340_v37  ;;  %v2253_v62 = vrot.slane %v2234_v58, %v4353_v49 }
0x26c9   :  { %v2561_v14 = vpack.c.bf16 %v4315_v63, %v4315_v63  ;;  %v2570_v57 = vrot.slane %v4315_v63, %v4340_v37  ;;  %v2070_v56 = vrot.slane %v2051_v52, %v4353_v49 }
0x26cb   :  { %2677 = vrot.lane.b32.xlu1 %v2561_v14, %s3801_s22  ;;  %v2417_v14 = vrot.slane %v2395_v55, %v4340_v37  ;;  %v2586_v46 = vrot.slane %v2570_v57, %v4340_v37 }
0x273d   :  { %v2678_v1 = vpop.permute.xlu1 %2677 }
0x273e   :  { %3521 = vmatmul.mubr.msk.bf16.vlgmr.msra.gmra.mrb[32].mxu1 %vm197_vm12, %v2678_v1 }
0x2811   :  { %v2716_v2 = vpop.f32.mrb[32].mxu1 }
0x2812   :  { %v2722_v5 = vadd.f32 %v2716_v2, %v4218_v7  ;;  %v3522_v8 = vpop.f32.mrb[33].mxu1  ;;  %v2436_v2 = vrot.slane %v2417_v14, %v4353_v49 }
0x2813   :  { %v2719_v9 = vpop.f32.mrb[34].mxu1 }
0x2814   :  { %3733 = vtanh.f32 %v2722_v5  ;;  %v3523_v11 = vpop.f32.mrb[35].mxu1 }
0x281e   :  { %v3734_v33 = vpop.eup %3733 }
0x281f   :  { %v2724_v13 = vmul.f32 0.5, %v3734_v33 }
0x2821   :  { %v2725_v16 = vadd.f32 0.5, %v2724_v13 }
0x2823   :  { %v2726_v18 = vsel %vm3944_vm11, %v3734_v33, %v2725_v16  ;;  %v1878_v16 = vcombine.high %v1868_v51, %v1868_v51  ;;  %v1692_v51 = vcombine.high %v1670_v29, %v1670_v29 }
0x2824   :  { %2729 = vrot.lane.b32.xlu0 %v2726_v18, %s3800_s3  ;;  %v2727_v40 = vmul.f32 %v2726_v18, %v2554_v60  ;;  %v2578_v60 = vcombine.high %v2570_v57, %v2570_v57 }
0x2825   :  { %v1707_v47 = vrot.slane %v1692_v51, %v4353_v49 }
0x2826   :  { %v4379_v5 = vrot.slane %v2578_v60, %v4340_v37  ;;  %v2242_v60 = vcombine.high %v2220_v38, %v2220_v38 }
0x2828   :  { %v2619_v8 = vrot.slane %v4379_v5, %v4353_v49 }
0x2896   :  { %v2730_v19 = vpop.permute.xlu0 %2729 }
0x2897   :  { %v2732_v20 = vmul.f32 %v2730_v19, %v2726_v18  ;;  %v2061_v19 = vcombine.high %v2051_v52, %v2051_v52 }
0x2899   :  { %2734 = vrot.lane.b32.xlu1 %v2732_v20, %s3801_s22  ;;  %v2078_v20 = vrot.slane %v2061_v19, %v4353_v49  ;;  %v2014_v19 = vcombine.high %v4262_v0, %v4262_v0 }
0x290b   :  { %v2735_v21 = vpop.permute.xlu1 %2734 }
0x290c   :  { %v4326_v44 = vadd.f32 %v2735_v21, %v2727_v40  ;;  %v2244_v40 = vcombine.high %v2234_v58, %v2234_v58 }
0x290e   :  { %3735 = vtanh.f32 %v4326_v44  ;;  %v2261_v21 = vrot.slane %v2244_v40, %v4353_v49 }
0x2918   :  { %v3736_v22 = vpop.eup %3735 }
0x2919   :  { %2740 = vrot.lane.b32.xlu0 %v3736_v22, %s3800_s3  ;;  %v2427_v22 = vcombine.high %v2417_v14, %v2417_v14  ;;  %v2425_v14 = vcombine.high %v2403_v41, %v2403_v41 }
0x298b   :  { %v2741_v23 = vpop.permute.xlu0 %2740 }
0x298c   :  { %v4330_v26 = vmul.f32 %v2741_v23, %v2726_v18  ;;  %v1895_v18 = vrot.slane %v1878_v16, %v4353_v49  ;;  %v2444_v23 = vrot.slane %v2427_v22, %v4353_v49 }
0x298e   :  { %v2744_v27 = vpack.c.bf16 %v4330_v26, %v4330_v26  ;;  %v2753_v61 = vrot.slane %v4330_v26, %v4340_v37 }
0x2990   :  { %2860 = vrot.lane.b32.xlu1 %v2744_v27, %s3801_s22  ;;  %v2761_v1 = vcombine.high %v2753_v61, %v2753_v61  ;;  %v2769_v15 = vrot.slane %v2753_v61, %v4340_v37 }
0x2992   :  { %v4385_v9 = vrot.slane %v2761_v1, %v4340_v37 }
0x2994   :  { %v2802_v11 = vrot.slane %v4385_v9, %v4353_v49 }
0x2a02   :  { %v2861_v28 = vpop.permute.xlu1 %2860 }
0x2a03   :  { %3529 = vmatmul.mubr.msk.bf16.vlgmr.msra.gmra.mrb[36].mxu0 %vm197_vm12, %v2861_v28 }
0x2a04   :  { %3548 = vmatprep.mubr.msk.bf16.mxu0 %vm3798_vm1, %v3797_v4 }
0x2ad6   :  { %v2899_v30 = vpop.f32.mrb[36].mxu0 }
0x2ad7   :  { %v2905_v34 = vadd.f32 %v2899_v30, %v4218_v7  ;;  %v3530_v35 = vpop.f32.mrb[37].mxu0  ;;  %v1684_v7 = vrot.slane %v1662_v39, %v4340_v37  ;;  %v1699_v30 = vrot.slane %v1670_v29, %v4353_v49  ;;  %v2249_v39 = vrot.slane %v2220_v38, %v4353_v49 }
0x2ad8   :  { %v2902_v36 = vpop.f32.mrb[38].mxu0  ;;  %v2037_v35 = vrot.slane %v2021_v6, %v4340_v37 }
0x2ad9   :  { %3737 = vtanh.f32 %v2905_v34  ;;  %v3531_v12 = vpop.f32.mrb[39].mxu0  ;;  %v1703_v50 = vrot.slane %v1684_v7, %v4353_v49  ;;  %v1694_v33 = vcombine.high %v1684_v7, %v1684_v7  ;;  %v1883_v34 = vrot.slane %v1854_v31, %v4353_v49 }
0x2ada   :  { %v2066_v12 = vrot.slane %v2037_v35, %v4353_v49  ;;  %v2615_v7 = vrot.slane %v2586_v46, %v4353_v49  ;;  %v2059_v57 = vcombine.high %v2037_v35, %v2037_v35 }
0x2adb   :  { %v1711_v13 = vrot.slane %v1694_v33, %v4353_v49 }
0x2adc   :  { %v2074_v58 = vrot.slane %v2059_v57, %v4353_v49 }
0x2ae3   :  { %v3738_v59 = vpop.eup %3737 }
0x2ae4   :  { %v2907_v42 = vmul.f32 0.5, %v3738_v59 }
0x2ae6   :  { %v2908_v3 = vadd.f32 0.5, %v2907_v42 }
0x2ae8   :  { %v4351_v48 = vsel %vm3944_vm11, %v3738_v59, %v2908_v3  ;;  %v2432_v3 = vrot.slane %v2403_v41, %v4353_v49 }
0x2ae9   :  { %2912 = vrot.lane.b32.xlu0 %v4351_v48, %s3800_s3 }
0x2aed   :  { %1730 = vrot.lane.b32.xlu0 %v1703_v50, %s3801_s22  ;;  %v2798_v50 = vrot.slane %v2769_v15, %v4353_v49 }
0x2af1   :  { %1914 = vrot.lane.b32.xlu0 %v1887_v54, %s3801_s22  ;;  %v1876_v54 = vcombine.high %v1854_v31, %v1854_v31 }
0x2af3   :  { %v1891_v55 = vrot.slane %v1876_v54, %v4353_v49 }
0x2af5   :  { %2097 = vrot.lane.b32.xlu0 %v2070_v56, %s3801_s22 }
0x2af9   :  { %2280 = vrot.lane.b32.xlu0 %v2253_v62, %s3801_s22  ;;  %v2257_v62 = vrot.slane %v2242_v60, %v4353_v49 }
0x2afd   :  { %2463 = vrot.lane.b32.xlu0 %v2436_v2, %s3801_s22  ;;  %v1647_v2 = vcombine.high %v4226_v25, %v4226_v25 }
0x2aff   :  { %v4449_v33 = vrot.slane %v1647_v2, %v4340_v37 }
0x2b01   :  { %2646 = vrot.lane.b32.xlu0 %v2619_v8, %s3801_s22  ;;  %v2440_v8 = vrot.slane %v2425_v14, %v4353_v49  ;;  %v1677_v40 = vrot.slane %v4449_v33, %v4340_v37  ;;  %v1663_v2 = vcombine.high %v4449_v33, %v4449_v33 }
0x2b03   :  { %v1715_v22 = vrot.slane %v1677_v40, %v4353_v49 }
0x2b05   :  { %2829 = vrot.lane.b32.xlu0 %v2802_v11, %s3801_s22  ;;  %v2608_v11 = vcombine.high %v2586_v46, %v2586_v46 }
0x2b07   :  { %v2623_v16 = vrot.slane %v2608_v11, %v4353_v49  ;;  %v1691_v11 = vrot.slane %v1663_v2, %v4340_v37 }
0x2b09   :  { %1734 = vrot.lane.b32.xlu0 %v1711_v13, %s3801_s22  ;;  %v1831_v13 = vcombine.high %v4244_v43, %v4244_v43  ;;  %v4465_v43 = vrot.slane %v2014_v19, %v4340_v37 }
0x2b0b   :  { %v4456_v25 = vrot.slane %v1831_v13, %v4340_v37  ;;  %v2044_v29 = vrot.slane %v4465_v43, %v4340_v37 }
0x2b0d   :  { %1918 = vrot.lane.b32.xlu0 %v1895_v18, %s3801_s22  ;;  %v2791_v18 = vcombine.high %v2769_v15, %v2769_v15  ;;  %v1847_v13 = vcombine.high %v4456_v25, %v4456_v25 }
0x2b0f   :  { %v1875_v33 = vrot.slane %v1847_v13, %v4340_v37 }
0x2b11   :  { %2101 = vrot.lane.b32.xlu0 %v2078_v20, %s3801_s22  ;;  %v2806_v20 = vrot.slane %v2791_v18, %v4353_v49  ;;  %v2030_v18 = vcombine.high %v4465_v43, %v4465_v43 }
0x2b15   :  { %2284 = vrot.lane.b32.xlu0 %v2261_v21, %s3801_s22  ;;  %v2197_v21 = vcombine.high %v4280_v24, %v4280_v24 }
0x2b17   :  { %v4474_v0 = vrot.slane %v2197_v21, %v4340_v37 }
0x2b19   :  { %2467 = vrot.lane.b32.xlu0 %v2444_v23, %s3801_s22  ;;  %v1861_v23 = vrot.slane %v4456_v25, %v4340_v37  ;;  %v2227_v31 = vrot.slane %v4474_v0, %v4340_v37  ;;  %v2213_v19 = vcombine.high %v4474_v0, %v4474_v0 }
0x2b1b   :  { %v2265_v35 = vrot.slane %v2227_v31, %v4353_v49  ;;  %v1877_v41 = vcombine.high %v1861_v23, %v1861_v23 }
0x2b1d   :  { %v1907_v46 = vrot.slane %v1877_v41, %v4353_v49 }
0x2b5b   :  { %v2913_v27 = vpop.permute.xlu0 %2912 }
0x2b5c   :  { %v2915_v28 = vmul.f32 %v2913_v27, %v4351_v48  ;;  %v2380_v27 = vcombine.high %v4297_v45, %v4297_v45 }
0x2b5e   :  { %2917 = vrot.lane.b32.xlu1 %v2915_v28, %s3801_s22  ;;  %v1899_v28 = vrot.slane %v1861_v23, %v4353_v49  ;;  %v4483_v24 = vrot.slane %v2380_v27, %v4340_v37  ;;  %v2241_v23 = vrot.slane %v2213_v19, %v4340_v37 }
0x2b5f   :  { %v1731_v10 = vpop.permute.xlu0 %1730 }
0x2b60   :  { %1754 = vst.msk [vmem:[#allocation3 + $0x8] sm:$0x1] %vm1752_vm13, %v1731_v10  ;;  %v2563_v10 = vcombine.high %v4315_v63, %v4315_v63  ;;  %v2410_v45 = vrot.slane %v4483_v24, %v4340_v37  ;;  %v2396_v21 = vcombine.high %v4483_v24, %v4483_v24 }
0x2b62   :  { %1728 = vrot.lane.b32.xlu1 %v1699_v30, %s3801_s22  ;;  %v2082_v30 = vrot.slane %v2044_v29, %v4353_v49 }
0x2b63   :  { %v1915_v32 = vpop.permute.xlu0 %1914 }
0x2b64   :  { %1937 = vst.msk [vmem:[#allocation3 + $0x9] sm:$0x1] %vm1752_vm13, %v1915_v32  ;;  %v4494_v32 = vrot.slane %v2563_v10, %v4340_v37 }
0x2b66   :  { %1912 = vrot.lane.b32.xlu1 %v1883_v34, %s3801_s22  ;;  %v2746_v34 = vcombine.high %v4330_v26, %v4330_v26  ;;  %v2593_v63 = vrot.slane %v4494_v32, %v4340_v37  ;;  %v1693_v26 = vcombine.high %v1677_v40, %v1677_v40  ;;  %v2058_v40 = vrot.slane %v2030_v18, %v4340_v37 }
0x2b67   :  { %v2098_v36 = vpop.permute.xlu0 %2097  ;;  %v2579_v0 = vcombine.high %v4494_v32, %v4494_v32 }
0x2b68   :  { %2120 = vst.msk [vmem:[#allocation3 + $0xa] sm:$0x1] %vm1752_vm13, %v2098_v36  ;;  %v4503_v36 = vrot.slane %v2746_v34, %v4340_v37  ;;  %v2609_v51 = vcombine.high %v2593_v63, %v2593_v63 }
0x2b6a   :  { %2095 = vrot.lane.b32.xlu1 %v2066_v12, %s3801_s22  ;;  %v2448_v12 = vrot.slane %v2410_v45, %v4353_v49  ;;  %v2776_v38 = vrot.slane %v4503_v36, %v4340_v37  ;;  %v2762_v24 = vcombine.high %v4503_v36, %v4503_v36 }
0x2b6b   :  { %v2281_v59 = vpop.permute.xlu0 %2280 }
0x2b6c   :  { %2303 = vst.msk [vmem:[#allocation3 + $0xb] sm:$0x1] %vm1752_vm13, %v2281_v59  ;;  %v2631_v59 = vrot.slane %v2593_v63, %v4353_v49  ;;  %v2790_v34 = vrot.slane %v2762_v24, %v4340_v37 }
0x2b6e   :  { %2278 = vrot.lane.b32.xlu1 %v2249_v39, %s3801_s22  ;;  %v2814_v39 = vrot.slane %v2776_v38, %v4353_v49  ;;  %v2818_v36 = vrot.slane %v2790_v34, %v4353_v49 }
0x2b6f   :  { %v2464_v42 = vpop.permute.xlu0 %2463 }
0x2b70   :  { %2486 = vst.msk [vmem:[#allocation3 + $0xc] sm:$0x1] %vm1752_vm13, %v2464_v42  ;;  %v1723_v42 = vrot.slane %v1693_v26, %v4353_v49  ;;  %v2062_v26 = vcombine.high %v2058_v40, %v2058_v40 }
0x2b72   :  { %2461 = vrot.lane.b32.xlu1 %v2432_v3, %s3801_s22  ;;  %v2060_v3 = vcombine.high %v2044_v29, %v2044_v29  ;;  %v2424_v29 = vrot.slane %v2396_v21, %v4340_v37  ;;  %v3056_v21 = vld [vmem:[%s4729_s7 + $0x10] sm:$0xff] }
0x2b73   :  { %v2647_v6 = vpop.permute.xlu0 %2646 }
0x2b74   :  { %2669 = vst.msk [vmem:[#allocation3 + $0xd] sm:$0x1] %vm1752_vm13, %v2647_v6  ;;  %v2243_v6 = vcombine.high %v2227_v31, %v2227_v31  ;;  %v2607_v31 = vrot.slane %v2579_v0, %v4340_v37 }
0x2b76   :  { %2644 = vrot.lane.b32.xlu1 %v2615_v7, %s3801_s22  ;;  %v2090_v7 = vrot.slane %v2060_v3, %v4353_v49  ;;  %v2273_v15 = vrot.slane %v2243_v6, %v4353_v49  ;;  %v2635_v32 = vrot.slane %v2607_v31, %v4353_v49  ;;  %v2094_v3 = vrot.slane %v2062_v26, %v4353_v49 }
0x2b77   :  { %v2830_v17 = vpop.permute.xlu0 %2829 }
0x2b78   :  { %2852 = vst.msk [vmem:[#allocation3 + $0xe] sm:$0x1] %vm1752_vm13, %v2830_v17  ;;  %v2426_v17 = vcombine.high %v2410_v45, %v2410_v45 }
0x2b7a   :  { %2827 = vrot.lane.b32.xlu1 %v2798_v50, %s3801_s22  ;;  %v2456_v50 = vrot.slane %v2426_v17, %v4353_v49 }
0x2b7b   :  { %v1735_v53 = vpop.permute.xlu0 %1734 }
0x2b7c   :  { %1756 = vst.msk [vmem:[#allocation3 + $0x18] sm:$0x1] %vm1752_vm13, %v1735_v53  ;;  %v2639_v53 = vrot.slane %v2609_v51, %v4353_v49  ;;  %v2611_v51 = vcombine.high %v2607_v31, %v2607_v31  ;;  %v3203_v31 = vld [vmem:[%s4731_s9 + $0x18] sm:$0xff] }
0x2b7e   :  { %1732 = vrot.lane.b32.xlu1 %v1707_v47, %s3801_s22  ;;  %v2792_v47 = vcombine.high %v2776_v38, %v2776_v38 }
0x2b7f   :  { %v1919_v52 = vpop.permute.xlu0 %1918 }
0x2b80   :  { %1939 = vst.msk [vmem:[#allocation3 + $0x19] sm:$0x1] %vm1752_vm13, %v1919_v52  ;;  %v2822_v54 = vrot.slane %v2792_v47, %v4353_v49  ;;  %v2910_v52 = vmul.f32 %v4351_v48, %v4326_v44  ;;  %v2643_v47 = vrot.slane %v2611_v51, %v4353_v49 }
0x2b82   :  { %1916 = vrot.lane.b32.xlu1 %v1891_v55, %s3801_s22 }
0x2b83   :  { %v2102_v56 = vpop.permute.xlu0 %2101 }
0x2b84   :  { %2122 = vst.msk [vmem:[#allocation3 + $0x1a] sm:$0x1] %vm1752_vm13, %v2102_v56 }
0x2b86   :  { %2099 = vrot.lane.b32.xlu1 %v2074_v58, %s3801_s22 }
0x2b87   :  { %v2285_v61 = vpop.permute.xlu0 %2284 }
0x2b88   :  { %2305 = vst.msk [vmem:[#allocation3 + $0x1b] sm:$0x1] %vm1752_vm13, %v2285_v61  ;;  %v2610_v61 = vcombine.high %v4379_v5, %v4379_v5 }
0x2b8a   :  { %2282 = vrot.lane.b32.xlu1 %v2257_v62, %s3801_s22  ;;  %v2627_v44 = vrot.slane %v2610_v61, %v4353_v49 }
0x2b8b   :  { %v2468_v1 = vpop.permute.xlu0 %2467 }
0x2b8c   :  { %2488 = vst.msk [vmem:[#allocation3 + $0x1c] sm:$0x1] %vm1752_vm13, %v2468_v1  ;;  %v2793_v1 = vcombine.high %v4385_v9, %v4385_v9 }
0x2b8e   :  { %2465 = vrot.lane.b32.xlu1 %v2440_v8, %s3801_s22  ;;  %v2810_v5 = vrot.slane %v2793_v1, %v4353_v49 }
0x2b92   :  { %2648 = vrot.lane.b32.xlu1 %v2623_v16, %s3801_s22  ;;  %v1719_v16 = vrot.slane %v1691_v11, %v4353_v49 }
0x2b96   :  { %2831 = vrot.lane.b32.xlu1 %v2806_v20, %s3801_s22  ;;  %v1903_v20 = vrot.slane %v1875_v33, %v4353_v49 }
0x2b9a   :  { %1736 = vrot.lane.b32.xlu1 %v1715_v22, %s3801_s22  ;;  %v2086_v22 = vrot.slane %v2058_v40, %v4353_v49 }
0x2b9e   :  { %1920 = vrot.lane.b32.xlu1 %v1899_v28, %s3801_s22  ;;  %v2269_v28 = vrot.slane %v2241_v23, %v4353_v49 }
0x2ba2   :  { %2103 = vrot.lane.b32.xlu1 %v2082_v30, %s3801_s22  ;;  %v2452_v30 = vrot.slane %v2424_v29, %v4353_v49 }
0x2ba6   :  { %2286 = vrot.lane.b32.xlu1 %v2265_v35, %s3801_s22  ;;  %v1695_v35 = vcombine.high %v1691_v11, %v1691_v11  ;;  %v3055_v11 = vld [vmem:[%s4729_s7 + $0x8] sm:$0xff] }
0x2baa   :  { %2469 = vrot.lane.b32.xlu1 %v2448_v12, %s3801_s22  ;;  %v1879_v12 = vcombine.high %v1875_v33, %v1875_v33 }
0x2bac   :  { %v1911_v41 = vrot.slane %v1879_v12, %v4353_v49 }
0x2bae   :  { %2652 = vrot.lane.b32.xlu1 %v2631_v59, %s3801_s22  ;;  %v1727_v59 = vrot.slane %v1695_v35, %v4353_v49 }
0x2bb2   :  { %2835 = vrot.lane.b32.xlu1 %v2814_v39, %s3801_s22 }
0x2bb6   :  { %1740 = vrot.lane.b32.xlu1 %v1723_v42, %s3801_s22 }
0x2bba   :  { %1924 = vrot.lane.b32.xlu1 %v1907_v46, %s3801_s22  ;;  %v2245_v46 = vcombine.high %v2241_v23, %v2241_v23 }
0x2bbe   :  { %2107 = vrot.lane.b32.xlu1 %v2090_v7, %s3801_s22  ;;  %v2277_v7 = vrot.slane %v2245_v46, %v4353_v49 }
0x2bc2   :  { %2290 = vrot.lane.b32.xlu1 %v2273_v15, %s3801_s22  ;;  %v2428_v15 = vcombine.high %v2424_v29, %v2424_v29 }
0x2bc6   :  { %2473 = vrot.lane.b32.xlu1 %v2456_v50, %s3801_s22  ;;  %v2460_v50 = vrot.slane %v2428_v15, %v4353_v49 }
0x2bca   :  { %2656 = vrot.lane.b32.xlu1 %v2639_v53, %s3801_s22 }
0x2bce   :  { %2839 = vrot.lane.b32.xlu1 %v2822_v54, %s3801_s22  ;;  %v2794_v54 = vcombine.high %v2790_v34, %v2790_v34 }
0x2bd0   :  { %v2918_v55 = vpop.permute.xlu1 %2917 }
0x2bd1   :  { %v2920_v57 = vadd.f32 %v2918_v55, %v2910_v52  ;;  %v2826_v55 = vrot.slane %v2794_v54, %v4353_v49 }
0x2bd3   :  { %3739 = vtanh.f32 %v2920_v57 }
0x2bd4   :  { %v1729_v56 = vpop.permute.xlu1 %1728 }
0x2bd5   :  { %1753 = vst.msk [vmem:[#allocation3] sm:$0x1] %vm1752_vm13, %v1729_v56 }
0x2bd8   :  { %v1913_v58 = vpop.permute.xlu1 %1912 }
0x2bd9   :  { %1936 = vst.msk [vmem:[#allocation3 + $0x1] sm:$0x1] %vm1752_vm13, %v1913_v58 }
0x2bdc   :  { %v2096_v60 = vpop.permute.xlu1 %2095 }
0x2bdd   :  { %v3740_v62 = vpop.eup %3739  ;;  %2119 = vst.msk [vmem:[#allocation3 + $0x2] sm:$0x1] %vm1752_vm13, %v2096_v60 }
0x2bde   :  { %2923 = vrot.lane.b32.xlu0 %v3740_v62, %s3800_s3 }
0x2be0   :  { %v2279_v14 = vpop.permute.xlu1 %2278 }
0x2be1   :  { %2302 = vst.msk [vmem:[#allocation3 + $0x3] sm:$0x1] %vm1752_vm13, %v2279_v14 }
0x2be2   :  { %2650 = vrot.lane.b32.xlu0 %v2627_v44, %s3801_s22 }
0x2be4   :  { %v2462_v8 = vpop.permute.xlu1 %2461 }
0x2be5   :  { %2485 = vst.msk [vmem:[#allocation3 + $0x4] sm:$0x1] %vm1752_vm13, %v2462_v8 }
0x2be6   :  { %2833 = vrot.lane.b32.xlu0 %v2810_v5, %s3801_s22  ;;  %v3054_v5 = vld [vmem:[%s4729_s7] sm:$0xff] }
0x2be8   :  { %v2645_v9 = vpop.permute.xlu1 %2644 }
0x2be9   :  { %2668 = vst.msk [vmem:[#allocation3 + $0x5] sm:$0x1] %vm1752_vm13, %v2645_v9 }
0x2bea   :  { %1738 = vrot.lane.b32.xlu0 %v1719_v16, %s3801_s22  ;;  %v3058_v16 = vpack.c.bf16 %v3055_v11, %v3054_v5 }
0x2bec   :  { %v2828_v25 = vpop.permute.xlu1 %2827  ;;  %3532 = vmatprep.subr.bf16.mxu1 %v3058_v16 }
0x2bed   :  { %2851 = vst.msk [vmem:[#allocation3 + $0x6] sm:$0x1] %vm1752_vm13, %v2828_v25  ;;  %3533 = vmatpush3.bf16.msra.mxu1 %v3058_v16 }
0x2bee   :  { %1922 = vrot.lane.b32.xlu0 %v1903_v20, %s3801_s22  ;;  %v3201_v20 = vld [vmem:[%s4731_s9 + $0x8] sm:$0xff] }
0x2bf0   :  { %v1733_v43 = vpop.permute.xlu1 %1732 }
0x2bf1   :  { %1755 = vst.msk [vmem:[#allocation3 + $0x10] sm:$0x1] %vm1752_vm13, %v1733_v43  ;;  %v3057_v43 = vld [vmem:[%s4729_s7 + $0x18] sm:$0xff] }
0x2bf2   :  { %2105 = vrot.lane.b32.xlu0 %v2086_v22, %s3801_s22 }
0x2bf4   :  { %v1917_v27 = vpop.permute.xlu1 %1916 }
0x2bf5   :  { %1938 = vst.msk [vmem:[#allocation3 + $0x11] sm:$0x1] %vm1752_vm13, %v1917_v27 }
0x2bf6   :  { %2288 = vrot.lane.b32.xlu0 %v2269_v28, %s3801_s22  ;;  %v3059_v28 = vpack.c.bf16 %v3057_v43, %v3056_v21 }
0x2bf8   :  { %v2100_v10 = vpop.permute.xlu1 %2099  ;;  %3534 = vmatprep.subr.bf16.mxu1 %v3059_v28 }
0x2bf9   :  { %2121 = vst.msk [vmem:[#allocation3 + $0x12] sm:$0x1] %vm1752_vm13, %v2100_v10  ;;  %3535 = vmatpush3.bf16.msra.mxu1 %v3059_v28 }
0x2bfa   :  { %2471 = vrot.lane.b32.xlu0 %v2452_v30, %s3801_s22  ;;  %v3202_v30 = vld [vmem:[%s4731_s9 + $0x10] sm:$0xff] }
0x2bfc   :  { %v2283_v45 = vpop.permute.xlu1 %2282 }
0x2bfd   :  { %2304 = vst.msk [vmem:[#allocation3 + $0x13] sm:$0x1] %vm1752_vm13, %v2283_v45  ;;  %v3205_v45 = vpack.c.bf16 %v3203_v31, %v3202_v30 }
0x2bfe   :  { %2654 = vrot.lane.b32.xlu0 %v2635_v32, %s3801_s22 }
0x2c00   :  { %v2466_v63 = vpop.permute.xlu1 %2465 }
0x2c01   :  { %2487 = vst.msk [vmem:[#allocation3 + $0x14] sm:$0x1] %vm1752_vm13, %v2466_v63 }
0x2c02   :  { %2837 = vrot.lane.b32.xlu0 %v2818_v36, %s3801_s22 }
0x2c04   :  { %v2649_v38 = vpop.permute.xlu1 %2648 }
0x2c05   :  { %2670 = vst.msk [vmem:[#allocation3 + $0x15] sm:$0x1] %vm1752_vm13, %v2649_v38 }
0x2c06   :  { %1742 = vrot.lane.b32.xlu0 %v1727_v59, %s3801_s22 }
0x2c08   :  { %v2832_v39 = vpop.permute.xlu1 %2831 }
0x2c09   :  { %2853 = vst.msk [vmem:[#allocation3 + $0x16] sm:$0x1] %vm1752_vm13, %v2832_v39 }
0x2c0a   :  { %1926 = vrot.lane.b32.xlu0 %v1911_v41, %s3801_s22 }
0x2c0c   :  { %v1737_v42 = vpop.permute.xlu1 %1736 }
0x2c0d   :  { %1757 = vst.msk [vmem:[#allocation3 + $0x20] sm:$0x1] %vm1752_vm13, %v1737_v42 }
0x2c0e   :  { %2109 = vrot.lane.b32.xlu0 %v2094_v3, %s3801_s22 }
0x2c10   :  { %v1921_v6 = vpop.permute.xlu1 %1920 }
0x2c11   :  { %1940 = vst.msk [vmem:[#allocation3 + $0x21] sm:$0x1] %vm1752_vm13, %v1921_v6 }
0x2c12   :  { %2292 = vrot.lane.b32.xlu0 %v2277_v7, %s3801_s22 }
0x2c14   :  { %v2104_v17 = vpop.permute.xlu1 %2103 }
0x2c15   :  { %2123 = vst.msk [vmem:[#allocation3 + $0x22] sm:$0x1] %vm1752_vm13, %v2104_v17 }
0x2c16   :  { %2475 = vrot.lane.b32.xlu0 %v2460_v50, %s3801_s22 }
0x2c18   :  { %v2287_v53 = vpop.permute.xlu1 %2286 }
0x2c19   :  { %2306 = vst.msk [vmem:[#allocation3 + $0x23] sm:$0x1] %vm1752_vm13, %v2287_v53 }
0x2c1a   :  { %2658 = vrot.lane.b32.xlu0 %v2643_v47, %s3801_s22 }
0x2c1c   :  { %v2470_v52 = vpop.permute.xlu1 %2469 }
0x2c1d   :  { %2489 = vst.msk [vmem:[#allocation3 + $0x24] sm:$0x1] %vm1752_vm13, %v2470_v52 }
0x2c1e   :  { %2841 = vrot.lane.b32.xlu0 %v2826_v55, %s3801_s22 }
0x2c20   :  { %v2653_v57 = vpop.permute.xlu1 %2652 }
0x2c21   :  { %2672 = vst.msk [vmem:[#allocation3 + $0x25] sm:$0x1] %vm1752_vm13, %v2653_v57 }
0x2c24   :  { %v2836_v56 = vpop.permute.xlu1 %2835 }
0x2c25   :  { %2855 = vst.msk [vmem:[#allocation3 + $0x26] sm:$0x1] %vm1752_vm13, %v2836_v56 }
0x2c28   :  { %v1741_v58 = vpop.permute.xlu1 %1740 }
0x2c29   :  { %1759 = vst.msk [vmem:[#allocation3 + $0x30] sm:$0x1] %vm1752_vm13, %v1741_v58 }
0x2c2c   :  { %v1925_v60 = vpop.permute.xlu1 %1924 }
0x2c2d   :  { %1942 = vst.msk [vmem:[#allocation3 + $0x31] sm:$0x1] %vm1752_vm13, %v1925_v60 }
0x2c30   :  { %v2108_v61 = vpop.permute.xlu1 %2107 }
0x2c31   :  { %2125 = vst.msk [vmem:[#allocation3 + $0x32] sm:$0x1] %vm1752_vm13, %v2108_v61 }
0x2c34   :  { %v2291_v62 = vpop.permute.xlu1 %2290 }
0x2c35   :  { %2308 = vst.msk [vmem:[#allocation3 + $0x33] sm:$0x1] %vm1752_vm13, %v2291_v62 }
0x2c38   :  { %v2474_v14 = vpop.permute.xlu1 %2473 }
0x2c39   :  { %2491 = vst.msk [vmem:[#allocation3 + $0x34] sm:$0x1] %vm1752_vm13, %v2474_v14 }
0x2c3c   :  { %v2657_v44 = vpop.permute.xlu1 %2656 }
0x2c3d   :  { %2674 = vst.msk [vmem:[#allocation3 + $0x35] sm:$0x1] %vm1752_vm13, %v2657_v44 }
0x2c40   :  { %v2840_v1 = vpop.permute.xlu1 %2839 }
0x2c41   :  { %2857 = vst.msk [vmem:[#allocation3 + $0x36] sm:$0x1] %vm1752_vm13, %v2840_v1 }
0x2c50   :  { %v2924_v2 = vpop.permute.xlu0 %2923 }
0x2c51   :  { %v2926_v8 = vmul.f32 %v2924_v2, %v4351_v48  ;;  %v3200_v48 = vld [vmem:[%s4731_s9] sm:$0xff] }
0x2c52   :  { %v3204_v40 = vpack.c.bf16 %v3201_v20, %v3200_v48 }
0x2c53   :  { %v2929_v13 = vcombine.high %v2926_v8, %v2926_v8  ;;  %v2936_v9 = vrot.slane %v2926_v8, %v4340_v37  ;;  %v2927_v42 = vpack.c.bf16 %v2926_v8, %v2926_v8 }
0x2c54   :  { %v2651_v33 = vpop.permute.xlu0 %2650  ;;  %3545 = vmatpush3.bf16.msra.mxu0 %v3204_v40 }
0x2c55   :  { %v2943_v18 = vrot.slane %v2929_v13, %v4340_v37  ;;  %v2944_v19 = vcombine.high %v2936_v9, %v2936_v9  ;;  %v2952_v25 = vrot.slane %v2936_v9, %v4340_v37  ;;  %2671 = vst.msk [vmem:[#allocation3 + $0x1d] sm:$0x1] %vm1752_vm13, %v2651_v33  ;;  %3546 = vmatprep.subr.bf16.mxu0 %v3797_v4 }
0x2c57   :  { %v2966_v22 = vrot.slane %v2944_v19, %v4340_v37  ;;  %v2974_v23 = vcombine.high %v2952_v25, %v2952_v25  ;;  %v2981_v27 = vrot.slane %v2952_v25, %v4353_v49  ;;  %v2945_v29 = vcombine.high %v2943_v18, %v2943_v18  ;;  %v3306_v19 = vld [vmem:[%s4730_s8] ss:$0 sm:$0xff]  ;;  %s3803_s8 = smov [#allocation4]  }
0x2c58   :  { %v2834_v0 = vpop.permute.xlu0 %2833  ;;  %v2959_v32 = vrot.slane %v2943_v18, %v4340_v37  ;;  %3547 = vmatpush3.bf16.msra.mxu0 %v3205_v45  ;;  %v3319_v25 = vld [vmem:[%s4732_s10] ss:$0 sm:$0xff]  ;;  %s3266_s10 = sshll.u32 %s3803_s8, 4  ;;  %s3267_s10 = int_to_ptr.vmem [resolvable:$true] %s3266_s10 }
0x2c59   :  { %2854 = vst.msk [vmem:[#allocation3 + $0x1e] sm:$0x1] %vm1752_vm13, %v2834_v0  ;;  %v2985_v24 = vrot.slane %v2966_v22, %v4353_v49  ;;  %v2976_v10 = vcombine.high %v2966_v22, %v2966_v22  ;;  %3010 = vrot.lane.b32.xlu1 %v2981_v27, %s3801_s22  ;;  %v2989_v4 = vrot.slane %v2974_v23, %v4353_v49  ;;  %p3778_p1 = scmp.lt.s32.totalorder %s3267_s10, %s3267_s10 }
0x2c5a   :  { %v2973_v63 = vrot.slane %v2945_v29, %v4340_v37  ;;  %v2997_v12 = vrot.slane %v2959_v32, %v4353_v49  ;;  %v2975_v38 = vcombine.high %v2959_v32, %v2959_v32 }
0x2c5b   :  { %3012 = vrot.lane.b32.xlu0 %v2985_v24, %s3801_s22  ;;  %v2993_v35 = vrot.slane %v2976_v10, %v4353_v49 }
0x2c5c   :  { %v1739_v34 = vpop.permute.xlu0 %1738  ;;  %v3001_v59 = vrot.slane %v2973_v63, %v4353_v49  ;;  %v2977_v26 = vcombine.high %v2973_v63, %v2973_v63  ;;  %v3005_v37 = vrot.slane %v2975_v38, %v4353_v49 }
0x2c5d   :  { %1758 = vst.msk [vmem:[#allocation3 + $0x28] sm:$0x1] %vm1752_vm13, %v1739_v34  ;;  %3014 = vrot.lane.b32.xlu1 %v2989_v4, %s3801_s22 }
0x2c5e   :  { %v3009_v41 = vrot.slane %v2977_v26, %v4353_v49 }
0x2c5f   :  { %3016 = vrot.lane.b32.xlu0 %v2993_v35, %s3801_s22 }
0x2c60   :  { %v1923_v36 = vpop.permute.xlu0 %1922 }
0x2c61   :  { %1941 = vst.msk [vmem:[#allocation3 + $0x29] sm:$0x1] %vm1752_vm13, %v1923_v36  ;;  %3018 = vrot.lane.b32.xlu1 %v2997_v12, %s3801_s22 }
0x2c63   :  { %3020 = vrot.lane.b32.xlu0 %v3001_v59, %s3801_s22 }
0x2c64   :  { %v2106_v39 = vpop.permute.xlu0 %2105 }
0x2c65   :  { %2124 = vst.msk [vmem:[#allocation3 + $0x2a] sm:$0x1] %vm1752_vm13, %v2106_v39  ;;  %3022 = vrot.lane.b32.xlu1 %v3005_v37, %s3801_s22 }
0x2c67   :  { %3024 = vrot.lane.b32.xlu0 %v3009_v41, %s3801_s22 }
0x2c68   :  { %v2289_v3 = vpop.permute.xlu0 %2288 }
0x2c69   :  { %2307 = vst.msk [vmem:[#allocation3 + $0x2b] sm:$0x1] %vm1752_vm13, %v2289_v3  ;;  %3214 = vrot.lane.b32.xlu1 %v2927_v42, %s3801_s22 }
0x2c6c   :  { %v2472_v46 = vpop.permute.xlu0 %2471 }
0x2c6d   :  { %2490 = vst.msk [vmem:[#allocation3 + $0x2c] sm:$0x1] %vm1752_vm13, %v2472_v46 }
0x2c70   :  { %v2655_v6 = vpop.permute.xlu0 %2654 }
0x2c71   :  { %2673 = vst.msk [vmem:[#allocation3 + $0x2d] sm:$0x1] %vm1752_vm13, %v2655_v6 }
0x2c74   :  { %v2838_v7 = vpop.permute.xlu0 %2837 }
0x2c75   :  { %2856 = vst.msk [vmem:[#allocation3 + $0x2e] sm:$0x1] %vm1752_vm13, %v2838_v7 }
0x2c78   :  { %v1743_v49 = vpop.permute.xlu0 %1742 }
0x2c79   :  { %1760 = vst.msk [vmem:[#allocation3 + $0x38] sm:$0x1] %vm1752_vm13, %v1743_v49 }
0x2c7c   :  { %v1927_v15 = vpop.permute.xlu0 %1926 }
0x2c7d   :  { %1943 = vst.msk [vmem:[#allocation3 + $0x39] sm:$0x1] %vm1752_vm13, %v1927_v15 }
0x2c80   :  { %v2110_v17 = vpop.permute.xlu0 %2109 }
0x2c81   :  { %2126 = vst.msk [vmem:[#allocation3 + $0x3a] sm:$0x1] %vm1752_vm13, %v2110_v17 }
0x2c84   :  { %v2293_v50 = vpop.permute.xlu0 %2292 }
0x2c85   :  { %2309 = vst.msk [vmem:[#allocation3 + $0x3b] sm:$0x1] %vm1752_vm13, %v2293_v50 }
0x2c88   :  { %v2476_v51 = vpop.permute.xlu0 %2475 }
0x2c89   :  { %2492 = vst.msk [vmem:[#allocation3 + $0x3c] sm:$0x1] %vm1752_vm13, %v2476_v51 }
0x2c8c   :  { %v2659_v53 = vpop.permute.xlu0 %2658 }
0x2c8d   :  { %2675 = vst.msk [vmem:[#allocation3 + $0x3d] sm:$0x1] %vm1752_vm13, %v2659_v53 }
0x2c90   :  { %v2842_v47 = vpop.permute.xlu0 %2841 }
0x2c91   :  { %2858 = vst.msk [vmem:[#allocation3 + $0x3e] sm:$0x1] %vm1752_vm13, %v2842_v47 }
0x2ccb   :  { %v3011_v54 = vpop.permute.xlu1 %3010 }
0x2ccc   :  { %3034 = vst.msk [vmem:[#allocation3 + $0x7] sm:$0x1] %vm1752_vm13, %v3011_v54 }
0x2ccd   :  { %v3013_v52 = vpop.permute.xlu0 %3012 }
0x2cce   :  { %3035 = vst.msk [vmem:[#allocation3 + $0xf] sm:$0x1] %vm1752_vm13, %v3013_v52 }
0x2ccf   :  { %v3015_v55 = vpop.permute.xlu1 %3014 }
0x2cd0   :  { %3036 = vst.msk [vmem:[#allocation3 + $0x17] sm:$0x1] %vm1752_vm13, %v3015_v55 }
0x2cd1   :  { %v3017_v57 = vpop.permute.xlu0 %3016 }
0x2cd2   :  { %3037 = vst.msk [vmem:[#allocation3 + $0x1f] sm:$0x1] %vm1752_vm13, %v3017_v57 }
0x2cd3   :  { %v3019_v56 = vpop.permute.xlu1 %3018  ;;  %v3042_v60 = vld [vmem:[#allocation3] sm:$0xff] }
0x2cd4   :  { %3038 = vst.msk [vmem:[#allocation3 + $0x27] sm:$0x1] %vm1752_vm13, %v3019_v56 }
0x2cd5   :  { %v3021_v58 = vpop.permute.xlu0 %3020  ;;  %v3043_v61 = vld [vmem:[#allocation3 + $0x8] sm:$0xff] }
0x2cd6   :  { %3039 = vst.msk [vmem:[#allocation3 + $0x2f] sm:$0x1] %vm1752_vm13, %v3021_v58  ;;  %v3050_v62 = vpack.c.bf16 %v3043_v61, %v3042_v60 }
0x2cd7   :  { %v3023_v14 = vpop.permute.xlu1 %3022  ;;  %v3044_v1 = vld [vmem:[#allocation3 + $0x10] sm:$0xff] }
0x2cd8   :  { %3536 = vmatprep.mubr.msk.bf16.mxu1 %vm197_vm12, %v3050_v62  ;;  %3040 = vst.msk [vmem:[#allocation3 + $0x37] sm:$0x1] %vm1752_vm13, %v3023_v14 }
0x2cd9   :  { %v3025_v44 = vpop.permute.xlu0 %3024  ;;  %v3045_v2 = vld [vmem:[#allocation3 + $0x18] sm:$0xff] }
0x2cda   :  { %3041 = vst.msk [vmem:[#allocation3 + $0x3f] sm:$0x1] %vm1752_vm13, %v3025_v44  ;;  %v3051_v8 = vpack.c.bf16 %v3045_v2, %v3044_v1 }
0x2cdb   :  { %v3215_v5 = vpop.permute.xlu1 %3214  ;;  %v3046_v11 = vld [vmem:[#allocation3 + $0x20] sm:$0xff] }
0x2cdc   :  { %3537 = vmatmul.mubr.msk.bf16.vlgmr.msra.gmra.mrb[36].mxu1 %vm197_vm12, %v3051_v8  ;;  %3549 = vmatmul.mubr.msk.bf16.vlgmr.msra.gmra.mrb[40].mxu0 %vm197_vm12, %v3215_v5 }
0x2cdd   :  { %v3047_v13 = vld [vmem:[#allocation3 + $0x28] sm:$0xff] }
0x2cde   :  { %v3052_v9 = vpack.c.bf16 %v3047_v13, %v3046_v11 }
0x2cdf   :  { %v3048_v16 = vld [vmem:[#allocation3 + $0x30] sm:$0xff] }
0x2ce0   :  { %3540 = vmatprep.mubr.msk.bf16.mxu1 %vm197_vm12, %v3052_v9 }
0x2ce1   :  { %v3049_v33 = vld [vmem:[#allocation3 + $0x38] sm:$0xff] }
0x2ce2   :  { %v3053_v18 = vpack.c.bf16 %v3049_v33, %v3048_v16 }
0x2ce4   :  { %3541 = vmatmul.mubr.msk.bf16.gmra.mrb[40].mxu1 %vm197_vm12, %v3053_v18 }
0x2daf   :  { %v3538_v48 = vpop.f32.mrb[36].mxu1  ;;  %v3253_v40 = vpop.f32.mrb[40].mxu0 }
0x2db0   :  { %v3122_v20 = vadd.f32 %v3538_v48, %v3306_v19  ;;  %v3113_v21 = vpop.f32.mrb[37].mxu1  ;;  %v3254_v43 = vadd.f32 %v3319_v25, %v3253_v40  ;;  %v3550_v23 = vpop.f32.mrb[41].mxu0 }
0x2db1   :  { %v3114_v22 = vadd.f32 %v3306_v19, %v3113_v21  ;;  %v3539_v0 = vpop.f32.mrb[38].mxu1  ;;  %v3256_v29 = vpop.f32.mrb[42].mxu0 }
0x2db2   :  { %v3313_v27 = vmul.f32 -1.442695, %v3122_v20  ;;  %v3125_v28 = vadd.f32 %v3539_v0, %v3306_v19  ;;  %v3116_v24 = vpop.f32.mrb[39].mxu1  ;;  %3260 = vst.msk [vmem:[%s4734_s12] sm:$0xff] %vm3259_vm14, %v3254_v43  ;;  %v3551_v31 = vpop.f32.mrb[43].mxu0  ;;  %s3773_s12 = scalar_lea.vmem %s3267_s10, 1024 }
0x2db3   :  { %v3311_v10 = vmul.f32 -1.442695, %v3114_v22  ;;  %v3117_v30 = vadd.f32 %v3306_v19, %v3116_v24  ;;  %p3774_p0 = scmp.ne.s32.totalorder %s3267_s10, %s3773_s12  ;;  %p3779_p2 = scmp.lt.s32.totalorder %s3773_s12, %s3773_s12 }
0x2db4   :  { %3741 = vpow2.f32 %v3313_v27  ;;  %v3314_v45 = vmul.f32 -1.442695, %v3125_v28 }
0x2db5   :  { %3743 = vpow2.f32 %v3311_v10  ;;  %v3312_v32 = vmul.f32 -1.442695, %v3117_v30  ;;  %p3780_p3 = por %p3779_p2, %p3778_p1 }
0x2db6   :  { %3745 = vpow2.f32 %v3314_v45 }
0x2db7   :  { %3747 = vpow2.f32 %v3312_v32  ;;  %v3542_v34 = vpop.f32.mrb[40].mxu1  ;;  %p3781_p4 = pnand %p3780_p3, %p3774_p0 }
0x2db8   :  { %v3138_v4 = vadd.f32 %v3542_v34, %v3306_v19  ;;  %v3129_v35 = vpop.f32.mrb[41].mxu1 }
0x2db9   :  { %v3130_v63 = vadd.f32 %v3306_v19, %v3129_v35  ;;  %v3543_v36 = vpop.f32.mrb[42].mxu1 }
0x2dba   :  { %v3317_v12 = vmul.f32 -1.442695, %v3138_v4  ;;  %v3141_v38 = vadd.f32 %v3543_v36, %v3306_v19  ;;  %v3132_v59 = vpop.f32.mrb[43].mxu1 }
0x2dbb   :  { %v3315_v26 = vmul.f32 -1.442695, %v3130_v63  ;;  %v3133_v39 = vadd.f32 %v3306_v19, %v3132_v59 }
0x2dbc   :  { %3749 = vpow2.f32 %v3317_v12  ;;  %v3318_v37 = vmul.f32 -1.442695, %v3141_v38 }
0x2dbd   :  { %3751 = vpow2.f32 %v3315_v26  ;;  %v3316_v41 = vmul.f32 -1.442695, %v3133_v39 }
0x2dbe   :  { %v3742_v42 = vpop.eup %3741  ;;  %3753 = vpow2.f32 %v3318_v37 }
0x2dbf   :  { %v3744_v3 = vpop.eup %3743  ;;  %v3170_v46 = vadd.f32 1.0, %v3742_v42  ;;  %3755 = vpow2.f32 %v3316_v41 }
0x2dc0   :  { %v3746_v6 = vpop.eup %3745  ;;  %v3168_v7 = vadd.f32 1.0, %v3744_v3 }
0x2dc1   :  { %v3748_v49 = vpop.eup %3747  ;;  %3757 = vrcp.f32 %v3170_v46  ;;  %v3171_v15 = vadd.f32 1.0, %v3746_v6 }
0x2dc2   :  { %3759 = vrcp.f32 %v3168_v7  ;;  %v3169_v17 = vadd.f32 1.0, %v3748_v49 }
0x2dc3   :  { %3761 = vrcp.f32 %v3171_v15 }
0x2dc4   :  { %3763 = vrcp.f32 %v3169_v17 }
0x2dc6   :  { %v3750_v50 = vpop.eup %3749 }
0x2dc7   :  { %v3752_v51 = vpop.eup %3751  ;;  %v3174_v53 = vadd.f32 1.0, %v3750_v50 }
0x2dc8   :  { %v3754_v47 = vpop.eup %3753  ;;  %v3172_v54 = vadd.f32 1.0, %v3752_v51 }
0x2dc9   :  { %v3756_v52 = vpop.eup %3755  ;;  %3765 = vrcp.f32 %v3174_v53  ;;  %v3175_v55 = vadd.f32 1.0, %v3754_v47 }
0x2dca   :  { %3767 = vrcp.f32 %v3172_v54  ;;  %v3173_v57 = vadd.f32 1.0, %v3756_v52 }
0x2dcb   :  { %v3758_v56 = vpop.eup %3757  ;;  %3769 = vrcp.f32 %v3175_v55 }
0x2dcc   :  { %v3760_v58 = vpop.eup %3759  ;;  %3194 = vst.msk [vmem:[#allocation4 + $0x10] sm:$0xff] %vm103_vm0, %v3758_v56  ;;  %3771 = vrcp.f32 %v3173_v57 }
0x2dcd   :  { %v3762_v60 = vpop.eup %3761  ;;  %3192 = vst.msk [vmem:[#allocation4] sm:$0xff] %vm103_vm0, %v3760_v58 }
0x2dce   :  { %v3764_v61 = vpop.eup %3763  ;;  %3195 = vst.msk [vmem:[#allocation4 + $0x18] sm:$0xff] %vm103_vm0, %v3762_v60 }
0x2dcf   :  { %3193 = vst.msk [vmem:[#allocation4 + $0x8] sm:$0xff] %vm103_vm0, %v3764_v61 }
0x2dd3   :  { %v3766_v62 = vpop.eup %3765 }
0x2dd4   :  { %v3768_v14 = vpop.eup %3767  ;;  %3198 = vst.msk [vmem:[#allocation4 + $0x30] sm:$0xff] %vm103_vm0, %v3766_v62 }
0x2dd5   :  { %v3770_v44 = vpop.eup %3769  ;;  %3196 = vst.msk [vmem:[#allocation4 + $0x20] sm:$0xff] %vm103_vm0, %v3768_v14 }
0x2dd6   :  { %v3772_v1 = vpop.eup %3771  ;;  %3199 = vst.msk [vmem:[#allocation4 + $0x38] sm:$0xff] %vm103_vm0, %v3770_v44 }
0x2dd7   :  { %3197 = vst.msk [vmem:[#allocation4 + $0x28] sm:$0xff] %vm103_vm0, %v3772_v1 }
0x2dd8   :  { %3784 = shalt.err (!%p3781_p4)
}
0x2dd9   :  { %s3785_s19 = scalar_lea.hbm %s4733_s11, 1024 }
0x2dda   :  { %p3786_p5 = scmp.ne.s32.totalorder %s4733_s11, %s3785_s19  ;;  %p3789_p6 = scmp.lt.u32.totalorder %s3785_s19, %s4733_s11 }
0x2ddc   :  { %p3791_p7 = pnand %p3789_p6, %p3786_p5 }
0x2dde   :  { %3794 = shalt.err (!%p3791_p7)
}
0x2ddf   :  { %s3804_s20 = smov 128   ;;  %s3805_s0 = smov 8  }
0x2de0   :  { %3272 = dma.vmem_to_hbm [thread:$0]  %s3267_s10, 1024, %s4733_s11, [#allocation5], %s3804_s20, %s3804_s20, %s3805_s0  }
0x2de1   :  { %3795 = dma.done.wait [#allocation5], 1024  }
0x2de2   :  { %3796 = vsyncadd [#allocation5], 4294966272 }
0x2de3   :  { %3280 = vsyncpa [#allocation5], 1 }

</bundles_post_ra>
